<compile_context>
chip_gen: v6e
topology: v6e:2x2x1
jax: 0.10.0
libtpu: 0.0.40
codegen_flags: <defaults>
</compile_context>

<pallas_src>
import functools

import jax
import jax.numpy as jnp
from jax import lax
from jax.experimental import pallas as pl
from jax.experimental.pallas import tpu as pltpu

COUT_PAD = 8  # pad conv2's 3 output channels to 8 sublanes (unmasked stores)


def _fused_kernel(x_ref, w1_ref, b1_ref, w2_ref, b2_ref, m_ref,
                  o_ref, t1_ref, t2_ref, *, W):
    # x_ref : (Cin,  N)       N = B*H*W (batch folded into lanes)
    # w1_ref: (Cmid, 9*Cin)   K-concatenated per-tap conv1 weights
    # b1_ref: (Cmid, 1)
    # w2_ref: (COUT_PAD, 9*Cmid)
    # b2_ref: (COUT_PAD, 1)
    # m_ref : (9, 1, N)       0/1 validity masks per 3x3 tap (zero "SAME" pad)
    # o_ref : (COUT_PAD, N)
    # t1_ref: (9*Cin,  N) f32 VMEM scratch (stacked conv1 taps)
    # t2_ref: (9*Cmid, N) f32 VMEM scratch (stacked conv2 taps)
    N = x_ref.shape[-1]

    def stack_taps(inp, taps_ref):
        # Row block t of taps_ref holds the input shifted by tap t's spatial
        # offset, with out-of-image (and cross-batch wrapped) pixels zeroed.
        c = inp.shape[0]
        for dy in range(3):
            for dx in range(3):
                t = 3 * dy + dx
                s = (dy - 1) * W + (dx - 1)            # flat pixel shift
                if s == 0:
                    tap = inp                          # center tap: mask all-ones
                else:
                    shifted = pltpu.roll(inp, shift=(-s) % N, axis=inp.ndim - 1)
                    tap = shifted * m_ref[t]           # zero wrapped / OOB pixels
                taps_ref[t * c:(t + 1) * c, :] = tap

    x = x_ref[...].astype(jnp.float32)

    # conv1 + bias + ReLU: one (Cmid, 9*Cin) @ (9*Cin, N) MXU matmul
    stack_taps(x, t1_ref)
    h = jnp.dot(w1_ref[...], t1_ref[...], preferred_element_type=jnp.float32)
    h = jnp.maximum(h + b1_ref[...], 0.0)              # stays on-chip

    # conv2 + bias: one (COUT_PAD, 9*Cmid) @ (9*Cmid, N) MXU matmul
    stack_taps(h, t2_ref)
    y = jnp.dot(w2_ref[...], t2_ref[...], preferred_element_type=jnp.float32)
    o_ref[...] = (y + b2_ref[...]).astype(o_ref.dtype)


def _boundary_masks(H, W, dtype):
    # (9, 1, H*W) 0/1 masks implementing the zero "SAME" padding per 3x3 tap.
    yy, xx = jnp.meshgrid(jnp.arange(H), jnp.arange(W), indexing="ij")
    yy = yy.reshape(1, H * W)
    xx = xx.reshape(1, H * W)
    masks = []
    for dy in range(3):
        for dx in range(3):
            ry, rx = dy - 1, dx - 1
            valid = ((yy + ry >= 0) & (yy + ry < H) &
                     (xx + rx >= 0) & (xx + rx < W))
            masks.append(valid.astype(dtype))
    return jnp.stack(masks, axis=0)


def pack_params(params, batch, height, width, dtype=jnp.float32):
    """One-time repack (call OUTSIDE the jitted forward)."""
    w1, b1, w2, b2 = params                            # HWIO weights, (C,) biases
    cin, cmid = w1.shape[2], w1.shape[3]
    cout = w2.shape[3]
    # (dy,dx,i,o) -> (o,dy,dx,i) -> (Cout, 9*Cin): K index = (3*dy+dx)*Cin + i
    w1p = jnp.transpose(w1, (3, 0, 1, 2)).reshape(cmid, 9 * cin).astype(dtype)
    w2p = jnp.transpose(w2, (3, 0, 1, 2)).reshape(cout, 9 * cmid)
    w2p = jnp.pad(w2p, ((0, COUT_PAD - cout), (0, 0))).astype(dtype)
    b1c = b1.reshape(cmid, 1).astype(dtype)
    b2c = jnp.pad(b2.reshape(cout, 1), ((0, COUT_PAD - cout), (0, 0))).astype(dtype)
    masks = _boundary_masks(height, width, dtype)      # (9, 1, H*W)
    masks = jnp.tile(masks, (1, 1, batch))             # (9, 1, B*H*W) — per-image mask repeated
    return (w1p, b1c, w2p, b2c, masks)


def cover_reconstructor_forward(x_nchw, packed):
    """conv(64->32,3x3,SAME) -> ReLU -> conv(32->3,3x3,SAME). NCHW in/out."""
    w1p, b1c, w2p, b2c, masks = packed
    B, Cin, H, W = x_nchw.shape
    N = B * H * W
    Cmid = w1p.shape[0]

    # (B,Cin,H,W) -> (Cin, B*H*W): channels on sublanes, batch*pixels on lanes.
    x_flat = jnp.transpose(x_nchw, (1, 0, 2, 3)).reshape(Cin, N)

    kern = functools.partial(_fused_kernel, W=W)
    out_flat = pl.pallas_call(
        kern,
        out_shape=jax.ShapeDtypeStruct((COUT_PAD, N), x_nchw.dtype),
        # no grid: single step, whole arrays resident in VMEM (working set < 2 MiB)
        scratch_shapes=[
            pltpu.VMEM((9 * Cin, N), jnp.float32),     # stacked conv1 taps
            pltpu.VMEM((9 * Cmid, N), jnp.float32),    # stacked conv2 taps
        ],
    )(x_flat, w1p, b1c, w2p, b2c, masks)

    # drop the 5 zero-padded output channels, restore NCHW
    out = out_flat[:3].reshape(3, B, H, W)
    return jnp.transpose(out, (1, 0, 2, 3))


def _reference_forward(x_nchw, params):
    # Pure-JAX reference (XLA conv) used only for correctness checking.
    w1, b1, w2, b2 = params
    dn = ("NHWC", "HWIO", "NHWC")
    x = jnp.transpose(x_nchw, (0, 2, 3, 1))
    h = lax.conv_general_dilated(x, w1, (1, 1), "SAME", dimension_numbers=dn) + b1
    h = jnp.maximum(h, 0.0)
    y = lax.conv_general_dilated(h, w2, (1, 1), "SAME", dimension_numbers=dn) + b2
    return jnp.transpose(y, (0, 3, 1, 2))


def init_params(key, num_channels=64):
    # Deterministic synthetic init (shapes match nn.Conv2d(num_channels,32,3)
    # and nn.Conv2d(32,3,3)); not a checkpoint load.
    k1, k2, k3, k4 = jax.random.split(key, 4)
    w1 = jax.random.normal(k1, (3, 3, num_channels, 32), jnp.float32) * 0.05
    b1 = jax.random.normal(k2, (32,), jnp.float32) * 0.05
    w2 = jax.random.normal(k3, (3, 3, 32, 3), jnp.float32) * 0.05
    b2 = jax.random.normal(k4, (3,), jnp.float32) * 0.05
    return (w1, b1, w2, b2)


if __name__ == "__main__":
    key = jax.random.PRNGKey(0)
    kx, kp = jax.random.split(key)

    # cover_features, NCHW like the PyTorch module: (batch=2, channels=64, 16, 16)
    x = jax.random.normal(kx, (2, 64, 16, 16), jnp.float32)
    params = init_params(kp, num_channels=64)

    # One-time repack (weights / bias columns / boundary masks), outside jit.
    packed = pack_params(params, batch=2, height=16, width=16)

    fwd = jax.jit(cover_reconstructor_forward)
    out = jax.block_until_ready(fwd(x, packed))
    ref = jax.block_until_ready(_reference_forward(x, params))

    assert out.shape == (2, 3, 16, 16), out.shape
    max_err = float(jnp.max(jnp.abs(out - ref)))
    assert jnp.allclose(out, ref, atol=1e-4, rtol=1e-4), max_err
    print("KERNEL_OK")
</pallas_src>

<mosaic_0001>
module attributes {stable_mosaic.version = 11 : i64} {
  func.func @_fused_kernel(%arg0: memref<64x512xf32, #tpu.memory_space<vmem>>, %arg1: memref<32x576xf32, #tpu.memory_space<vmem>>, %arg2: memref<32x1xf32, #tpu.memory_space<vmem>>, %arg3: memref<8x288xf32, #tpu.memory_space<vmem>>, %arg4: memref<8x1xf32, #tpu.memory_space<vmem>>, %arg5: memref<9x1x512xf32, #tpu.memory_space<vmem>>, %arg6: memref<8x512xf32, #tpu.memory_space<vmem>>, %arg7: memref<576x512xf32, #tpu.memory_space<vmem>>, %arg8: memref<288x512xf32, #tpu.memory_space<vmem>>) attributes {dimension_semantics = [], scalar_prefetch = 0 : i64, scratch_operands = 2 : i64, tpu.core_type = #tpu.core_type<tc>} {
    %c0 = arith.constant 0 : index
    %c0_0 = arith.constant 0 : index
    %0 = vector.load %arg0[%c0, %c0_0] : memref<64x512xf32, #tpu.memory_space<vmem>>, vector<64x512xf32>
    %c17_i32 = arith.constant 17 : i32
    %1 = tpu.dynamic_rotate %0 by %c17_i32 dim 1 : vector<64x512xf32>, i32 -> vector<64x512xf32>
    %c0_1 = arith.constant 0 : index
    %c0_2 = arith.constant 0 : index
    %c0_3 = arith.constant 0 : index
    %2 = vector.load %arg5[%c0_1, %c0_2, %c0_3] : memref<9x1x512xf32, #tpu.memory_space<vmem>>, vector<1x1x512xf32>
    %3 = vector.shape_cast %2 : vector<1x1x512xf32> to vector<1x512xf32>
    %4 = vector.broadcast %3 : vector<1x512xf32> to vector<64x512xf32>
    %5 = arith.mulf %1, %4 : vector<64x512xf32>
    %c0_4 = arith.constant 0 : index
    %c0_5 = arith.constant 0 : index
    %6 = vector.load %arg7[%c0_4, %c0_5] : memref<576x512xf32, #tpu.memory_space<vmem>>, vector<64x512xf32>
    tpu.vector_store %arg7[%c0_4, %c0_5], %5 {strides = array<i32>} : memref<576x512xf32, #tpu.memory_space<vmem>>, vector<64x512xf32>,
    %c16_i32 = arith.constant 16 : i32
    %7 = tpu.dynamic_rotate %0 by %c16_i32 dim 1 : vector<64x512xf32>, i32 -> vector<64x512xf32>
    %c1 = arith.constant 1 : index
    %c0_6 = arith.constant 0 : index
    %c0_7 = arith.constant 0 : index
    %8 = vector.load %arg5[%c1, %c0_6, %c0_7] : memref<9x1x512xf32, #tpu.memory_space<vmem>>, vector<1x1x512xf32>
    %9 = vector.shape_cast %8 : vector<1x1x512xf32> to vector<1x512xf32>
    %10 = vector.broadcast %9 : vector<1x512xf32> to vector<64x512xf32>
    %11 = arith.mulf %7, %10 : vector<64x512xf32>
    %c64 = arith.constant 64 : index
    %c0_8 = arith.constant 0 : index
    %12 = vector.load %arg7[%c64, %c0_8] : memref<576x512xf32, #tpu.memory_space<vmem>>, vector<64x512xf32>
    tpu.vector_store %arg7[%c64, %c0_8], %11 {strides = array<i32>} : memref<576x512xf32, #tpu.memory_space<vmem>>, vector<64x512xf32>,
    %c15_i32 = arith.constant 15 : i32
    %13 = tpu.dynamic_rotate %0 by %c15_i32 dim 1 : vector<64x512xf32>, i32 -> vector<64x512xf32>
    %c2 = arith.constant 2 : index
    %c0_9 = arith.constant 0 : index
    %c0_10 = arith.constant 0 : index
    %14 = vector.load %arg5[%c2, %c0_9, %c0_10] : memref<9x1x512xf32, #tpu.memory_space<vmem>>, vector<1x1x512xf32>
    %15 = vector.shape_cast %14 : vector<1x1x512xf32> to vector<1x512xf32>
    %16 = vector.broadcast %15 : vector<1x512xf32> to vector<64x512xf32>
    %17 = arith.mulf %13, %16 : vector<64x512xf32>
    %c128 = arith.constant 128 : index
    %c0_11 = arith.constant 0 : index
    %18 = vector.load %arg7[%c128, %c0_11] : memref<576x512xf32, #tpu.memory_space<vmem>>, vector<64x512xf32>
    tpu.vector_store %arg7[%c128, %c0_11], %17 {strides = array<i32>} : memref<576x512xf32, #tpu.memory_space<vmem>>, vector<64x512xf32>,
    %c1_i32 = arith.constant 1 : i32
    %19 = tpu.dynamic_rotate %0 by %c1_i32 dim 1 : vector<64x512xf32>, i32 -> vector<64x512xf32>
    %c3 = arith.constant 3 : index
    %c0_12 = arith.constant 0 : index
    %c0_13 = arith.constant 0 : index
    %20 = vector.load %arg5[%c3, %c0_12, %c0_13] : memref<9x1x512xf32, #tpu.memory_space<vmem>>, vector<1x1x512xf32>
    %21 = vector.shape_cast %20 : vector<1x1x512xf32> to vector<1x512xf32>
    %22 = vector.broadcast %21 : vector<1x512xf32> to vector<64x512xf32>
    %23 = arith.mulf %19, %22 : vector<64x512xf32>
    %c192 = arith.constant 192 : index
    %c0_14 = arith.constant 0 : index
    %24 = vector.load %arg7[%c192, %c0_14] : memref<576x512xf32, #tpu.memory_space<vmem>>, vector<64x512xf32>
    tpu.vector_store %arg7[%c192, %c0_14], %23 {strides = array<i32>} : memref<576x512xf32, #tpu.memory_space<vmem>>, vector<64x512xf32>,
    %c256 = arith.constant 256 : index
    %c0_15 = arith.constant 0 : index
    %25 = vector.load %arg7[%c256, %c0_15] : memref<576x512xf32, #tpu.memory_space<vmem>>, vector<64x512xf32>
    tpu.vector_store %arg7[%c256, %c0_15], %0 {strides = array<i32>} : memref<576x512xf32, #tpu.memory_space<vmem>>, vector<64x512xf32>,
    %c511_i32 = arith.constant 511 : i32
    %26 = tpu.dynamic_rotate %0 by %c511_i32 dim 1 : vector<64x512xf32>, i32 -> vector<64x512xf32>
    %c5 = arith.constant 5 : index
    %c0_16 = arith.constant 0 : index
    %c0_17 = arith.constant 0 : index
    %27 = vector.load %arg5[%c5, %c0_16, %c0_17] : memref<9x1x512xf32, #tpu.memory_space<vmem>>, vector<1x1x512xf32>
    %28 = vector.shape_cast %27 : vector<1x1x512xf32> to vector<1x512xf32>
    %29 = vector.broadcast %28 : vector<1x512xf32> to vector<64x512xf32>
    %30 = arith.mulf %26, %29 : vector<64x512xf32>
    %c320 = arith.constant 320 : index
    %c0_18 = arith.constant 0 : index
    %31 = vector.load %arg7[%c320, %c0_18] : memref<576x512xf32, #tpu.memory_space<vmem>>, vector<64x512xf32>
    tpu.vector_store %arg7[%c320, %c0_18], %30 {strides = array<i32>} : memref<576x512xf32, #tpu.memory_space<vmem>>, vector<64x512xf32>,
    %c497_i32 = arith.constant 497 : i32
    %32 = tpu.dynamic_rotate %0 by %c497_i32 dim 1 : vector<64x512xf32>, i32 -> vector<64x512xf32>
    %c6 = arith.constant 6 : index
    %c0_19 = arith.constant 0 : index
    %c0_20 = arith.constant 0 : index
    %33 = vector.load %arg5[%c6, %c0_19, %c0_20] : memref<9x1x512xf32, #tpu.memory_space<vmem>>, vector<1x1x512xf32>
    %34 = vector.shape_cast %33 : vector<1x1x512xf32> to vector<1x512xf32>
    %35 = vector.broadcast %34 : vector<1x512xf32> to vector<64x512xf32>
    %36 = arith.mulf %32, %35 : vector<64x512xf32>
    %c384 = arith.constant 384 : index
    %c0_21 = arith.constant 0 : index
    %37 = vector.load %arg7[%c384, %c0_21] : memref<576x512xf32, #tpu.memory_space<vmem>>, vector<64x512xf32>
    tpu.vector_store %arg7[%c384, %c0_21], %36 {strides = array<i32>} : memref<576x512xf32, #tpu.memory_space<vmem>>, vector<64x512xf32>,
    %c496_i32 = arith.constant 496 : i32
    %38 = tpu.dynamic_rotate %0 by %c496_i32 dim 1 : vector<64x512xf32>, i32 -> vector<64x512xf32>
    %c7 = arith.constant 7 : index
    %c0_22 = arith.constant 0 : index
    %c0_23 = arith.constant 0 : index
    %39 = vector.load %arg5[%c7, %c0_22, %c0_23] : memref<9x1x512xf32, #tpu.memory_space<vmem>>, vector<1x1x512xf32>
    %40 = vector.shape_cast %39 : vector<1x1x512xf32> to vector<1x512xf32>
    %41 = vector.broadcast %40 : vector<1x512xf32> to vector<64x512xf32>
    %42 = arith.mulf %38, %41 : vector<64x512xf32>
    %c448 = arith.constant 448 : index
    %c0_24 = arith.constant 0 : index
    %43 = vector.load %arg7[%c448, %c0_24] : memref<576x512xf32, #tpu.memory_space<vmem>>, vector<64x512xf32>
    tpu.vector_store %arg7[%c448, %c0_24], %42 {strides = array<i32>} : memref<576x512xf32, #tpu.memory_space<vmem>>, vector<64x512xf32>,
    %c495_i32 = arith.constant 495 : i32
    %44 = tpu.dynamic_rotate %0 by %c495_i32 dim 1 : vector<64x512xf32>, i32 -> vector<64x512xf32>
    %c8 = arith.constant 8 : index
    %c0_25 = arith.constant 0 : index
    %c0_26 = arith.constant 0 : index
    %45 = vector.load %arg5[%c8, %c0_25, %c0_26] : memref<9x1x512xf32, #tpu.memory_space<vmem>>, vector<1x1x512xf32>
    %46 = vector.shape_cast %45 : vector<1x1x512xf32> to vector<1x512xf32>
    %47 = vector.broadcast %46 : vector<1x512xf32> to vector<64x512xf32>
    %48 = arith.mulf %44, %47 : vector<64x512xf32>
    %c512 = arith.constant 512 : index
    %c0_27 = arith.constant 0 : index
    %49 = vector.load %arg7[%c512, %c0_27] : memref<576x512xf32, #tpu.memory_space<vmem>>, vector<64x512xf32>
    tpu.vector_store %arg7[%c512, %c0_27], %48 {strides = array<i32>} : memref<576x512xf32, #tpu.memory_space<vmem>>, vector<64x512xf32>,
    %c0_28 = arith.constant 0 : index
    %c0_29 = arith.constant 0 : index
    %50 = vector.load %arg1[%c0_28, %c0_29] : memref<32x576xf32, #tpu.memory_space<vmem>>, vector<32x576xf32>
    %c0_30 = arith.constant 0 : index
    %c0_31 = arith.constant 0 : index
    %51 = vector.load %arg7[%c0_30, %c0_31] : memref<576x512xf32, #tpu.memory_space<vmem>>, vector<576x512xf32>
    %cst = arith.constant dense<0.000000e+00> : vector<32x512xf32>
    %52 = tpu.matmul %50, %51, %cst {dimension_numbers = #tpu.dot_dimension_numbers<[1], [0], [0], [1], [0, 0, 1, 1], [], []>} : vector<32x576xf32>, vector<576x512xf32>, vector<32x512xf32> -> vector<32x512xf32>
    %c0_32 = arith.constant 0 : index
    %c0_33 = arith.constant 0 : index
    %53 = vector.load %arg2[%c0_32, %c0_33] : memref<32x1xf32, #tpu.memory_space<vmem>>, vector<32x1xf32>
    %54 = vector.broadcast %53 : vector<32x1xf32> to vector<32x512xf32>
    %55 = arith.addf %52, %54 : vector<32x512xf32>
    %cst_34 = arith.constant 0.000000e+00 : f32
    %56 = vector.broadcast %cst_34 : f32 to vector<32x512xf32>
    %57 = arith.maximumf %55, %56 : vector<32x512xf32>
    %c17_i32_35 = arith.constant 17 : i32
    %58 = tpu.dynamic_rotate %57 by %c17_i32_35 dim 1 : vector<32x512xf32>, i32 -> vector<32x512xf32>
    %c0_36 = arith.constant 0 : index
    %c0_37 = arith.constant 0 : index
    %c0_38 = arith.constant 0 : index
    %59 = vector.load %arg5[%c0_36, %c0_37, %c0_38] : memref<9x1x512xf32, #tpu.memory_space<vmem>>, vector<1x1x512xf32>
    %60 = vector.shape_cast %59 : vector<1x1x512xf32> to vector<1x512xf32>
    %61 = vector.broadcast %60 : vector<1x512xf32> to vector<32x512xf32>
    %62 = arith.mulf %58, %61 : vector<32x512xf32>
    %c0_39 = arith.constant 0 : index
    %c0_40 = arith.constant 0 : index
    %63 = vector.load %arg8[%c0_39, %c0_40] : memref<288x512xf32, #tpu.memory_space<vmem>>, vector<32x512xf32>
    tpu.vector_store %arg8[%c0_39, %c0_40], %62 {strides = array<i32>} : memref<288x512xf32, #tpu.memory_space<vmem>>, vector<32x512xf32>,
    %c16_i32_41 = arith.constant 16 : i32
    %64 = tpu.dynamic_rotate %57 by %c16_i32_41 dim 1 : vector<32x512xf32>, i32 -> vector<32x512xf32>
    %c1_42 = arith.constant 1 : index
    %c0_43 = arith.constant 0 : index
    %c0_44 = arith.constant 0 : index
    %65 = vector.load %arg5[%c1_42, %c0_43, %c0_44] : memref<9x1x512xf32, #tpu.memory_space<vmem>>, vector<1x1x512xf32>
    %66 = vector.shape_cast %65 : vector<1x1x512xf32> to vector<1x512xf32>
    %67 = vector.broadcast %66 : vector<1x512xf32> to vector<32x512xf32>
    %68 = arith.mulf %64, %67 : vector<32x512xf32>
    %c32 = arith.constant 32 : index
    %c0_45 = arith.constant 0 : index
    %69 = vector.load %arg8[%c32, %c0_45] : memref<288x512xf32, #tpu.memory_space<vmem>>, vector<32x512xf32>
    tpu.vector_store %arg8[%c32, %c0_45], %68 {strides = array<i32>} : memref<288x512xf32, #tpu.memory_space<vmem>>, vector<32x512xf32>,
    %c15_i32_46 = arith.constant 15 : i32
    %70 = tpu.dynamic_rotate %57 by %c15_i32_46 dim 1 : vector<32x512xf32>, i32 -> vector<32x512xf32>
    %c2_47 = arith.constant 2 : index
    %c0_48 = arith.constant 0 : index
    %c0_49 = arith.constant 0 : index
    %71 = vector.load %arg5[%c2_47, %c0_48, %c0_49] : memref<9x1x512xf32, #tpu.memory_space<vmem>>, vector<1x1x512xf32>
    %72 = vector.shape_cast %71 : vector<1x1x512xf32> to vector<1x512xf32>
    %73 = vector.broadcast %72 : vector<1x512xf32> to vector<32x512xf32>
    %74 = arith.mulf %70, %73 : vector<32x512xf32>
    %c64_50 = arith.constant 64 : index
    %c0_51 = arith.constant 0 : index
    %75 = vector.load %arg8[%c64_50, %c0_51] : memref<288x512xf32, #tpu.memory_space<vmem>>, vector<32x512xf32>
    tpu.vector_store %arg8[%c64_50, %c0_51], %74 {strides = array<i32>} : memref<288x512xf32, #tpu.memory_space<vmem>>, vector<32x512xf32>,
    %c1_i32_52 = arith.constant 1 : i32
    %76 = tpu.dynamic_rotate %57 by %c1_i32_52 dim 1 : vector<32x512xf32>, i32 -> vector<32x512xf32>
    %c3_53 = arith.constant 3 : index
    %c0_54 = arith.constant 0 : index
    %c0_55 = arith.constant 0 : index
    %77 = vector.load %arg5[%c3_53, %c0_54, %c0_55] : memref<9x1x512xf32, #tpu.memory_space<vmem>>, vector<1x1x512xf32>
    %78 = vector.shape_cast %77 : vector<1x1x512xf32> to vector<1x512xf32>
    %79 = vector.broadcast %78 : vector<1x512xf32> to vector<32x512xf32>
    %80 = arith.mulf %76, %79 : vector<32x512xf32>
    %c96 = arith.constant 96 : index
    %c0_56 = arith.constant 0 : index
    %81 = vector.load %arg8[%c96, %c0_56] : memref<288x512xf32, #tpu.memory_space<vmem>>, vector<32x512xf32>
    tpu.vector_store %arg8[%c96, %c0_56], %80 {strides = array<i32>} : memref<288x512xf32, #tpu.memory_space<vmem>>, vector<32x512xf32>,
    %c128_57 = arith.constant 128 : index
    %c0_58 = arith.constant 0 : index
    %82 = vector.load %arg8[%c128_57, %c0_58] : memref<288x512xf32, #tpu.memory_space<vmem>>, vector<32x512xf32>
    tpu.vector_store %arg8[%c128_57, %c0_58], %57 {strides = array<i32>} : memref<288x512xf32, #tpu.memory_space<vmem>>, vector<32x512xf32>,
    %c511_i32_59 = arith.constant 511 : i32
    %83 = tpu.dynamic_rotate %57 by %c511_i32_59 dim 1 : vector<32x512xf32>, i32 -> vector<32x512xf32>
    %c5_60 = arith.constant 5 : index
    %c0_61 = arith.constant 0 : index
    %c0_62 = arith.constant 0 : index
    %84 = vector.load %arg5[%c5_60, %c0_61, %c0_62] : memref<9x1x512xf32, #tpu.memory_space<vmem>>, vector<1x1x512xf32>
    %85 = vector.shape_cast %84 : vector<1x1x512xf32> to vector<1x512xf32>
    %86 = vector.broadcast %85 : vector<1x512xf32> to vector<32x512xf32>
    %87 = arith.mulf %83, %86 : vector<32x512xf32>
    %c160 = arith.constant 160 : index
    %c0_63 = arith.constant 0 : index
    %88 = vector.load %arg8[%c160, %c0_63] : memref<288x512xf32, #tpu.memory_space<vmem>>, vector<32x512xf32>
    tpu.vector_store %arg8[%c160, %c0_63], %87 {strides = array<i32>} : memref<288x512xf32, #tpu.memory_space<vmem>>, vector<32x512xf32>,
    %c497_i32_64 = arith.constant 497 : i32
    %89 = tpu.dynamic_rotate %57 by %c497_i32_64 dim 1 : vector<32x512xf32>, i32 -> vector<32x512xf32>
    %c6_65 = arith.constant 6 : index
    %c0_66 = arith.constant 0 : index
    %c0_67 = arith.constant 0 : index
    %90 = vector.load %arg5[%c6_65, %c0_66, %c0_67] : memref<9x1x512xf32, #tpu.memory_space<vmem>>, vector<1x1x512xf32>
    %91 = vector.shape_cast %90 : vector<1x1x512xf32> to vector<1x512xf32>
    %92 = vector.broadcast %91 : vector<1x512xf32> to vector<32x512xf32>
    %93 = arith.mulf %89, %92 : vector<32x512xf32>
    %c192_68 = arith.constant 192 : index
    %c0_69 = arith.constant 0 : index
    %94 = vector.load %arg8[%c192_68, %c0_69] : memref<288x512xf32, #tpu.memory_space<vmem>>, vector<32x512xf32>
    tpu.vector_store %arg8[%c192_68, %c0_69], %93 {strides = array<i32>} : memref<288x512xf32, #tpu.memory_space<vmem>>, vector<32x512xf32>,
    %c496_i32_70 = arith.constant 496 : i32
    %95 = tpu.dynamic_rotate %57 by %c496_i32_70 dim 1 : vector<32x512xf32>, i32 -> vector<32x512xf32>
    %c7_71 = arith.constant 7 : index
    %c0_72 = arith.constant 0 : index
    %c0_73 = arith.constant 0 : index
    %96 = vector.load %arg5[%c7_71, %c0_72, %c0_73] : memref<9x1x512xf32, #tpu.memory_space<vmem>>, vector<1x1x512xf32>
    %97 = vector.shape_cast %96 : vector<1x1x512xf32> to vector<1x512xf32>
    %98 = vector.broadcast %97 : vector<1x512xf32> to vector<32x512xf32>
    %99 = arith.mulf %95, %98 : vector<32x512xf32>
    %c224 = arith.constant 224 : index
    %c0_74 = arith.constant 0 : index
    %100 = vector.load %arg8[%c224, %c0_74] : memref<288x512xf32, #tpu.memory_space<vmem>>, vector<32x512xf32>
    tpu.vector_store %arg8[%c224, %c0_74], %99 {strides = array<i32>} : memref<288x512xf32, #tpu.memory_space<vmem>>, vector<32x512xf32>,
    %c495_i32_75 = arith.constant 495 : i32
    %101 = tpu.dynamic_rotate %57 by %c495_i32_75 dim 1 : vector<32x512xf32>, i32 -> vector<32x512xf32>
    %c8_76 = arith.constant 8 : index
    %c0_77 = arith.constant 0 : index
    %c0_78 = arith.constant 0 : index
    %102 = vector.load %arg5[%c8_76, %c0_77, %c0_78] : memref<9x1x512xf32, #tpu.memory_space<vmem>>, vector<1x1x512xf32>
    %103 = vector.shape_cast %102 : vector<1x1x512xf32> to vector<1x512xf32>
    %104 = vector.broadcast %103 : vector<1x512xf32> to vector<32x512xf32>
    %105 = arith.mulf %101, %104 : vector<32x512xf32>
    %c256_79 = arith.constant 256 : index
    %c0_80 = arith.constant 0 : index
    %106 = vector.load %arg8[%c256_79, %c0_80] : memref<288x512xf32, #tpu.memory_space<vmem>>, vector<32x512xf32>
    tpu.vector_store %arg8[%c256_79, %c0_80], %105 {strides = array<i32>} : memref<288x512xf32, #tpu.memory_space<vmem>>, vector<32x512xf32>,
    %c0_81 = arith.constant 0 : index
    %c0_82 = arith.constant 0 : index
    %107 = vector.load %arg3[%c0_81, %c0_82] : memref<8x288xf32, #tpu.memory_space<vmem>>, vector<8x288xf32>
    %c0_83 = arith.constant 0 : index
    %c0_84 = arith.constant 0 : index
    %108 = vector.load %arg8[%c0_83, %c0_84] : memref<288x512xf32, #tpu.memory_space<vmem>>, vector<288x512xf32>
    %cst_85 = arith.constant dense<0.000000e+00> : vector<8x512xf32>
    %109 = tpu.matmul %107, %108, %cst_85 {dimension_numbers = #tpu.dot_dimension_numbers<[1], [0], [0], [1], [0, 0, 1, 1], [], []>} : vector<8x288xf32>, vector<288x512xf32>, vector<8x512xf32> -> vector<8x512xf32>
    %c0_86 = arith.constant 0 : index
    %c0_87 = arith.constant 0 : index
    %110 = vector.load %arg4[%c0_86, %c0_87] : memref<8x1xf32, #tpu.memory_space<vmem>>, vector<8x1xf32>
    %111 = vector.broadcast %110 : vector<8x1xf32> to vector<8x512xf32>
    %112 = arith.addf %109, %111 : vector<8x512xf32>
    %c0_88 = arith.constant 0 : index
    %c0_89 = arith.constant 0 : index
    %113 = vector.load %arg6[%c0_88, %c0_89] : memref<8x512xf32, #tpu.memory_space<vmem>>, vector<8x512xf32>
    tpu.vector_store %arg6[%c0_88, %c0_89], %112 {strides = array<i32>} : memref<8x512xf32, #tpu.memory_space<vmem>>, vector<8x512xf32>,
    return
  }
}

</mosaic_0001>

<bundles_post_ra>
// kernel: cover_reconstructor_forward.1
= control target key start
LH: loop header
LB: loop body
LE: loop exit
PB: predicated region body
PF: predicated region fallthrough
CT: control target
= control target key end

     0   :  { %s3837_s25 = smov 17   ;;  %s3838_s15 = smov 16   ;;  %v119_v46 = vlaneseq  ;;  %vm1892_vm8 = vcmask 523264   ;;  %vm3440_vm9 = vcmask 261120   ;;  %s7437_s0 = inlined_call_operand.vmem [shape: f32[64,512], index: 0, kind: input, shape index: {}]   ;;  %s7438_s5 = inlined_call_operand.vmem [shape: f32[9,1,512], index: 5, kind: input, shape index: {}]   ;;  %s7439_s1 = inlined_call_operand.vmem [shape: f32[32,576], index: 1, kind: input, shape index: {}]   ;;  %s7440_s2 = inlined_call_operand.vmem [shape: f32[32,1], index: 2, kind: input, shape index: {}]   ;;  %s7441_s3 = inlined_call_operand.vmem [shape: f32[8,288], index: 3, kind: input, shape index: {}]   ;;  %s7442_s4 = inlined_call_operand.vmem [shape: f32[8,1], index: 4, kind: input, shape index: {}]   ;;  %s7443_s6 = inlined_call_operand.vmem [shape: f32[8,512], index: 6, kind: output, shape index: {}]  }
   0x1   :  { %v3885_v0 = vld [vmem:[%s7437_s0 + $0x40] sm:$0xff]  ;;  %v3941_v8 = vld [vmem:[%s7437_s0 + $0x28] sm:$0xff]  ;;  %v3997_v16 = vld [vmem:[%s7437_s0 + $0x30] sm:$0xff]  ;;  %s3839_s18 = smov 127   ;;  %s3840_s22 = smov 1  }
   0x2   :  { %v3890_v1 = vld [vmem:[%s7437_s0] sm:$0xff]  ;;  %59 = vrot.lane.b32.xlu1 %v3885_v0, %s3837_s25  ;;  %v3946_v9 = vld [vmem:[%s7437_s0 + $0x8] sm:$0xff]  ;;  %v4002_v17 = vld [vmem:[%s7437_s0 + $0x10] sm:$0xff]  ;;  %v4222_v49 = vshrl.u32 %v119_v46, 7  ;;  %v4235_v53 = vand.u32 127, %v119_v46  ;;  %s3841_s23 = smov 112  }
   0x3   :  { %55 = vrot.lane.b32.xlu0 %v3890_v1, %s3837_s25  ;;  %v3899_v2 = vld [vmem:[%s7437_s0 + $0x60] sm:$0xff]  ;;  %v3955_v10 = vld [vmem:[%s7437_s0 + $0x68] sm:$0xff]  ;;  %v4011_v18 = vld [vmem:[%s7437_s0 + $0x70] sm:$0xff]  ;;  %s3842_s29 = smov 15   ;;  %s3843_s30 = smov 113  }
   0x4   :  { %v3904_v3 = vld [vmem:[%s7437_s0 + $0x20] sm:$0xff]  ;;  %v3960_v11 = vld [vmem:[%s7437_s0 + $0x48] sm:$0xff]  ;;  %v4016_v19 = vld [vmem:[%s7437_s0 + $0x50] sm:$0xff]  ;;  %7552 = vst [vmem:[#allocation6_spill] sm:$0xff] %v4222_v49  ;;  %v4242_v56 = vsub.s32 1, %v4222_v49  ;;  %vm304_vm0 = vcmp.lt.s32.totalorder %v4235_v53, 16 }
   0x5   :  { %v3913_v4 = vld [vmem:[%s7437_s0 + $0xa0] sm:$0xff]  ;;  %v3969_v12 = vld [vmem:[%s7437_s0 + $0xa8] sm:$0xff]  ;;  %v4029_v20 = vld [vmem:[%s7437_s0 + $0xf8] sm:$0xff]  ;;  %v4253_v58 = vsub.s32 0, %v4222_v49  ;;  %vm888_vm1 = vcmp.lt.s32.totalorder %v4235_v53, 127  ;;  %vm121_vm2 = vcmp.lt.s32.totalorder %v4235_v53, 17 }
   0x6   :  { %61 = vrot.lane.b32.xlu1 %v3899_v2, %s3837_s25  ;;  %v3918_v5 = vld [vmem:[%s7437_s0 + $0x80] sm:$0xff]  ;;  %v3974_v13 = vld [vmem:[%s7437_s0 + $0x88] sm:$0xff]  ;;  %v4042_v21 = vld [vmem:[%s7437_s0 + $0xd8] sm:$0xff]  ;;  %7557 = vst [vmem:[#allocation11_spill] sm:$0xff] %v4242_v56  ;;  %vm672_vm3 = vcmp.lt.s32.totalorder %v4235_v53, 1  ;;  %vm1256_vm4 = vcmp.lt.s32.totalorder %v4235_v53, 112 }
   0x7   :  { %57 = vrot.lane.b32.xlu0 %v3904_v3, %s3837_s25  ;;  %v3927_v6 = vld [vmem:[%s7437_s0 + $0xe0] sm:$0xff]  ;;  %v3983_v14 = vld [vmem:[%s7437_s0 + $0xe8] sm:$0xff]  ;;  %v4047_v22 = vld [vmem:[%s7437_s0 + $0xf0] sm:$0xff]  ;;  %7558 = vst [vmem:[#allocation12_spill] sm:$0xff] %v4253_v58  ;;  %s3844_s14 = smov 111   ;;  %vm488_vm5 = vcmp.lt.s32.totalorder %v4235_v53, 15 }
   0x8   :  { %v3932_v7 = vld [vmem:[%s7437_s0 + $0xc0] sm:$0xff]  ;;  %v3988_v15 = vld [vmem:[%s7437_s0 + $0xc8] sm:$0xff]  ;;  %v4064_v23 = vld [vmem:[%s7437_s0 + $0xb8] sm:$0xff]  ;;  %vm1072_vm6 = vcmp.lt.s32.totalorder %v4235_v53, 113  ;;  %vm1440_vm7 = vcmp.lt.s32.totalorder %v4235_v53, 111 }
   0x9   :  { %v4069_v24 = vld [vmem:[%s7437_s0 + $0xd0] sm:$0xff]  ;;  %v4086_v25 = vld [vmem:[%s7437_s0 + $0x98] sm:$0xff]  ;;  %v3736_v52 = vld [vmem:[%s7438_s5 + $0x4] sm:$0xf] }
   0xa   :  { %65 = vrot.lane.b32.xlu1 %v3913_v4, %s3837_s25  ;;  %v4091_v26 = vld [vmem:[%s7437_s0 + $0xb0] sm:$0xff]  ;;  %v4108_v27 = vld [vmem:[%s7437_s0 + $0x78] sm:$0xff]  ;;  %v4250_v57 = vrot.slane %v3736_v52, %v4242_v56  ;;  %v4266_v63 = vrot.slane %v3736_v52, %v4253_v58 }
   0xb   :  { %63 = vrot.lane.b32.xlu0 %v3918_v5, %s3837_s25  ;;  %v4113_v28 = vld [vmem:[%s7437_s0 + $0x90] sm:$0xff]  ;;  %v4130_v29 = vld [vmem:[%s7437_s0 + $0x58] sm:$0xff] }
   0xc   :  { %v4147_v30 = vld [vmem:[%s7437_s0 + $0x38] sm:$0xff]  ;;  %v3739_v52 = vld [vmem:[%s7438_s5 + $0x14] sm:$0xf] }
   0xd   :  { %v4172_v35 = vld [vmem:[%s7437_s0 + $0x18] sm:$0xff]  ;;  %v4312_v49 = vrot.slane %v3739_v52, %v4253_v58  ;;  %v3836_v53 = vld [vmem:[%s7441_s3 + $0x10] sm:$0xff] }
   0xe   :  { %69 = vrot.lane.b32.xlu1 %v3927_v6, %s3837_s25 }
   0xf   :  { %67 = vrot.lane.b32.xlu0 %v3932_v7, %s3837_s25 }
  0x12   :  { %73 = vrot.lane.b32.xlu1 %v3941_v8, %s3837_s25 }
  0x13   :  { %71 = vrot.lane.b32.xlu0 %v3946_v9, %s3837_s25 }
  0x16   :  { %77 = vrot.lane.b32.xlu1 %v3955_v10, %s3837_s25 }
  0x17   :  { %75 = vrot.lane.b32.xlu0 %v3960_v11, %s3837_s25 }
  0x1a   :  { %81 = vrot.lane.b32.xlu1 %v3969_v12, %s3837_s25 }
  0x1b   :  { %79 = vrot.lane.b32.xlu0 %v3974_v13, %s3837_s25 }
  0x1e   :  { %85 = vrot.lane.b32.xlu1 %v3983_v14, %s3837_s25 }
  0x1f   :  { %83 = vrot.lane.b32.xlu0 %v3988_v15, %s3837_s25 }
  0x22   :  { %89 = vrot.lane.b32.xlu1 %v3997_v16, %s3837_s25 }
  0x23   :  { %87 = vrot.lane.b32.xlu0 %v4002_v17, %s3837_s25 }
  0x26   :  { %93 = vrot.lane.b32.xlu1 %v4011_v18, %s3837_s25 }
  0x27   :  { %91 = vrot.lane.b32.xlu0 %v4016_v19, %s3837_s25 }
  0x2a   :  { %270 = vrot.lane.b32.xlu1 %v3983_v14, %s3838_s15 }
  0x2b   :  { %254 = vrot.lane.b32.xlu0 %v3927_v6, %s3838_s15 }
  0x2e   :  { %252 = vrot.lane.b32.xlu1 %v3932_v7, %s3838_s15 }
  0x2f   :  { %302 = vrot.lane.b32.xlu0 %v4029_v20, %s3838_s15 }
  0x32   :  { %854 = vrot.lane.b32.xlu1 %v3983_v14, %s3839_s18 }
  0x33   :  { %268 = vrot.lane.b32.xlu0 %v3988_v15, %s3838_s15 }
  0x36   :  { %300 = vrot.lane.b32.xlu1 %v4042_v21, %s3838_s15 }
  0x37   :  { %870 = vrot.lane.b32.xlu0 %v4047_v22, %s3839_s18 }
  0x3a   :  { %250 = vrot.lane.b32.xlu1 %v3913_v4, %s3838_s15 }
  0x3b   :  { %838 = vrot.lane.b32.xlu0 %v3927_v6, %s3839_s18 }
  0x3e   :  { %852 = vrot.lane.b32.xlu1 %v3988_v15, %s3839_s18 }
  0x3f   :  { %266 = vrot.lane.b32.xlu0 %v3969_v12, %s3838_s15 }
  0x42   :  { %298 = vrot.lane.b32.xlu1 %v4064_v23, %s3838_s15 }
  0x43   :  { %868 = vrot.lane.b32.xlu0 %v4069_v24, %s3839_s18 }
  0x46   :  { %248 = vrot.lane.b32.xlu1 %v3918_v5, %s3838_s15 }
  0x47   :  { %836 = vrot.lane.b32.xlu0 %v3932_v7, %s3839_s18 }
  0x4a   :  { %850 = vrot.lane.b32.xlu1 %v3969_v12, %s3839_s18 }
  0x4b   :  { %264 = vrot.lane.b32.xlu0 %v3974_v13, %s3838_s15 }
  0x4e   :  { %296 = vrot.lane.b32.xlu1 %v4086_v25, %s3838_s15 }
  0x4f   :  { %866 = vrot.lane.b32.xlu0 %v4091_v26, %s3839_s18 }
  0x52   :  { %246 = vrot.lane.b32.xlu1 %v3899_v2, %s3838_s15 }
  0x53   :  { %834 = vrot.lane.b32.xlu0 %v3913_v4, %s3839_s18 }
  0x56   :  { %848 = vrot.lane.b32.xlu1 %v3974_v13, %s3839_s18 }
  0x57   :  { %262 = vrot.lane.b32.xlu0 %v3955_v10, %s3838_s15 }
  0x5a   :  { %294 = vrot.lane.b32.xlu1 %v4108_v27, %s3838_s15 }
  0x5b   :  { %864 = vrot.lane.b32.xlu0 %v4113_v28, %s3839_s18 }
  0x5e   :  { %244 = vrot.lane.b32.xlu1 %v3885_v0, %s3838_s15 }
  0x5f   :  { %832 = vrot.lane.b32.xlu0 %v3918_v5, %s3839_s18 }
  0x62   :  { %846 = vrot.lane.b32.xlu1 %v3955_v10, %s3839_s18 }
  0x63   :  { %260 = vrot.lane.b32.xlu0 %v3960_v11, %s3838_s15 }
  0x66   :  { %292 = vrot.lane.b32.xlu1 %v4130_v29, %s3838_s15 }
  0x67   :  { %862 = vrot.lane.b32.xlu0 %v4011_v18, %s3839_s18 }
  0x6a   :  { %242 = vrot.lane.b32.xlu1 %v3904_v3, %s3838_s15 }
  0x6b   :  { %830 = vrot.lane.b32.xlu0 %v3899_v2, %s3839_s18 }
  0x6e   :  { %844 = vrot.lane.b32.xlu1 %v3960_v11, %s3839_s18 }
  0x6f   :  { %258 = vrot.lane.b32.xlu0 %v3941_v8, %s3838_s15 }
  0x72   :  { %290 = vrot.lane.b32.xlu1 %v4147_v30, %s3838_s15 }
  0x73   :  { %860 = vrot.lane.b32.xlu0 %v4016_v19, %s3839_s18 }
  0x74   :  { %v4153_v31 = vpop.permute.xlu1 %59 }
  0x75   :  { %v4155_v32 = vpop.permute.xlu0 %55 }
  0x76   :  { %7550 = vst [vmem:[#allocation4_spill] sm:$0xff] %v4155_v32  ;;  %240 = vrot.lane.b32.xlu1 %v3890_v1, %s3838_s15 }
  0x77   :  { %828 = vrot.lane.b32.xlu0 %v3885_v0, %s3839_s18 }
  0x78   :  { %v4161_v33 = vpop.permute.xlu1 %61 }
  0x79   :  { %v4163_v34 = vpop.permute.xlu0 %57 }
  0x7a   :  { %842 = vrot.lane.b32.xlu1 %v3941_v8, %s3839_s18 }
  0x7b   :  { %256 = vrot.lane.b32.xlu0 %v3946_v9, %s3838_s15 }
  0x7c   :  { %v4174_v36 = vpop.permute.xlu1 %65 }
  0x7d   :  { %v4176_v37 = vpop.permute.xlu0 %63 }
  0x7e   :  { %288 = vrot.lane.b32.xlu1 %v4172_v35, %s3838_s15 }
  0x7f   :  { %858 = vrot.lane.b32.xlu0 %v3997_v16, %s3839_s18 }
  0x80   :  { %v4182_v38 = vpop.permute.xlu1 %69 }
  0x81   :  { %v4184_v39 = vpop.permute.xlu0 %67 }
  0x82   :  { %840 = vrot.lane.b32.xlu1 %v3946_v9, %s3839_s18 }
  0x83   :  { %826 = vrot.lane.b32.xlu0 %v3904_v3, %s3839_s18 }
  0x84   :  { %v4190_v40 = vpop.permute.xlu1 %73 }
  0x85   :  { %v4192_v41 = vpop.permute.xlu0 %71 }
  0x86   :  { %117 = vrot.lane.b32.xlu1 %v4029_v20, %s3837_s25 }
  0x87   :  { %856 = vrot.lane.b32.xlu0 %v4002_v17, %s3839_s18 }
  0x88   :  { %v4198_v42 = vpop.permute.xlu1 %77 }
  0x89   :  { %v4200_v43 = vpop.permute.xlu0 %75 }
  0x8a   :  { %115 = vrot.lane.b32.xlu1 %v4042_v21, %s3837_s25 }
  0x8b   :  { %824 = vrot.lane.b32.xlu0 %v3890_v1, %s3839_s18 }
  0x8c   :  { %v4206_v44 = vpop.permute.xlu1 %81 }
  0x8d   :  { %v4208_v45 = vpop.permute.xlu0 %79 }
  0x8e   :  { %111 = vrot.lane.b32.xlu1 %v4086_v25, %s3837_s25 }
  0x8f   :  { %113 = vrot.lane.b32.xlu0 %v4064_v23, %s3837_s25 }
  0x90   :  { %v4214_v47 = vpop.permute.xlu1 %85 }
  0x91   :  { %7551 = vst [vmem:[#allocation5_spill] sm:$0xff] %v4214_v47  ;;  %v4216_v48 = vpop.permute.xlu0 %83 }
  0x92   :  { %107 = vrot.lane.b32.xlu1 %v4130_v29, %s3837_s25 }
  0x93   :  { %109 = vrot.lane.b32.xlu0 %v4108_v27, %s3837_s25 }
  0x94   :  { %v4224_v50 = vpop.permute.xlu1 %89 }
  0x95   :  { %7553 = vst [vmem:[#allocation7_spill] sm:$0xff] %v4224_v50  ;;  %v4226_v51 = vpop.permute.xlu0 %87  ;;  %v4293_v50 = vrot.slane %v3739_v52, %v4242_v56 }
  0x96   :  { %7554 = vst [vmem:[#allocation8_spill] sm:$0xff] %v4226_v51  ;;  %103 = vrot.lane.b32.xlu1 %v4172_v35, %s3837_s25 }
  0x97   :  { %105 = vrot.lane.b32.xlu0 %v4147_v30, %s3837_s25 }
  0x98   :  { %v4237_v54 = vpop.permute.xlu1 %93 }
  0x99   :  { %7555 = vst [vmem:[#allocation9_spill] sm:$0xff] %v4237_v54  ;;  %v4239_v55 = vpop.permute.xlu0 %91 }
  0x9a   :  { %7556 = vst [vmem:[#allocation10_spill] sm:$0xff] %v4239_v55  ;;  %638 = vrot.lane.b32.xlu1 %v3983_v14, %s3840_s22 }
  0x9b   :  { %622 = vrot.lane.b32.xlu0 %v3927_v6, %s3840_s22 }
  0x9c   :  { %v4255_v59 = vpop.permute.xlu1 %270 }
  0x9d   :  { %7559 = vst [vmem:[#allocation13_spill] sm:$0xff] %v4255_v59  ;;  %v255_v60 = vpop.permute.xlu0 %254 }
  0x9e   :  { %v328_v61 = vsel %vm304_vm0, %v255_v60, %v4255_v59  ;;  %620 = vrot.lane.b32.xlu1 %v3932_v7, %s3840_s22 }
  0x9f   :  { %670 = vrot.lane.b32.xlu0 %v4029_v20, %s3840_s22  ;;  %v389_v62 = vmul.f32 %v4250_v57, %v328_v61 }
  0xa0   :  { %v253_v46 = vpop.permute.xlu1 %252 }
  0xa1   :  { %1905 = vmatprep.subr.mxu0 %v389_v62  ;;  %v4268_v51 = vpop.permute.xlu0 %302 }
  0xa2   :  { %7560 = vst [vmem:[#allocation14_spill] sm:$0xff] %v4268_v51  ;;  %v336_v55 = vsel %vm304_vm0, %v4268_v51, %v255_v60  ;;  %1222 = vrot.lane.b32.xlu1 %v3983_v14, %s3841_s23 }
  0xa3   :  { %636 = vrot.lane.b32.xlu0 %v3988_v15, %s3840_s22  ;;  %v388_v61 = vmul.f32 %v4266_v63, %v336_v55 }
  0xa4   :  { %v855_v62 = vpop.permute.xlu1 %854 }
  0xa5   :  { %1906 = vmatpush1.msra.mxu0 %v388_v61  ;;  %v4281_v54 = vpop.permute.xlu0 %268 }
  0xa6   :  { %7561 = vst [vmem:[#allocation15_spill] sm:$0xff] %v4281_v54  ;;  %v327_v60 = vsel %vm304_vm0, %v253_v46, %v4281_v54  ;;  %668 = vrot.lane.b32.xlu1 %v4042_v21, %s3840_s22 }
  0xa7   :  { %1238 = vrot.lane.b32.xlu0 %v4047_v22, %s3841_s23  ;;  %v385_v55 = vmul.f32 %v4250_v57, %v327_v60 }
  0xa8   :  { %v4295_v61 = vpop.permute.xlu1 %300 }
  0xa9   :  { %7562 = vst [vmem:[#allocation16_spill] sm:$0xff] %v4295_v61  ;;  %1907 = vmatprep.subr.mxu0 %v385_v55  ;;  %v4297_v59 = vpop.permute.xlu0 %870  ;;  %v335_v54 = vsel %vm304_vm0, %v4295_v61, %v253_v46 }
  0xaa   :  { %7563 = vst [vmem:[#allocation17_spill] sm:$0xff] %v4297_v59  ;;  %v904_v51 = vsel %vm888_vm1, %v855_v62, %v4297_v59  ;;  %618 = vrot.lane.b32.xlu1 %v3913_v4, %s3840_s22  ;;  %v384_v60 = vmul.f32 %v4266_v63, %v335_v54 }
  0xab   :  { %1206 = vrot.lane.b32.xlu0 %v3927_v6, %s3841_s23  ;;  %v973_v55 = vmul.f32 %v4293_v50, %v904_v51 }
  0xac   :  { %v251_v32 = vpop.permute.xlu1 %250  ;;  %1908 = vmatpush1.msra.mxu0 %v384_v60 }
  0xad   :  { %1994 = vmatprep.subr.mxu1 %v973_v55  ;;  %v4314_v46 = vpop.permute.xlu0 %838 }
  0xae   :  { %7564 = vst [vmem:[#allocation18_spill] sm:$0xff] %v4314_v46  ;;  %v912_v59 = vsel %vm888_vm1, %v4314_v46, %v855_v62  ;;  %1220 = vrot.lane.b32.xlu1 %v3988_v15, %s3841_s23 }
  0xaf   :  { %634 = vrot.lane.b32.xlu0 %v3969_v12, %s3840_s22  ;;  %v972_v51 = vmul.f32 %v4312_v49, %v912_v59 }
  0xb0   :  { %v853_v54 = vpop.permute.xlu1 %852 }
  0xb1   :  { %1995 = vmatpush1.msra.mxu1 %v972_v51  ;;  %v4324_v52 = vpop.permute.xlu0 %266 }
  0xb2   :  { %7565 = vst [vmem:[#allocation19_spill] sm:$0xff] %v4324_v52  ;;  %v326_v60 = vsel %vm304_vm0, %v251_v32, %v4324_v52  ;;  %666 = vrot.lane.b32.xlu1 %v4064_v23, %s3840_s22 }
  0xb3   :  { %1236 = vrot.lane.b32.xlu0 %v4069_v24, %s3841_s23  ;;  %v381_v62 = vmul.f32 %v4250_v57, %v326_v60 }
  0xb4   :  { %v4334_v55 = vpop.permute.xlu1 %298 }
  0xb5   :  { %7566 = vst [vmem:[#allocation20_spill] sm:$0xff] %v4334_v55  ;;  %1909 = vmatprep.subr.mxu0 %v381_v62  ;;  %v4336_v59 = vpop.permute.xlu0 %868  ;;  %v334_v51 = vsel %vm304_vm0, %v4334_v55, %v251_v32 }
  0xb6   :  { %7567 = vst [vmem:[#allocation21_spill] sm:$0xff] %v4336_v59  ;;  %v903_v46 = vsel %vm888_vm1, %v853_v54, %v4336_v59  ;;  %616 = vrot.lane.b32.xlu1 %v3918_v5, %s3840_s22  ;;  %v380_v60 = vmul.f32 %v4266_v63, %v334_v51 }
  0xb7   :  { %1204 = vrot.lane.b32.xlu0 %v3932_v7, %s3841_s23  ;;  %v969_v62 = vmul.f32 %v4293_v50, %v903_v46 }
  0xb8   :  { %v249_v52 = vpop.permute.xlu1 %248  ;;  %1910 = vmatpush1.msra.mxu0 %v380_v60 }
  0xb9   :  { %1996 = vmatprep.subr.mxu1 %v969_v62  ;;  %v4350_v61 = vpop.permute.xlu0 %836 }
  0xba   :  { %7568 = vst [vmem:[#allocation22_spill] sm:$0xff] %v4350_v61  ;;  %v911_v32 = vsel %vm888_vm1, %v4350_v61, %v853_v54  ;;  %1218 = vrot.lane.b32.xlu1 %v3969_v12, %s3841_s23 }
  0xbb   :  { %632 = vrot.lane.b32.xlu0 %v3974_v13, %s3840_s22  ;;  %v968_v59 = vmul.f32 %v4312_v49, %v911_v32 }
  0xbc   :  { %v851_v51 = vpop.permute.xlu1 %850 }
  0xbd   :  { %1997 = vmatpush1.msra.mxu1 %v968_v59  ;;  %v4360_v46 = vpop.permute.xlu0 %264 }
  0xbe   :  { %7569 = vst [vmem:[#allocation23_spill] sm:$0xff] %v4360_v46  ;;  %v325_v60 = vsel %vm304_vm0, %v249_v52, %v4360_v46  ;;  %664 = vrot.lane.b32.xlu1 %v4086_v25, %s3840_s22 }
  0xbf   :  { %1234 = vrot.lane.b32.xlu0 %v4091_v26, %s3841_s23  ;;  %v377_v54 = vmul.f32 %v4250_v57, %v325_v60 }
  0xc0   :  { %v4370_v62 = vpop.permute.xlu1 %296 }
  0xc1   :  { %7570 = vst [vmem:[#allocation24_spill] sm:$0xff] %v4370_v62  ;;  %1911 = vmatprep.subr.mxu0 %v377_v54  ;;  %v4372_v32 = vpop.permute.xlu0 %866  ;;  %v333_v59 = vsel %vm304_vm0, %v4370_v62, %v249_v52 }
  0xc2   :  { %7571 = vst [vmem:[#allocation25_spill] sm:$0xff] %v4372_v32  ;;  %v902_v61 = vsel %vm888_vm1, %v851_v51, %v4372_v32  ;;  %614 = vrot.lane.b32.xlu1 %v3899_v2, %s3840_s22  ;;  %v376_v60 = vmul.f32 %v4266_v63, %v333_v59 }
  0xc3   :  { %1202 = vrot.lane.b32.xlu0 %v3913_v4, %s3841_s23  ;;  %v965_v54 = vmul.f32 %v4293_v50, %v902_v61 }
  0xc4   :  { %v247_v46 = vpop.permute.xlu1 %246  ;;  %1912 = vmatpush1.msra.mxu0 %v376_v60 }
  0xc5   :  { %1998 = vmatprep.subr.mxu1 %v965_v54  ;;  %v4386_v55 = vpop.permute.xlu0 %834 }
  0xc6   :  { %7572 = vst [vmem:[#allocation26_spill] sm:$0xff] %v4386_v55  ;;  %v910_v52 = vsel %vm888_vm1, %v4386_v55, %v851_v51  ;;  %1216 = vrot.lane.b32.xlu1 %v3974_v13, %s3841_s23 }
  0xc7   :  { %630 = vrot.lane.b32.xlu0 %v3955_v10, %s3840_s22  ;;  %v964_v32 = vmul.f32 %v4312_v49, %v910_v52 }
  0xc8   :  { %v849_v59 = vpop.permute.xlu1 %848 }
  0xc9   :  { %1999 = vmatpush1.msra.mxu1 %v964_v32  ;;  %v4396_v61 = vpop.permute.xlu0 %262 }
  0xca   :  { %7573 = vst [vmem:[#allocation27_spill] sm:$0xff] %v4396_v61  ;;  %v324_v60 = vsel %vm304_vm0, %v247_v46, %v4396_v61  ;;  %662 = vrot.lane.b32.xlu1 %v4108_v27, %s3840_s22 }
  0xcb   :  { %1232 = vrot.lane.b32.xlu0 %v4113_v28, %s3841_s23  ;;  %v373_v51 = vmul.f32 %v4250_v57, %v324_v60 }
  0xcc   :  { %v4406_v54 = vpop.permute.xlu1 %294 }
  0xcd   :  { %7574 = vst [vmem:[#allocation28_spill] sm:$0xff] %v4406_v54  ;;  %1913 = vmatprep.subr.mxu0 %v373_v51  ;;  %v4408_v52 = vpop.permute.xlu0 %864  ;;  %v332_v32 = vsel %vm304_vm0, %v4406_v54, %v247_v46 }
  0xce   :  { %7575 = vst [vmem:[#allocation29_spill] sm:$0xff] %v4408_v52  ;;  %v901_v55 = vsel %vm888_vm1, %v849_v59, %v4408_v52  ;;  %612 = vrot.lane.b32.xlu1 %v3885_v0, %s3840_s22  ;;  %v372_v60 = vmul.f32 %v4266_v63, %v332_v32 }
  0xcf   :  { %1200 = vrot.lane.b32.xlu0 %v3918_v5, %s3841_s23  ;;  %v961_v51 = vmul.f32 %v4293_v50, %v901_v55 }
  0xd0   :  { %v245_v61 = vpop.permute.xlu1 %244  ;;  %1914 = vmatpush1.msra.mxu0 %v372_v60 }
  0xd1   :  { %2000 = vmatprep.subr.mxu1 %v961_v51  ;;  %v4422_v62 = vpop.permute.xlu0 %832 }
  0xd2   :  { %7576 = vst [vmem:[#allocation30_spill] sm:$0xff] %v4422_v62  ;;  %v909_v46 = vsel %vm888_vm1, %v4422_v62, %v849_v59  ;;  %1214 = vrot.lane.b32.xlu1 %v3955_v10, %s3841_s23 }
  0xd3   :  { %628 = vrot.lane.b32.xlu0 %v3960_v11, %s3840_s22  ;;  %v960_v52 = vmul.f32 %v4312_v49, %v909_v46 }
  0xd4   :  { %v847_v32 = vpop.permute.xlu1 %846 }
  0xd5   :  { %2001 = vmatpush1.msra.mxu1 %v960_v52  ;;  %v4432_v55 = vpop.permute.xlu0 %260 }
  0xd6   :  { %7577 = vst [vmem:[#allocation31_spill] sm:$0xff] %v4432_v55  ;;  %v323_v60 = vsel %vm304_vm0, %v245_v61, %v4432_v55  ;;  %660 = vrot.lane.b32.xlu1 %v4130_v29, %s3840_s22 }
  0xd7   :  { %1230 = vrot.lane.b32.xlu0 %v4011_v18, %s3841_s23  ;;  %v369_v59 = vmul.f32 %v4250_v57, %v323_v60 }
  0xd8   :  { %v4442_v51 = vpop.permute.xlu1 %292 }
  0xd9   :  { %7578 = vst [vmem:[#allocation32_spill] sm:$0xff] %v4442_v51  ;;  %1915 = vmatprep.subr.mxu0 %v369_v59  ;;  %v4444_v46 = vpop.permute.xlu0 %862  ;;  %v331_v52 = vsel %vm304_vm0, %v4442_v51, %v245_v61 }
  0xda   :  { %7579 = vst [vmem:[#allocation33_spill] sm:$0xff] %v4444_v46  ;;  %v900_v62 = vsel %vm888_vm1, %v847_v32, %v4444_v46  ;;  %610 = vrot.lane.b32.xlu1 %v3904_v3, %s3840_s22  ;;  %v368_v60 = vmul.f32 %v4266_v63, %v331_v52 }
  0xdb   :  { %1198 = vrot.lane.b32.xlu0 %v3899_v2, %s3841_s23  ;;  %v957_v59 = vmul.f32 %v4293_v50, %v900_v62 }
  0xdc   :  { %v243_v55 = vpop.permute.xlu1 %242  ;;  %1916 = vmatpush1.msra.mxu0 %v368_v60 }
  0xdd   :  { %2002 = vmatprep.subr.mxu1 %v957_v59  ;;  %v4458_v54 = vpop.permute.xlu0 %830 }
  0xde   :  { %7580 = vst [vmem:[#allocation34_spill] sm:$0xff] %v4458_v54  ;;  %v908_v61 = vsel %vm888_vm1, %v4458_v54, %v847_v32  ;;  %1212 = vrot.lane.b32.xlu1 %v3960_v11, %s3841_s23 }
  0xdf   :  { %626 = vrot.lane.b32.xlu0 %v3941_v8, %s3840_s22  ;;  %v956_v46 = vmul.f32 %v4312_v49, %v908_v61 }
  0xe0   :  { %v845_v52 = vpop.permute.xlu1 %844 }
  0xe1   :  { %2003 = vmatpush1.msra.mxu1 %v956_v46  ;;  %v4468_v62 = vpop.permute.xlu0 %258 }
  0xe2   :  { %7581 = vst [vmem:[#allocation35_spill] sm:$0xff] %v4468_v62  ;;  %v322_v60 = vsel %vm304_vm0, %v243_v55, %v4468_v62  ;;  %658 = vrot.lane.b32.xlu1 %v4147_v30, %s3840_s22 }
  0xe3   :  { %1228 = vrot.lane.b32.xlu0 %v4016_v19, %s3841_s23  ;;  %v365_v32 = vmul.f32 %v4250_v57, %v322_v60 }
  0xe4   :  { %v4478_v59 = vpop.permute.xlu1 %290 }
  0xe5   :  { %1917 = vmatprep.subr.mxu0 %v365_v32  ;;  %v4480_v61 = vpop.permute.xlu0 %860  ;;  %v330_v46 = vsel %vm304_vm0, %v4478_v59, %v243_v55 }
  0xe6   :  { %7582 = vst [vmem:[#allocation36_spill] sm:$0xff] %v4480_v61  ;;  %v899_v54 = vsel %vm888_vm1, %v845_v52, %v4480_v61  ;;  %608 = vrot.lane.b32.xlu1 %v3890_v1, %s3840_s22  ;;  %v364_v60 = vmul.f32 %v4266_v63, %v330_v46 }
  0xe7   :  { %1196 = vrot.lane.b32.xlu0 %v3885_v0, %s3841_s23  ;;  %v953_v32 = vmul.f32 %v4293_v50, %v899_v54 }
  0xe8   :  { %v241_v62 = vpop.permute.xlu1 %240  ;;  %1918 = vmatpush1.msra.mxu0 %v364_v60 }
  0xe9   :  { %2004 = vmatprep.subr.mxu1 %v953_v32  ;;  %v4494_v51 = vpop.permute.xlu0 %828 }
  0xea   :  { %7583 = vst [vmem:[#allocation37_spill] sm:$0xff] %v4494_v51  ;;  %v907_v55 = vsel %vm888_vm1, %v4494_v51, %v845_v52  ;;  %1210 = vrot.lane.b32.xlu1 %v3941_v8, %s3841_s23  ;;  %v154_v52 = vld [vmem:[%s7438_s5] sm:$0xf] }
  0xeb   :  { %624 = vrot.lane.b32.xlu0 %v3946_v9, %s3840_s22  ;;  %v952_v61 = vmul.f32 %v4312_v49, %v907_v55 }
  0xec   :  { %v843_v46 = vpop.permute.xlu1 %842 }
  0xed   :  { %2005 = vmatpush1.msra.mxu1 %v952_v61  ;;  %v4504_v54 = vpop.permute.xlu0 %256  ;;  %v145_v61 = vsel %vm121_vm2, %v4182_v38, %v4214_v47 }
  0xee   :  { %7584 = vst [vmem:[#allocation38_spill] sm:$0xff] %v4504_v54  ;;  %v321_v60 = vsel %vm304_vm0, %v241_v62, %v4504_v54  ;;  %656 = vrot.lane.b32.xlu1 %v4172_v35, %s3840_s22 }
  0xef   :  { %1226 = vrot.lane.b32.xlu0 %v3997_v16, %s3841_s23  ;;  %v361_v32 = vmul.f32 %v4250_v57, %v321_v60  ;;  %v4533_v57 = vrot.slane %v154_v52, %v4242_v56 }
  0xf0   :  { %v4522_v55 = vpop.permute.xlu1 %288 }
  0xf1   :  { %7585 = vst [vmem:[#allocation39_spill] sm:$0xff] %v4522_v55  ;;  %1919 = vmatprep.subr.mxu0 %v361_v32  ;;  %v4524_v51 = vpop.permute.xlu0 %858  ;;  %v329_v54 = vsel %vm304_vm0, %v4522_v55, %v241_v62  ;;  %v205_v62 = vmul.f32 %v4533_v57, %v145_v61  ;;  %v144_v61 = vsel %vm121_vm2, %v4184_v39, %v4216_v48 }
  0xf2   :  { %7586 = vst [vmem:[#allocation40_spill] sm:$0xff] %v4524_v51  ;;  %v898_v16 = vsel %vm888_vm1, %v843_v46, %v4524_v51  ;;  %438 = vrot.lane.b32.xlu1 %v3927_v6, %s3842_s29  ;;  %v360_v60 = vmul.f32 %v4266_v63, %v329_v54  ;;  %v4553_v54 = vrot.slane %v154_v52, %v4253_v58 }
  0xf3   :  { %1194 = vrot.lane.b32.xlu0 %v3904_v3, %s3841_s23  ;;  %v949_v32 = vmul.f32 %v4293_v50, %v898_v16 }
  0xf4   :  { %v841_v47 = vpop.permute.xlu1 %840  ;;  %1920 = vmatpush1.msra.mxu0 %v360_v60 }
  0xf5   :  { %2006 = vmatprep.subr.mxu1 %v949_v32  ;;  %v4542_v51 = vpop.permute.xlu0 %826  ;;  %1921 = vmatprep.subr.mxu0 %v205_v62  ;;  %v201_v62 = vmul.f32 %v4533_v57, %v144_v61 }
  0xf6   :  { %7587 = vst [vmem:[#allocation41_spill] sm:$0xff] %v4542_v51  ;;  %v906_v55 = vsel %vm888_vm1, %v4542_v51, %v843_v46  ;;  %1208 = vrot.lane.b32.xlu1 %v3946_v9, %s3841_s23 }
  0xf7   :  { %454 = vrot.lane.b32.xlu0 %v3983_v14, %s3842_s29  ;;  %v948_v63 = vmul.f32 %v4312_v49, %v906_v55 }
  0xf8   :  { %v4559_v16 = vpop.permute.xlu1 %117 }
  0xf9   :  { %2007 = vmatpush1.msra.mxu1 %v948_v63  ;;  %v4561_v46 = vpop.permute.xlu0 %856  ;;  %v153_v60 = vsel %vm121_vm2, %v4559_v16, %v4182_v38  ;;  %v143_v38 = vsel %vm121_vm2, %v4174_v36, %v4206_v44 }
  0xfa   :  { %v897_v52 = vsel %vm888_vm1, %v841_v47, %v4561_v46  ;;  %486 = vrot.lane.b32.xlu1 %v4029_v20, %s3842_s29  ;;  %v204_v55 = vmul.f32 %v4553_v54, %v153_v60  ;;  %v197_v60 = vmul.f32 %v4533_v57, %v143_v38 }
  0xfb   :  { %1224 = vrot.lane.b32.xlu0 %v4002_v17, %s3841_s23  ;;  %v945_v32 = vmul.f32 %v4293_v50, %v897_v52 }
  0xfc   :  { %v4581_v63 = vpop.permute.xlu1 %115  ;;  %1922 = vmatpush1.msra.mxu0 %v204_v55 }
  0xfd   :  { %2008 = vmatprep.subr.mxu1 %v945_v32  ;;  %v4583_v51 = vpop.permute.xlu0 %824  ;;  %v152_v17 = vsel %vm121_vm2, %v4581_v63, %v4184_v39  ;;  %1923 = vmatprep.subr.mxu0 %v201_v62  ;;  %v142_v39 = vsel %vm121_vm2, %v4176_v37, %v4208_v45 }
  0xfe   :  { %v905_v20 = vsel %vm888_vm1, %v4583_v51, %v841_v47  ;;  %436 = vrot.lane.b32.xlu1 %v3932_v7, %s3842_s29  ;;  %v200_v50 = vmul.f32 %v4553_v54, %v152_v17  ;;  %v193_v62 = vmul.f32 %v4533_v57, %v142_v39  ;;  %v140_v17 = vsel %vm121_vm2, %v4153_v31, %v4200_v43 }
  0xff   :  { %1192 = vrot.lane.b32.xlu0 %v3890_v1, %s3841_s23  ;;  %v944_v61 = vmul.f32 %v4312_v49, %v905_v20 }
 0x100   :  { %v4603_v52 = vpop.permute.xlu1 %111  ;;  %1924 = vmatpush1.msra.mxu0 %v200_v50 }
 0x101   :  { %2009 = vmatpush1.msra.mxu1 %v944_v61  ;;  %v4605_v47 = vpop.permute.xlu0 %113  ;;  %1925 = vmatprep.subr.mxu0 %v197_v60  ;;  %v150_v49 = vsel %vm121_vm2, %v4603_v52, %v4176_v37 }
 0x102   :  { %v151_v55 = vsel %vm121_vm2, %v4605_v47, %v4174_v36  ;;  %2010 = vmatprep.subr.mxu1 %v3983_v14  ;;  %1038 = vrot.lane.b32.xlu1 %v3983_v14, %s3843_s30  ;;  %v141_v36 = vsel %vm121_vm2, %v4161_v33, %v4198_v42  ;;  %v139_v14 = vsel %vm121_vm2, %v4163_v34, %v4190_v40 }
 0x103   :  { %452 = vrot.lane.b32.xlu0 %v3988_v15, %s3842_s29  ;;  %v196_v32 = vmul.f32 %v4553_v54, %v151_v55  ;;  %2011 = vmatpush1.msra.mxu1 %v3927_v6  ;;  %v192_v50 = vmul.f32 %v4553_v54, %v150_v49  ;;  %v189_v60 = vmul.f32 %v4533_v57, %v141_v36 }
 0x104   :  { %v4627_v38 = vpop.permute.xlu1 %107  ;;  %2012 = vmatprep.subr.mxu1 %v3988_v15 }
 0x105   :  { %1926 = vmatpush1.msra.mxu0 %v196_v32  ;;  %v4629_v37 = vpop.permute.xlu0 %109  ;;  %v148_v61 = vsel %vm121_vm2, %v4627_v38, %v4153_v31  ;;  %2013 = vmatpush1.msra.mxu1 %v3932_v7 }
 0x106   :  { %v149_v20 = vsel %vm121_vm2, %v4629_v37, %v4161_v33  ;;  %1927 = vmatprep.subr.mxu0 %v193_v62  ;;  %484 = vrot.lane.b32.xlu1 %v4042_v21, %s3842_s29  ;;  %v3738_v33 = vld [vmem:[%s7438_s5 + $0xc] sm:$0xf]  ;;  %v185_v21 = vmul.f32 %v4533_v57, %v140_v17  ;;  %v184_v36 = vmul.f32 %v4553_v54, %v148_v61 }
 0x107   :  { %1054 = vrot.lane.b32.xlu0 %v4047_v22, %s3843_s30  ;;  %v188_v39 = vmul.f32 %v4553_v54, %v149_v20  ;;  %1928 = vmatpush1.msra.mxu0 %v192_v50  ;;  %v7588_v22 = vld [vmem:[#allocation4_spill] sm:$0xff]  ;;  %v181_v62 = vmul.f32 %v4533_v57, %v139_v14  ;;  %v4684_v50 = vrot.slane %v3738_v33, %v4242_v56 }
 0x108   :  { %1929 = vmatprep.subr.mxu0 %v189_v60  ;;  %v4659_v55 = vpop.permute.xlu1 %103  ;;  %2014 = vmatprep.subr.mxu1 %v3969_v12  ;;  %v138_v49 = vsel %vm121_vm2, %v7588_v22, %v4192_v41 }
 0x109   :  { %v4661_v31 = vpop.permute.xlu0 %105  ;;  %1930 = vmatpush1.msra.mxu0 %v188_v39  ;;  %v146_v17 = vsel %vm121_vm2, %v4659_v55, %v7588_v22  ;;  %v177_v61 = vmul.f32 %v4533_v57, %v138_v49  ;;  %2015 = vmatpush1.msra.mxu1 %v3913_v4 }
 0x10a   :  { %v147_v32 = vsel %vm121_vm2, %v4661_v31, %v4163_v34  ;;  %1931 = vmatprep.subr.mxu0 %v185_v21  ;;  %434 = vrot.lane.b32.xlu1 %v3913_v4, %s3842_s29  ;;  %v176_v39 = vmul.f32 %v4553_v54, %v146_v17  ;;  %v4701_v21 = vrot.slane %v3738_v33, %v4253_v58  ;;  %v3741_v33 = vld [vmem:[%s7438_s5 + $0x1c] sm:$0xf] }
 0x10b   :  { %v180_v20 = vmul.f32 %v4553_v54, %v147_v32  ;;  %1022 = vrot.lane.b32.xlu0 %v3927_v6, %s3843_s30  ;;  %1932 = vmatpush1.msra.mxu0 %v184_v36  ;;  %v4735_v36 = vrot.slane %v3741_v33, %v4242_v56 }
 0x10c   :  { %1933 = vmatprep.subr.mxu0 %v181_v62  ;;  %v4688_v34 = vpop.permute.xlu1 %638  ;;  %2016 = vmatprep.subr.mxu1 %v3974_v13 }
 0x10d   :  { %v623_v14 = vpop.permute.xlu0 %622  ;;  %1934 = vmatpush1.msra.mxu0 %v180_v20  ;;  %2017 = vmatpush1.msra.mxu1 %v3918_v5  ;;  %v4756_v20 = vrot.slane %v3741_v33, %v4253_v58 }
 0x10e   :  { %v696_v60 = vsel %vm672_vm3, %v623_v14, %v4688_v34  ;;  %1935 = vmatprep.subr.mxu0 %v177_v61  ;;  %1036 = vrot.lane.b32.xlu1 %v3988_v15, %s3843_s30 }
 0x10f   :  { %v757_v6 = vmul.f32 %v4684_v50, %v696_v60  ;;  %450 = vrot.lane.b32.xlu0 %v3969_v12, %s3842_s29  ;;  %1936 = vmatpush1.msra.mxu0 %v176_v39 }
 0x110   :  { %v621_v57 = vpop.permute.xlu1 %620  ;;  %2018 = vmatprep.subr.mxu1 %v3955_v10 }
 0x111   :  { %1937 = vmatprep.subr.mxu0 %v757_v6  ;;  %v4705_v22 = vpop.permute.xlu0 %670  ;;  %2019 = vmatpush1.msra.mxu1 %v3899_v2 }
 0x112   :  { %v704_v54 = vsel %vm672_vm3, %v4705_v22, %v623_v14  ;;  %482 = vrot.lane.b32.xlu1 %v4064_v23, %s3842_s29  ;;  %2020 = vmatprep.subr.mxu1 %v3960_v11 }
 0x113   :  { %v756_v15 = vmul.f32 %v4701_v21, %v704_v54  ;;  %1052 = vrot.lane.b32.xlu0 %v4069_v24, %s3843_s30  ;;  %2021 = vmatpush1.msra.mxu1 %v3885_v0 }
 0x114   :  { %v1223_v49 = vpop.permute.xlu1 %1222  ;;  %2022 = vmatprep.subr.mxu1 %v3941_v8 }
 0x115   :  { %1938 = vmatpush2.msra.mxu0 %v756_v15  ;;  %v4722_v32 = vpop.permute.xlu0 %636  ;;  %2023 = vmatpush1.msra.mxu1 %v3904_v3 }
 0x116   :  { %v695_v23 = vsel %vm672_vm3, %v621_v57, %v4722_v32  ;;  %432 = vrot.lane.b32.xlu1 %v3918_v5, %s3842_s29  ;;  %2024 = vmatprep.subr.mxu1 %v3946_v9 }
 0x117   :  { %v753_v24 = vmul.f32 %v4684_v50, %v695_v23  ;;  %1020 = vrot.lane.b32.xlu0 %v3932_v7, %s3843_s30  ;;  %2025 = vmatpush1.msra.mxu1 %v3890_v1 }
 0x118   :  { %v4740_v62 = vpop.permute.xlu1 %668 }
 0x119   :  { %1939 = vmatprep.subr.mxu0 %v753_v24  ;;  %v4742_v8 = vpop.permute.xlu0 %1238  ;;  %v703_v17 = vsel %vm672_vm3, %v4740_v62, %v621_v57 }
 0x11a   :  { %7589 = vst [vmem:[#allocation4_spill] sm:$0xff] %v4742_v8  ;;  %v1272_v3 = vsel %vm1256_vm4, %v1223_v49, %v4742_v8  ;;  %1034 = vrot.lane.b32.xlu1 %v3969_v12, %s3843_s30  ;;  %v752_v7 = vmul.f32 %v4701_v21, %v703_v17 }
 0x11b   :  { %v1341_v9 = vmul.f32 %v4735_v36, %v1272_v3  ;;  %448 = vrot.lane.b32.xlu0 %v3974_v13, %s3842_s29 }
 0x11c   :  { %v619_v1 = vpop.permute.xlu1 %618  ;;  %1940 = vmatpush2.msra.mxu0 %v752_v7 }
 0x11d   :  { %2026 = vmatprep.subr.mxu1 %v1341_v9  ;;  %v4760_v14 = vpop.permute.xlu0 %1206 }
 0x11e   :  { %7590 = vst [vmem:[#allocation42_spill] sm:$0xff] %v4760_v14  ;;  %v1280_v61 = vsel %vm1256_vm4, %v4760_v14, %v1223_v49  ;;  %480 = vrot.lane.b32.xlu1 %v4086_v25, %s3842_s29 }
 0x11f   :  { %v1340_v12 = vmul.f32 %v4756_v20, %v1280_v61  ;;  %1050 = vrot.lane.b32.xlu0 %v4091_v26, %s3843_s30 }
 0x120   :  { %v1221_v60 = vpop.permute.xlu1 %1220 }
 0x121   :  { %2027 = vmatpush2.msra.mxu1 %v1340_v12  ;;  %v4770_v39 = vpop.permute.xlu0 %634 }
 0x122   :  { %v694_v6 = vsel %vm672_vm3, %v619_v1, %v4770_v39  ;;  %430 = vrot.lane.b32.xlu1 %v3899_v2, %s3842_s29 }
 0x123   :  { %v749_v57 = vmul.f32 %v4684_v50, %v694_v6  ;;  %1018 = vrot.lane.b32.xlu0 %v3913_v4, %s3843_s30 }
 0x124   :  { %v4780_v25 = vpop.permute.xlu1 %666 }
 0x125   :  { %1941 = vmatprep.subr.mxu0 %v749_v57  ;;  %v4782_v26 = vpop.permute.xlu0 %1236  ;;  %v702_v54 = vsel %vm672_vm3, %v4780_v25, %v619_v1 }
 0x126   :  { %7591 = vst [vmem:[#allocation43_spill] sm:$0xff] %v4782_v26  ;;  %v1271_v15 = vsel %vm1256_vm4, %v1221_v60, %v4782_v26  ;;  %1032 = vrot.lane.b32.xlu1 %v3974_v13, %s3843_s30  ;;  %v748_v2 = vmul.f32 %v4701_v21, %v702_v54 }
 0x127   :  { %v1337_v4 = vmul.f32 %v4735_v36, %v1271_v15  ;;  %446 = vrot.lane.b32.xlu0 %v3955_v10, %s3842_s29  ;;  %v4850_v15 = vld [vmem:[%s7437_s0 + $0x20] sm:$0xff] }
 0x128   :  { %v617_v33 = vpop.permute.xlu1 %616  ;;  %1942 = vmatpush2.msra.mxu0 %v748_v2 }
 0x129   :  { %2028 = vmatprep.subr.mxu1 %v1337_v4  ;;  %v4796_v49 = vpop.permute.xlu0 %1204 }
 0x12a   :  { %7592 = vst [vmem:[#allocation44_spill] sm:$0xff] %v4796_v49  ;;  %v1279_v23 = vsel %vm1256_vm4, %v4796_v49, %v1221_v60  ;;  %478 = vrot.lane.b32.xlu1 %v4108_v27, %s3842_s29 }
 0x12b   :  { %v1336_v13 = vmul.f32 %v4756_v20, %v1279_v23  ;;  %1048 = vrot.lane.b32.xlu0 %v4113_v28, %s3843_s30 }
 0x12c   :  { %v1219_v24 = vpop.permute.xlu1 %1218 }
 0x12d   :  { %2029 = vmatpush2.msra.mxu1 %v1336_v13  ;;  %v4806_v17 = vpop.permute.xlu0 %632 }
 0x12e   :  { %v693_v3 = vsel %vm672_vm3, %v617_v33, %v4806_v17  ;;  %428 = vrot.lane.b32.xlu1 %v3885_v0, %s3842_s29 }
 0x12f   :  { %v745_v7 = vmul.f32 %v4684_v50, %v693_v3  ;;  %1016 = vrot.lane.b32.xlu0 %v3918_v5, %s3843_s30  ;;  %v4879_v3 = vld [vmem:[%s7437_s0 + $0x28] sm:$0xff] }
 0x130   :  { %v4816_v27 = vpop.permute.xlu1 %664 }
 0x131   :  { %1943 = vmatprep.subr.mxu0 %v745_v7  ;;  %v4818_v28 = vpop.permute.xlu0 %1234  ;;  %v701_v9 = vsel %vm672_vm3, %v4816_v27, %v617_v33 }
 0x132   :  { %7593 = vst [vmem:[#allocation45_spill] sm:$0xff] %v4818_v28  ;;  %v1270_v1 = vsel %vm1256_vm4, %v1219_v24, %v4818_v28  ;;  %1030 = vrot.lane.b32.xlu1 %v3955_v10, %s3843_s30  ;;  %v744_v0 = vmul.f32 %v4701_v21, %v701_v9 }
 0x133   :  { %v1333_v5 = vmul.f32 %v4735_v36, %v1270_v1  ;;  %444 = vrot.lane.b32.xlu0 %v3960_v11, %s3842_s29 }
 0x134   :  { %v615_v61 = vpop.permute.xlu1 %614  ;;  %1944 = vmatpush2.msra.mxu0 %v744_v0 }
 0x135   :  { %2030 = vmatprep.subr.mxu1 %v1333_v5  ;;  %v4832_v12 = vpop.permute.xlu0 %1202 }
 0x136   :  { %7594 = vst [vmem:[#allocation46_spill] sm:$0xff] %v4832_v12  ;;  %v1278_v60 = vsel %vm1256_vm4, %v4832_v12, %v1219_v24  ;;  %476 = vrot.lane.b32.xlu1 %v4130_v29, %s3842_s29 }
 0x137   :  { %v1332_v10 = vmul.f32 %v4756_v20, %v1278_v60  ;;  %1046 = vrot.lane.b32.xlu0 %v4011_v18, %s3843_s30  ;;  %v4858_v18 = vld [vmem:[%s7437_s0 + $0x60] sm:$0xff] }
 0x138   :  { %v1217_v6 = vpop.permute.xlu1 %1216  ;;  %v4901_v60 = vld [vmem:[%s7437_s0] sm:$0xff] }
 0x139   :  { %2031 = vmatpush2.msra.mxu1 %v1332_v10  ;;  %v4842_v57 = vpop.permute.xlu0 %630 }
 0x13a   :  { %v692_v54 = vsel %vm672_vm3, %v615_v61, %v4842_v57  ;;  %426 = vrot.lane.b32.xlu1 %v4850_v15, %s3842_s29 }
 0x13b   :  { %v741_v29 = vmul.f32 %v4684_v50, %v692_v54  ;;  %1014 = vrot.lane.b32.xlu0 %v4858_v18, %s3843_s30 }
 0x13c   :  { %v4862_v2 = vpop.permute.xlu1 %662 }
 0x13d   :  { %1945 = vmatprep.subr.mxu0 %v741_v29  ;;  %v4864_v4 = vpop.permute.xlu0 %1232  ;;  %v700_v33 = vsel %vm672_vm3, %v4862_v2, %v615_v61 }
 0x13e   :  { %7595 = vst [vmem:[#allocation47_spill] sm:$0xff] %v4864_v4  ;;  %v1269_v23 = vsel %vm1256_vm4, %v1217_v6, %v4864_v4  ;;  %1028 = vrot.lane.b32.xlu1 %v3960_v11, %s3843_s30  ;;  %v740_v13 = vmul.f32 %v4701_v21, %v700_v33 }
 0x13f   :  { %v1329_v24 = vmul.f32 %v4735_v36, %v1269_v23  ;;  %442 = vrot.lane.b32.xlu0 %v4879_v3, %s3842_s29 }
 0x140   :  { %v613_v7 = vpop.permute.xlu1 %612  ;;  %1946 = vmatpush2.msra.mxu0 %v740_v13  ;;  %v4930_v13 = vld [vmem:[%s7437_s0 + $0x8] sm:$0xff] }
 0x141   :  { %2032 = vmatprep.subr.mxu1 %v1329_v24  ;;  %v4883_v9 = vpop.permute.xlu0 %1200 }
 0x142   :  { %7596 = vst [vmem:[#allocation48_spill] sm:$0xff] %v4883_v9  ;;  %v1277_v11 = vsel %vm1256_vm4, %v4883_v9, %v1217_v6  ;;  %474 = vrot.lane.b32.xlu1 %v4147_v30, %s3842_s29 }
 0x143   :  { %v1328_v1 = vmul.f32 %v4756_v20, %v1277_v11  ;;  %1044 = vrot.lane.b32.xlu0 %v4016_v19, %s3843_s30  ;;  %v4909_v19 = vld [vmem:[%s7437_s0 + $0x40] sm:$0xff] }
 0x144   :  { %v1215_v0 = vpop.permute.xlu1 %1214 }
 0x145   :  { %2033 = vmatpush2.msra.mxu1 %v1328_v1  ;;  %v4893_v5 = vpop.permute.xlu0 %628 }
 0x146   :  { %v691_v61 = vsel %vm672_vm3, %v613_v7, %v4893_v5  ;;  %424 = vrot.lane.b32.xlu1 %v4901_v60, %s3842_s29 }
 0x147   :  { %v737_v30 = vmul.f32 %v4684_v50, %v691_v61  ;;  %1012 = vrot.lane.b32.xlu0 %v4909_v19, %s3843_s30  ;;  %v4945_v61 = vld [vmem:[%s7437_s0 + $0x30] sm:$0xff] }
 0x148   :  { %v4913_v10 = vpop.permute.xlu1 %660 }
 0x149   :  { %1947 = vmatprep.subr.mxu0 %v737_v30  ;;  %v4915_v6 = vpop.permute.xlu0 %1230  ;;  %v699_v54 = vsel %vm672_vm3, %v4913_v10, %v613_v7 }
 0x14a   :  { %7597 = vst [vmem:[#allocation49_spill] sm:$0xff] %v4915_v6  ;;  %v1268_v29 = vsel %vm1256_vm4, %v1215_v0, %v4915_v6  ;;  %1026 = vrot.lane.b32.xlu1 %v4879_v3, %s3843_s30  ;;  %v736_v33 = vmul.f32 %v4701_v21, %v699_v54 }
 0x14b   :  { %v1325_v23 = vmul.f32 %v4735_v36, %v1268_v29  ;;  %440 = vrot.lane.b32.xlu0 %v4930_v13, %s3842_s29  ;;  %v4962_v29 = vld [vmem:[%s7439_s1 + $0x8] sm:$0xff] }
 0x14c   :  { %v611_v24 = vpop.permute.xlu1 %610  ;;  %1948 = vmatpush2.msra.mxu0 %v736_v33  ;;  %v1563_v33 = vld [vmem:[%s7439_s1 + $0x18] sm:$0xff]  ;;  %1969 = vmatprep.mubr.f32.mxu0 %v4962_v29 }
 0x14d   :  { %2034 = vmatprep.subr.mxu1 %v1325_v23  ;;  %v4934_v7 = vpop.permute.xlu0 %1198  ;;  %2058 = vmatprep.mubr.f32.mxu1 %v1563_v33 }
 0x14e   :  { %7598 = vst [vmem:[#allocation50_spill] sm:$0xff] %v4934_v7  ;;  %v1276_v11 = vsel %vm1256_vm4, %v4934_v7, %v1215_v0  ;;  %472 = vrot.lane.b32.xlu1 %v4172_v35, %s3842_s29  ;;  %v3779_v7 = vld [vmem:[%s7437_s0 + $0xe8] sm:$0xff] }
 0x14f   :  { %v1324_v1 = vmul.f32 %v4756_v20, %v1276_v11  ;;  %1042 = vrot.lane.b32.xlu0 %v4945_v61, %s3843_s30 }
 0x150   :  { %v1213_v30 = vpop.permute.xlu1 %1212 }
 0x151   :  { %2035 = vmatpush2.msra.mxu1 %v1324_v1  ;;  %v4949_v54 = vpop.permute.xlu0 %626 }
 0x152   :  { %7599 = vst [vmem:[#allocation51_spill] sm:$0xff] %v4949_v54  ;;  %v690_v0 = vsel %vm672_vm3, %v611_v24, %v4949_v54  ;;  %1024 = vrot.lane.b32.xlu1 %v4930_v13, %s3843_s30 }
 0x153   :  { %v733_v35 = vmul.f32 %v4684_v50, %v690_v0  ;;  %1010 = vrot.lane.b32.xlu0 %v4850_v15, %s3843_s30 }
 0x154   :  { %v4967_v23 = vpop.permute.xlu1 %658 }
 0x155   :  { %7600 = vst [vmem:[#allocation52_spill] sm:$0xff] %v4967_v23  ;;  %1949 = vmatprep.subr.mxu0 %v733_v35  ;;  %v4969_v11 = vpop.permute.xlu0 %1228  ;;  %v698_v1 = vsel %vm672_vm3, %v4967_v23, %v611_v24  ;;  %v4987_v24 = vld [vmem:[%s7437_s0 + $0x10] sm:$0xff] }
 0x156   :  { %7601 = vst [vmem:[#allocation53_spill] sm:$0xff] %v4969_v11  ;;  %v1267_v0 = vsel %vm1256_vm4, %v1213_v30, %v4969_v11  ;;  %1406 = vrot.lane.b32.xlu1 %v3779_v7, %s3844_s14  ;;  %v732_v35 = vmul.f32 %v4701_v21, %v698_v1 }
 0x157   :  { %v1321_v6 = vmul.f32 %v4735_v36, %v1267_v0  ;;  %1040 = vrot.lane.b32.xlu0 %v4987_v24, %s3843_s30  ;;  %v5002_v0 = vld [vmem:[%s7437_s0 + $0xf0] sm:$0xff] }
 0x158   :  { %v609_v33 = vpop.permute.xlu1 %608  ;;  %1950 = vmatpush2.msra.mxu0 %v732_v35 }
 0x159   :  { %2036 = vmatprep.subr.mxu1 %v1321_v6  ;;  %v4991_v11 = vpop.permute.xlu0 %1196 }
 0x15a   :  { %7602 = vst [vmem:[#allocation54_spill] sm:$0xff] %v4991_v11  ;;  %v1275_v7 = vsel %vm1256_vm4, %v4991_v11, %v1213_v30  ;;  %1008 = vrot.lane.b32.xlu1 %v4901_v60, %s3843_s30  ;;  %v3782_v11 = vld [vmem:[%s7437_s0 + $0xe0] sm:$0xff] }
 0x15b   :  { %v1320_v1 = vmul.f32 %v4756_v20, %v1275_v7  ;;  %1422 = vrot.lane.b32.xlu0 %v5002_v0, %s3844_s14 }
 0x15c   :  { %v1211_v6 = vpop.permute.xlu1 %1210 }
 0x15d   :  { %2037 = vmatpush2.msra.mxu1 %v1320_v1  ;;  %v5006_v35 = vpop.permute.xlu0 %624 }
 0x15e   :  { %7603 = vst [vmem:[#allocation55_spill] sm:$0xff] %v5006_v35  ;;  %v689_v30 = vsel %vm672_vm3, %v609_v33, %v5006_v35  ;;  %286 = vrot.lane.b32.xlu1 %v5002_v0, %s3838_s15 }
 0x15f   :  { %v729_v7 = vmul.f32 %v4684_v50, %v689_v30  ;;  %1390 = vrot.lane.b32.xlu0 %v3782_v11, %s3844_s14  ;;  %v5031_v50 = vld [vmem:[%s7437_s0 + $0xd0] sm:$0xff] }
 0x160   :  { %v5018_v9 = vpop.permute.xlu1 %656 }
 0x161   :  { %7604 = vst [vmem:[#allocation56_spill] sm:$0xff] %v5018_v9  ;;  %1951 = vmatprep.subr.mxu0 %v729_v7  ;;  %v5020_v1 = vpop.permute.xlu0 %1226  ;;  %v697_v4 = vsel %vm672_vm3, %v5018_v9, %v609_v33  ;;  %v3784_v33 = vld [vmem:[%s7437_s0 + $0xc8] sm:$0xff] }
 0x162   :  { %7605 = vst [vmem:[#allocation57_spill] sm:$0xff] %v5020_v1  ;;  %v1266_v12 = vsel %vm1256_vm4, %v1211_v6, %v5020_v1  ;;  %1420 = vrot.lane.b32.xlu1 %v5031_v50, %s3844_s14  ;;  %v728_v11 = vmul.f32 %v4701_v21, %v697_v4  ;;  %v3737_v7 = vld [vmem:[%s7438_s5 + $0x8] sm:$0xf] }
 0x163   :  { %v1317_v30 = vmul.f32 %v4735_v36, %v1266_v12  ;;  %1404 = vrot.lane.b32.xlu0 %v3784_v33, %s3844_s14  ;;  %v5054_v4 = vrot.slane %v3737_v7, %v4242_v56 }
 0x164   :  { %v439_v1 = vpop.permute.xlu1 %438  ;;  %1952 = vmatpush2.msra.mxu0 %v728_v11  ;;  %v3785_v11 = vld [vmem:[%s7437_s0 + $0xc0] sm:$0xff] }
 0x165   :  { %2038 = vmatprep.subr.mxu1 %v1317_v30  ;;  %v5044_v28 = vpop.permute.xlu0 %1194 }
 0x166   :  { %7606 = vst [vmem:[#allocation58_spill] sm:$0xff] %v5044_v28  ;;  %v1274_v21 = vsel %vm1256_vm4, %v5044_v28, %v1211_v6  ;;  %284 = vrot.lane.b32.xlu1 %v5031_v50, %s3838_s15 }
 0x167   :  { %v1316_v12 = vmul.f32 %v4756_v20, %v1274_v21  ;;  %1388 = vrot.lane.b32.xlu0 %v3785_v11, %s3844_s14  ;;  %v5068_v21 = vld [vmem:[%s7437_s0 + $0xb0] sm:$0xff]  ;;  %v5074_v11 = vrot.slane %v3737_v7, %v4253_v58 }
 0x168   :  { %v1209_v30 = vpop.permute.xlu1 %1208 }
 0x169   :  { %2039 = vmatpush2.msra.mxu1 %v1316_v12  ;;  %v5060_v33 = vpop.permute.xlu0 %454  ;;  %v3787_v12 = vld [vmem:[%s7437_s0 + $0xa8] sm:$0xff] }
 0x16a   :  { %7607 = vst [vmem:[#allocation59_spill] sm:$0xff] %v5060_v33  ;;  %v512_v6 = vsel %vm488_vm5, %v439_v1, %v5060_v33  ;;  %1418 = vrot.lane.b32.xlu1 %v5068_v21, %s3844_s14  ;;  %v5147_v33 = vld [vmem:[%s7437_s0 + $0x70] sm:$0xff] }
 0x16b   :  { %v573_v28 = vmul.f32 %v5054_v4, %v512_v6  ;;  %1402 = vrot.lane.b32.xlu0 %v3787_v12, %s3844_s14 }
 0x16c   :  { %v5080_v49 = vpop.permute.xlu1 %486 }
 0x16d   :  { %7608 = vst [vmem:[#allocation60_spill] sm:$0xff] %v5080_v49  ;;  %1953 = vmatprep.subr.mxu0 %v573_v28  ;;  %v5082_v26 = vpop.permute.xlu0 %1224  ;;  %v520_v14 = vsel %vm488_vm5, %v5080_v49, %v439_v1  ;;  %v3788_v28 = vld [vmem:[%s7437_s0 + $0xa0] sm:$0xff] }
 0x16e   :  { %7609 = vst [vmem:[#allocation61_spill] sm:$0xff] %v5082_v26  ;;  %v1265_v7 = vsel %vm1256_vm4, %v1209_v30, %v5082_v26  ;;  %282 = vrot.lane.b32.xlu1 %v5068_v21, %s3838_s15  ;;  %v572_v6 = vmul.f32 %v5074_v11, %v520_v14  ;;  %v5106_v14 = vld [vmem:[%s7437_s0 + $0x90] sm:$0xff] }
 0x16f   :  { %v1313_v12 = vmul.f32 %v4735_v36, %v1265_v7  ;;  %1386 = vrot.lane.b32.xlu0 %v3788_v28, %s3844_s14  ;;  %v3790_v7 = vld [vmem:[%s7437_s0 + $0x88] sm:$0xff] }
 0x170   :  { %v437_v8 = vpop.permute.xlu1 %436  ;;  %1954 = vmatpush2.msra.mxu0 %v572_v6 }
 0x171   :  { %2040 = vmatprep.subr.mxu1 %v1313_v12  ;;  %v5098_v1 = vpop.permute.xlu0 %1192 }
 0x172   :  { %7610 = vst [vmem:[#allocation62_spill] sm:$0xff] %v5098_v1  ;;  %v1273_v26 = vsel %vm1256_vm4, %v5098_v1, %v1209_v30  ;;  %1416 = vrot.lane.b32.xlu1 %v5106_v14, %s3844_s14  ;;  %v3740_v30 = vld [vmem:[%s7438_s5 + $0x18] sm:$0xf] }
 0x173   :  { %v1312_v36 = vmul.f32 %v4756_v20, %v1273_v26  ;;  %1400 = vrot.lane.b32.xlu0 %v3790_v7, %s3844_s14  ;;  %v5128_v26 = vrot.slane %v3740_v30, %v4242_v56 }
 0x174   :  { %v1039_v6 = vpop.permute.xlu1 %1038 }
 0x175   :  { %2041 = vmatpush2.msra.mxu1 %v1312_v36  ;;  %v5118_v12 = vpop.permute.xlu0 %452  ;;  %v3791_v36 = vld [vmem:[%s7437_s0 + $0x80] sm:$0xff] }
 0x176   :  { %7611 = vst [vmem:[#allocation63_spill] sm:$0xff] %v5118_v12  ;;  %v511_v28 = vsel %vm488_vm5, %v437_v8, %v5118_v12  ;;  %280 = vrot.lane.b32.xlu1 %v5106_v14, %s3838_s15 }
 0x177   :  { %v569_v20 = vmul.f32 %v5054_v4, %v511_v28  ;;  %1384 = vrot.lane.b32.xlu0 %v3791_v36, %s3844_s14 }
 0x178   :  { %v5134_v7 = vpop.permute.xlu1 %484 }
 0x179   :  { %7612 = vst [vmem:[#allocation64_spill] sm:$0xff] %v5134_v7  ;;  %1955 = vmatprep.subr.mxu0 %v569_v20  ;;  %v5136_v1 = vpop.permute.xlu0 %1054  ;;  %v519_v12 = vsel %vm488_vm5, %v5134_v7, %v437_v8  ;;  %v3793_v8 = vld [vmem:[%s7437_s0 + $0x68] sm:$0xff] }
 0x17a   :  { %7613 = vst [vmem:[#allocation65_spill] sm:$0xff] %v5136_v1  ;;  %v1088_v28 = vsel %vm1072_vm6, %v1039_v6, %v5136_v1  ;;  %1414 = vrot.lane.b32.xlu1 %v5147_v33, %s3844_s14  ;;  %v568_v20 = vmul.f32 %v5074_v11, %v519_v12  ;;  %v5158_v1 = vrot.slane %v3740_v30, %v4253_v58 }
 0x17b   :  { %v1157_v36 = vmul.f32 %v5128_v26, %v1088_v28  ;;  %1398 = vrot.lane.b32.xlu0 %v3793_v8, %s3844_s14 }
 0x17c   :  { %v435_v7 = vpop.permute.xlu1 %434  ;;  %1956 = vmatpush2.msra.mxu0 %v568_v20 }
 0x17d   :  { %2042 = vmatprep.subr.mxu1 %v1157_v36  ;;  %v5160_v49 = vpop.permute.xlu0 %1022 }
 0x17e   :  { %7614 = vst [vmem:[#allocation66_spill] sm:$0xff] %v5160_v49  ;;  %v1096_v12 = vsel %vm1072_vm6, %v5160_v49, %v1039_v6  ;;  %278 = vrot.lane.b32.xlu1 %v5147_v33, %s3838_s15  ;;  %v5178_v6 = vld [vmem:[%s7437_s0 + $0x50] sm:$0xff] }
 0x17f   :  { %1382 = vrot.lane.b32.xlu0 %v4858_v18, %s3844_s14  ;;  %v1156_v28 = vmul.f32 %v5158_v1, %v1096_v12  ;;  %v3795_v18 = vld [vmem:[%s7437_s0 + $0x48] sm:$0xff] }
 0x180   :  { %v1037_v8 = vpop.permute.xlu1 %1036 }
 0x181   :  { %2043 = vmatpush2.msra.mxu1 %v1156_v28  ;;  %v5170_v30 = vpop.permute.xlu0 %450 }
 0x182   :  { %7615 = vst [vmem:[#allocation67_spill] sm:$0xff] %v5170_v30  ;;  %v510_v20 = vsel %vm488_vm5, %v435_v7, %v5170_v30  ;;  %1412 = vrot.lane.b32.xlu1 %v5178_v6, %s3844_s14 }
 0x183   :  { %1396 = vrot.lane.b32.xlu0 %v3795_v18, %s3844_s14  ;;  %v565_v36 = vmul.f32 %v5054_v4, %v510_v20 }
 0x184   :  { %v5187_v12 = vpop.permute.xlu1 %482 }
 0x185   :  { %7616 = vst [vmem:[#allocation68_spill] sm:$0xff] %v5187_v12  ;;  %v518_v28 = vsel %vm488_vm5, %v5187_v12, %v435_v7  ;;  %1957 = vmatprep.subr.mxu0 %v565_v36  ;;  %v5192_v49 = vpop.permute.xlu0 %1052 }
 0x186   :  { %7617 = vst [vmem:[#allocation69_spill] sm:$0xff] %v5192_v49  ;;  %v1087_v30 = vsel %vm1072_vm6, %v1037_v8, %v5192_v49  ;;  %276 = vrot.lane.b32.xlu1 %v5178_v6, %s3838_s15  ;;  %v564_v18 = vmul.f32 %v5074_v11, %v518_v28 }
 0x187   :  { %1380 = vrot.lane.b32.xlu0 %v4909_v19, %s3844_s14  ;;  %v1153_v20 = vmul.f32 %v5128_v26, %v1087_v30 }
 0x188   :  { %v433_v54 = vpop.permute.xlu1 %432  ;;  %1958 = vmatpush2.msra.mxu0 %v564_v18 }
 0x189   :  { %2044 = vmatprep.subr.mxu1 %v1153_v20  ;;  %v5203_v7 = vpop.permute.xlu0 %1020 }
 0x18a   :  { %7618 = vst [vmem:[#allocation70_spill] sm:$0xff] %v5203_v7  ;;  %v1095_v36 = vsel %vm1072_vm6, %v5203_v7, %v1037_v8  ;;  %1410 = vrot.lane.b32.xlu1 %v4945_v61, %s3844_s14 }
 0x18b   :  { %1394 = vrot.lane.b32.xlu0 %v4879_v3, %s3844_s14  ;;  %v1152_v28 = vmul.f32 %v5158_v1, %v1095_v36 }
 0x18c   :  { %v1035_v19 = vpop.permute.xlu1 %1034 }
 0x18d   :  { %2045 = vmatpush2.msra.mxu1 %v1152_v28  ;;  %v5213_v30 = vpop.permute.xlu0 %448 }
 0x18e   :  { %7619 = vst [vmem:[#allocation71_spill] sm:$0xff] %v5213_v30  ;;  %v509_v18 = vsel %vm488_vm5, %v433_v54, %v5213_v30  ;;  %274 = vrot.lane.b32.xlu1 %v4945_v61, %s3838_s15  ;;  %v5328_v30 = vld [vmem:[%s7437_s0 + $0x58] sm:$0xff] }
 0x18f   :  { %1378 = vrot.lane.b32.xlu0 %v4850_v15, %s3844_s14  ;;  %v561_v8 = vmul.f32 %v5054_v4, %v509_v18 }
 0x190   :  { %v5223_v20 = vpop.permute.xlu1 %480 }
 0x191   :  { %7620 = vst [vmem:[#allocation72_spill] sm:$0xff] %v5223_v20  ;;  %v517_v3 = vsel %vm488_vm5, %v5223_v20, %v433_v54  ;;  %1959 = vmatprep.subr.mxu0 %v561_v8  ;;  %v5228_v36 = vpop.permute.xlu0 %1050 }
 0x192   :  { %7621 = vst [vmem:[#allocation73_spill] sm:$0xff] %v5228_v36  ;;  %v1086_v28 = vsel %vm1072_vm6, %v1035_v19, %v5228_v36  ;;  %1408 = vrot.lane.b32.xlu1 %v4987_v24, %s3844_s14  ;;  %v560_v15 = vmul.f32 %v5074_v11, %v517_v3 }
 0x193   :  { %1392 = vrot.lane.b32.xlu0 %v4930_v13, %s3844_s14  ;;  %v1149_v18 = vmul.f32 %v5128_v26, %v1086_v28 }
 0x194   :  { %v431_v7 = vpop.permute.xlu1 %430  ;;  %1960 = vmatpush2.msra.mxu0 %v560_v15 }
 0x195   :  { %2046 = vmatprep.subr.mxu1 %v1149_v18  ;;  %v5239_v54 = vpop.permute.xlu0 %1018 }
 0x196   :  { %7622 = vst [vmem:[#allocation74_spill] sm:$0xff] %v5239_v54  ;;  %v1094_v8 = vsel %vm1072_vm6, %v5239_v54, %v1035_v19  ;;  %272 = vrot.lane.b32.xlu1 %v4987_v24, %s3838_s15  ;;  %v5259_v19 = vld [vmem:[%s7437_s0 + $0xf8] sm:$0xff] }
 0x197   :  { %1376 = vrot.lane.b32.xlu0 %v4901_v60, %s3844_s14  ;;  %v1148_v3 = vmul.f32 %v5158_v1, %v1094_v8 }
 0x198   :  { %v1033_v13 = vpop.permute.xlu1 %1032 }
 0x199   :  { %2047 = vmatpush2.msra.mxu1 %v1148_v3  ;;  %v5249_v28 = vpop.permute.xlu0 %446 }
 0x19a   :  { %7623 = vst [vmem:[#allocation75_spill] sm:$0xff] %v5249_v28  ;;  %v508_v15 = vsel %vm488_vm5, %v431_v7, %v5249_v28  ;;  %101 = vrot.lane.b32.xlu1 %v5002_v0, %s3837_s25 }
 0x19b   :  { %886 = vrot.lane.b32.xlu0 %v5259_v19, %s3839_s18  ;;  %v557_v60 = vmul.f32 %v5054_v4, %v508_v15  ;;  %v5280_v15 = vld [vmem:[%s7437_s0 + $0xd8] sm:$0xff] }
 0x19c   :  { %v5264_v18 = vpop.permute.xlu1 %478 }
 0x19d   :  { %7624 = vst [vmem:[#allocation76_spill] sm:$0xff] %v5264_v18  ;;  %v516_v8 = vsel %vm488_vm5, %v5264_v18, %v431_v7  ;;  %1961 = vmatprep.subr.mxu0 %v557_v60  ;;  %v5269_v3 = vpop.permute.xlu0 %1048 }
 0x19e   :  { %7625 = vst [vmem:[#allocation77_spill] sm:$0xff] %v5269_v3  ;;  %v1085_v54 = vsel %vm1072_vm6, %v1033_v13, %v5269_v3  ;;  %99 = vrot.lane.b32.xlu1 %v5031_v50, %s3837_s25  ;;  %v556_v36 = vmul.f32 %v5074_v11, %v516_v8  ;;  %v5295_v8 = vld [vmem:[%s7437_s0 + $0xb8] sm:$0xff] }
 0x19f   :  { %884 = vrot.lane.b32.xlu0 %v5280_v15, %s3839_s18  ;;  %v1145_v7 = vmul.f32 %v5128_v26, %v1085_v54 }
 0x1a0   :  { %v429_v60 = vpop.permute.xlu1 %428  ;;  %1962 = vmatpush2.msra.mxu0 %v556_v36 }
 0x1a1   :  { %2048 = vmatprep.subr.mxu1 %v1145_v7  ;;  %v5285_v49 = vpop.permute.xlu0 %1016 }
 0x1a2   :  { %7626 = vst [vmem:[#allocation78_spill] sm:$0xff] %v5285_v49  ;;  %v1093_v3 = vsel %vm1072_vm6, %v5285_v49, %v1033_v13  ;;  %97 = vrot.lane.b32.xlu1 %v5068_v21, %s3837_s25  ;;  %v5310_v49 = vld [vmem:[%s7437_s0 + $0x98] sm:$0xff] }
 0x1a3   :  { %882 = vrot.lane.b32.xlu0 %v5295_v8, %s3839_s18  ;;  %v1144_v36 = vmul.f32 %v5158_v1, %v1093_v3 }
 0x1a4   :  { %v1031_v54 = vpop.permute.xlu1 %1030 }
 0x1a5   :  { %2049 = vmatpush2.msra.mxu1 %v1144_v36  ;;  %v5300_v7 = vpop.permute.xlu0 %444 }
 0x1a6   :  { %7627 = vst [vmem:[#allocation79_spill] sm:$0xff] %v5300_v7  ;;  %v507_v13 = vsel %vm488_vm5, %v429_v60, %v5300_v7  ;;  %95 = vrot.lane.b32.xlu1 %v5106_v14, %s3837_s25 }
 0x1a7   :  { %880 = vrot.lane.b32.xlu0 %v5310_v49, %s3839_s18  ;;  %v553_v3 = vmul.f32 %v5054_v4, %v507_v13 }
 0x1a8   :  { %v5315_v36 = vpop.permute.xlu1 %476 }
 0x1a9   :  { %7628 = vst [vmem:[#allocation80_spill] sm:$0xff] %v5315_v36  ;;  %v515_v28 = vsel %vm488_vm5, %v5315_v36, %v429_v60  ;;  %1963 = vmatprep.subr.mxu0 %v553_v3  ;;  %v5320_v7 = vpop.permute.xlu0 %1046  ;;  %v5336_v60 = vld [vmem:[%s7437_s0 + $0x78] sm:$0xff] }
 0x1aa   :  { %7629 = vst [vmem:[#allocation81_spill] sm:$0xff] %v5320_v7  ;;  %v1084_v18 = vsel %vm1072_vm6, %v1031_v54, %v5320_v7  ;;  %876 = vrot.lane.b32.xlu1 %v5328_v30, %s3839_s18  ;;  %v552_v13 = vmul.f32 %v5074_v11, %v515_v28  ;;  %v5349_v28 = vld [vmem:[%s7437_s0 + $0x18] sm:$0xff] }
 0x1ab   :  { %878 = vrot.lane.b32.xlu0 %v5336_v60, %s3839_s18  ;;  %v1141_v3 = vmul.f32 %v5128_v26, %v1084_v18  ;;  %v5356_v18 = vld [vmem:[%s7437_s0 + $0x38] sm:$0xff] }
 0x1ac   :  { %v427_v7 = vpop.permute.xlu1 %426  ;;  %1964 = vmatpush2.msra.mxu0 %v552_v13 }
 0x1ad   :  { %2050 = vmatprep.subr.mxu1 %v1141_v3  ;;  %v5341_v36 = vpop.permute.xlu0 %1014 }
 0x1ae   :  { %7630 = vst [vmem:[#allocation82_spill] sm:$0xff] %v5341_v36  ;;  %v1092_v20 = vsel %vm1072_vm6, %v5341_v36, %v1031_v54  ;;  %872 = vrot.lane.b32.xlu1 %v5349_v28, %s3839_s18 }
 0x1af   :  { %874 = vrot.lane.b32.xlu0 %v5356_v18, %s3839_s18  ;;  %v1140_v13 = vmul.f32 %v5158_v1, %v1092_v20 }
 0x1b0   :  { %v1029_v3 = vpop.permute.xlu1 %1028 }
 0x1b1   :  { %2051 = vmatpush2.msra.mxu1 %v1140_v13  ;;  %v5361_v54 = vpop.permute.xlu0 %442 }
 0x1b2   :  { %7631 = vst [vmem:[#allocation83_spill] sm:$0xff] %v5361_v54  ;;  %v506_v36 = vsel %vm488_vm5, %v427_v7, %v5361_v54  ;;  %652 = vrot.lane.b32.xlu1 %v5031_v50, %s3840_s22 }
 0x1b3   :  { %654 = vrot.lane.b32.xlu0 %v5002_v0, %s3840_s22  ;;  %v549_v12 = vmul.f32 %v5054_v4, %v506_v36 }
 0x1b4   :  { %v5371_v23 = vpop.permute.xlu1 %474 }
 0x1b5   :  { %7632 = vst [vmem:[#allocation84_spill] sm:$0xff] %v5371_v23  ;;  %v514_v20 = vsel %vm488_vm5, %v5371_v23, %v427_v7  ;;  %1965 = vmatprep.subr.mxu0 %v549_v12  ;;  %v5376_v13 = vpop.permute.xlu0 %1044 }
 0x1b6   :  { %7633 = vst [vmem:[#allocation85_spill] sm:$0xff] %v5376_v13  ;;  %v1083_v54 = vsel %vm1072_vm6, %v1029_v3, %v5376_v13  ;;  %648 = vrot.lane.b32.xlu1 %v5106_v14, %s3840_s22  ;;  %v548_v9 = vmul.f32 %v5074_v11, %v514_v20 }
 0x1b7   :  { %650 = vrot.lane.b32.xlu0 %v5068_v21, %s3840_s22  ;;  %v1137_v36 = vmul.f32 %v5128_v26, %v1083_v54 }
 0x1b8   :  { %v425_v35 = vpop.permute.xlu1 %424  ;;  %1966 = vmatpush2.msra.mxu0 %v548_v9 }
 0x1b9   :  { %2052 = vmatprep.subr.mxu1 %v1137_v36  ;;  %v5387_v12 = vpop.permute.xlu0 %1012 }
 0x1ba   :  { %7634 = vst [vmem:[#allocation86_spill] sm:$0xff] %v5387_v12  ;;  %v1091_v7 = vsel %vm1072_vm6, %v5387_v12, %v1029_v3  ;;  %644 = vrot.lane.b32.xlu1 %v5178_v6, %s3840_s22 }
 0x1bb   :  { %646 = vrot.lane.b32.xlu0 %v5147_v33, %s3840_s22  ;;  %v1136_v20 = vmul.f32 %v5158_v1, %v1091_v7 }
 0x1bc   :  { %v1027_v13 = vpop.permute.xlu1 %1026 }
 0x1bd   :  { %2053 = vmatpush2.msra.mxu1 %v1136_v20  ;;  %v5397_v54 = vpop.permute.xlu0 %440 }
 0x1be   :  { %7635 = vst [vmem:[#allocation87_spill] sm:$0xff] %v5397_v54  ;;  %v505_v9 = vsel %vm488_vm5, %v425_v35, %v5397_v54  ;;  %640 = vrot.lane.b32.xlu1 %v4987_v24, %s3840_s22 }
 0x1bf   :  { %642 = vrot.lane.b32.xlu0 %v4945_v61, %s3840_s22  ;;  %v545_v3 = vmul.f32 %v5054_v4, %v505_v9  ;;  %v1560_v4 = vld [vmem:[%s7439_s1] sm:$0xff]  ;;  %v1566_v9 = vld [vmem:[%s7439_s1 + $0x30] sm:$0xff] }
 0x1c0   :  { %v5407_v36 = vpop.permute.xlu1 %472 }
 0x1c1   :  { %7636 = vst [vmem:[#allocation88_spill] sm:$0xff] %v5407_v36  ;;  %v513_v7 = vsel %vm488_vm5, %v5407_v36, %v425_v35  ;;  %1967 = vmatprep.subr.mxu0 %v545_v3  ;;  %v5412_v20 = vpop.permute.xlu0 %1042 }
 0x1c2   :  { %7637 = vst [vmem:[#allocation89_spill] sm:$0xff] %v5412_v20  ;;  %v1082_v12 = vsel %vm1072_vm6, %v1027_v13, %v5412_v20  ;;  %470 = vrot.lane.b32.xlu1 %v5002_v0, %s3842_s29  ;;  %v544_v54 = vmul.f32 %v5074_v11, %v513_v7  ;;  %v1565_v11 = vld [vmem:[%s7439_s1 + $0x28] sm:$0xff] }
 0x1c3   :  { %1254 = vrot.lane.b32.xlu0 %v5259_v19, %s3841_s23  ;;  %v1133_v35 = vmul.f32 %v5128_v26, %v1082_v12 }
 0x1c4   :  { %v1025_v3 = vpop.permute.xlu1 %1024  ;;  %1968 = vmatpush2.msra.mxu0 %v544_v54  ;;  %v1571_v54 = vld [vmem:[%s7439_s1 + $0x58] sm:$0xff] }
 0x1c5   :  { %2054 = vmatprep.subr.mxu1 %v1133_v35  ;;  %v5429_v20 = vpop.permute.xlu0 %1010  ;;  %1970 = vmatmul.mubr.f32.vlgmr.msra.gmra.mxu0 %v1560_v4  ;;  %v1570_v35 = vld [vmem:[%s7439_s1 + $0x50] sm:$0xff] }
 0x1c6   :  { %7638 = vst [vmem:[#allocation90_spill] sm:$0xff] %v5429_v20  ;;  %v1090_v0 = vsel %vm1072_vm6, %v5429_v20, %v1027_v13  ;;  %468 = vrot.lane.b32.xlu1 %v5031_v50, %s3842_s29  ;;  %1975 = vmatprep.mubr.f32.mxu0 %v1566_v9  ;;  %v3742_v13 = vld [vmem:[%s7438_s5 + $0x20] sm:$0xf]  ;;  %v7640_v9 = vld [vmem:[#allocation6_spill] sm:$0xff] }
 0x1c7   :  { %1252 = vrot.lane.b32.xlu0 %v5280_v15, %s3841_s23  ;;  %v1132_v12 = vmul.f32 %v5158_v1, %v1090_v0  ;;  %v5459_v0 = vsub.s32 2, %v7640_v9 }
 0x1c8   :  { %v1407_v7 = vpop.permute.xlu1 %1406 }
 0x1c9   :  { %2055 = vmatpush2.msra.mxu1 %v1132_v12  ;;  %v5448_v50 = vpop.permute.xlu0 %1040  ;;  %1976 = vmatmul.mubr.f32.gmra.mxu0 %v1565_v11  ;;  %v5466_v12 = vrot.slane %v3742_v13, %v4242_v56  ;;  %v1562_v56 = vld [vmem:[%s7439_s1 + $0x10] sm:$0xff] }
 0x1ca   :  { %7639 = vst [vmem:[#allocation91_spill] sm:$0xff] %v5448_v50  ;;  %v1081_v4 = vsel %vm1072_vm6, %v1025_v3, %v5448_v50  ;;  %466 = vrot.lane.b32.xlu1 %v5068_v21, %s3842_s29  ;;  %1981 = vmatprep.mubr.f32.mxu0 %v1571_v54  ;;  %v1576_v21 = vld [vmem:[%s7439_s1 + $0x80] sm:$0xff]  ;;  %v5474_v50 = vsub.s32 3, %v7640_v9 }
 0x1cb   :  { %1250 = vrot.lane.b32.xlu0 %v5295_v8, %s3841_s23  ;;  %v1129_v11 = vmul.f32 %v5128_v26, %v1081_v4  ;;  %v3804_v26 = vld [vmem:[%s7438_s5 + $0x4] sm:$0xf] }
 0x1cc   :  { %v5471_v54 = vpop.permute.xlu1 %1008  ;;  %v5485_v4 = vrot.slane %v3804_v26, %v5459_v0 }
 0x1cd   :  { %7641 = vst [vmem:[#allocation6_spill] sm:$0xff] %v5471_v54  ;;  %v1089_v20 = vsel %vm1072_vm6, %v5471_v54, %v1025_v3  ;;  %2056 = vmatprep.subr.mxu1 %v1129_v11  ;;  %v5479_v36 = vpop.permute.xlu0 %1422  ;;  %1982 = vmatmul.mubr.f32.gmra.mxu0 %v1570_v35  ;;  %v5494_v11 = vrot.slane %v3804_v26, %v5474_v50 }
 0x1ce   :  { %7642 = vst [vmem:[#allocation92_spill] sm:$0xff] %v5479_v36  ;;  %v1456_v9 = vsel %vm1440_vm7, %v1407_v7, %v5479_v36  ;;  %464 = vrot.lane.b32.xlu1 %v5106_v14, %s3842_s29  ;;  %v1128_v3 = vmul.f32 %v5158_v1, %v1089_v20  ;;  %1987 = vmatprep.mubr.f32.mxu0 %v1576_v21  ;;  %v1575_v1 = vld [vmem:[%s7439_s1 + $0x78] sm:$0xff]  ;;  %v7643_v20 = vld [vmem:[#allocation14_spill] sm:$0xff]  ;;  %v7644_v36 = vld [vmem:[#allocation13_spill] sm:$0xff] }
 0x1cf   :  { %1248 = vrot.lane.b32.xlu0 %v5310_v49, %s3841_s23  ;;  %v1525_v35 = vmul.f32 %v5466_v12, %v1456_v9  ;;  %v5503_v54 = vrot.slane %v3742_v13, %v4253_v58  ;;  %v1568_v13 = vld [vmem:[%s7439_s1 + $0x40] sm:$0xff] }
 0x1d0   :  { %v287_v14 = vpop.permute.xlu1 %286  ;;  %2057 = vmatpush2.msra.mxu1 %v1128_v3 }
 0x1d1   :  { %v312_v26 = vsel %vm304_vm0, %v287_v14, %v7643_v20  ;;  %v320_v21 = vsel %vm304_vm0, %v7644_v36, %v287_v14  ;;  %2099 = vmatprep.subr.mxu0 %v1525_v35  ;;  %v5514_v23 = vpop.permute.xlu0 %1390  ;;  %2059 = vmatmul.mubr.f32.vlgmr.msra.gmra.mxu1 %v1562_v56  ;;  %v7536_v56 = vmov 0.0   ;;  %v1567_v35 = vld [vmem:[%s7439_s1 + $0x38] sm:$0xff] }
 0x1d2   :  { %v390_v9 = vmul.f32 %v5485_v4, %v320_v21  ;;  %v1464_v3 = vsel %vm1440_vm7, %v5514_v23, %v1407_v7  ;;  %462 = vrot.lane.b32.xlu1 %v5147_v33, %s3842_s29  ;;  %v391_v20 = vmul.f32 %v5494_v11, %v312_v26  ;;  %1988 = vmatmul.mubr.f32.gmra.mxu0 %v1575_v1  ;;  %v1573_v33 = vld [vmem:[%s7439_s1 + $0x68] sm:$0xff]  ;;  %v1572_v21 = vld [vmem:[%s7439_s1 + $0x60] sm:$0xff] }
 0x1d3   :  { %v1524_v36 = vmul.f32 %v5503_v54, %v1464_v3  ;;  %1246 = vrot.lane.b32.xlu0 %v5336_v60, %s3841_s23  ;;  %2147 = vmatprep.mubr.f32.mxu0 %v7536_v56  ;;  %v7645_v3 = vld [vmem:[#allocation16_spill] sm:$0xff] }
 0x1d4   :  { %v5533_v14 = vpop.permute.xlu1 %1420  ;;  %2172 = vmatprep.subr.mxu1 %v391_v20  ;;  %2064 = vmatprep.mubr.f32.mxu1 %v1568_v13  ;;  %v7646_v20 = vld [vmem:[#allocation15_spill] sm:$0xff] }
 0x1d5   :  { %2100 = vmatpush1.msra.mxu0 %v1524_v36  ;;  %v1405_v7 = vpop.permute.xlu0 %1404  ;;  %2173 = vmatpush1.msra.mxu1 %v390_v9  ;;  %v1578_v9 = vld [vmem:[%s7439_s1 + $0x90] sm:$0xff] }
 0x1d6   :  { %v1455_v1 = vsel %vm1440_vm7, %v1405_v7, %v5533_v14  ;;  %460 = vrot.lane.b32.xlu1 %v5178_v6, %s3842_s29  ;;  %2065 = vmatmul.mubr.f32.gmra.mxu1 %v1567_v35 }
 0x1d7   :  { %1244 = vrot.lane.b32.xlu0 %v5328_v30, %s3841_s23  ;;  %v1521_v26 = vmul.f32 %v5466_v12, %v1455_v1  ;;  %2070 = vmatprep.mubr.f32.mxu1 %v1573_v33 }
 0x1d8   :  { %v285_v13 = vpop.permute.xlu1 %284 }
 0x1d9   :  { %v311_v6 = vsel %vm304_vm0, %v285_v13, %v7645_v3  ;;  %v319_v36 = vsel %vm304_vm0, %v7646_v20, %v285_v13  ;;  %2101 = vmatprep.subr.mxu0 %v1521_v26  ;;  %v5558_v35 = vpop.permute.xlu0 %1388  ;;  %v1577_v26 = vld [vmem:[%s7439_s1 + $0x88] sm:$0xff]  ;;  %v7648_v20 = vld [vmem:[#allocation19_spill] sm:$0xff] }
 0x1da   :  { %v386_v33 = vmul.f32 %v5485_v4, %v319_v36  ;;  %v1463_v1 = vsel %vm1440_vm7, %v5558_v35, %v1405_v7  ;;  %458 = vrot.lane.b32.xlu1 %v4945_v61, %s3842_s29  ;;  %v387_v56 = vmul.f32 %v5494_v11, %v311_v6  ;;  %2071 = vmatmul.mubr.f32.gmra.mxu1 %v1572_v21 }
 0x1db   :  { %v1520_v3 = vmul.f32 %v5503_v54, %v1463_v1  ;;  %1242 = vrot.lane.b32.xlu0 %v5356_v18, %s3841_s23  ;;  %2076 = vmatprep.mubr.f32.mxu1 %v1578_v9 }
 0x1dc   :  { %v5573_v13 = vpop.permute.xlu1 %1418  ;;  %2174 = vmatprep.subr.mxu1 %v387_v56  ;;  %v7647_v56 = vld [vmem:[#allocation20_spill] sm:$0xff] }
 0x1dd   :  { %2102 = vmatpush1.msra.mxu0 %v1520_v3  ;;  %v1403_v7 = vpop.permute.xlu0 %1402  ;;  %2175 = vmatpush1.msra.mxu1 %v386_v33 }
 0x1de   :  { %v1454_v61 = vsel %vm1440_vm7, %v1403_v7, %v5573_v13  ;;  %456 = vrot.lane.b32.xlu1 %v4987_v24, %s3842_s29  ;;  %2077 = vmatmul.mubr.f32.gmra.mxu1 %v1577_v26 }
 0x1df   :  { %1240 = vrot.lane.b32.xlu0 %v5349_v28, %s3841_s23  ;;  %v1517_v21 = vmul.f32 %v5466_v12, %v1454_v61  ;;  %2236 = vmatprep.mubr.f32.mxu1 %v4962_v29 }
 0x1e0   :  { %v283_v9 = vpop.permute.xlu1 %282 }
 0x1e1   :  { %v310_v6 = vsel %vm304_vm0, %v283_v9, %v7647_v56  ;;  %v318_v36 = vsel %vm304_vm0, %v7648_v20, %v283_v9  ;;  %2103 = vmatprep.subr.mxu0 %v1517_v21  ;;  %v5590_v33 = vpop.permute.xlu0 %1386  ;;  %v3846_v56 = vmov 0  }
 0x1e2   :  { %v382_v24 = vmul.f32 %v5485_v4, %v318_v36  ;;  %v1462_v1 = vsel %vm1440_vm7, %v5590_v33, %v1403_v7  ;;  %1068 = vrot.lane.b32.xlu1 %v5280_v15, %s3843_s30  ;;  %v383_v29 = vmul.f32 %v5494_v11, %v310_v6  ;;  %3770 = vset.pattern.permute.xlu0 %v3846_v56  ;;  %v7649_v6 = vld [vmem:[#allocation24_spill] sm:$0xff]  ;;  %v7650_v36 = vld [vmem:[#allocation23_spill] sm:$0xff] }
 0x1e3   :  { %v1516_v3 = vmul.f32 %v5503_v54, %v1462_v1  ;;  %1070 = vrot.lane.b32.xlu0 %v5259_v19, %s3843_s30  ;;  %3771 = vset.pattern.permute.xlu1 %v3846_v56 }
 0x1e4   :  { %v5602_v26 = vpop.permute.xlu1 %1416  ;;  %2176 = vmatprep.subr.mxu1 %v383_v29 }
 0x1e5   :  { %2104 = vmatpush1.msra.mxu0 %v1516_v3  ;;  %v1401_v61 = vpop.permute.xlu0 %1400  ;;  %2177 = vmatpush1.msra.mxu1 %v382_v24 }
 0x1e6   :  { %v1453_v7 = vsel %vm1440_vm7, %v1401_v61, %v5602_v26  ;;  %1066 = vrot.lane.b32.xlu1 %v5295_v8, %s3843_s30 }
 0x1e7   :  { %1438 = vrot.lane.b32.xlu0 %v5259_v19, %s3844_s14  ;;  %v1513_v21 = vmul.f32 %v5466_v12, %v1453_v7 }
 0x1e8   :  { %v281_v9 = vpop.permute.xlu1 %280 }
 0x1e9   :  { %v309_v20 = vsel %vm304_vm0, %v281_v9, %v7649_v6  ;;  %v317_v24 = vsel %vm304_vm0, %v7650_v36, %v281_v9  ;;  %2105 = vmatprep.subr.mxu0 %v1513_v21  ;;  %v5618_v1 = vpop.permute.xlu0 %1384  ;;  %v7653_v36 = vld [vmem:[#allocation28_spill] sm:$0xff] }
 0x1ea   :  { %7651 = vst [vmem:[#allocation14_spill] sm:$0xff] %v5618_v1  ;;  %v378_v29 = vmul.f32 %v5485_v4, %v317_v24  ;;  %v1461_v3 = vsel %vm1440_vm7, %v5618_v1, %v1401_v61  ;;  %1064 = vrot.lane.b32.xlu1 %v5310_v49, %s3843_s30  ;;  %v379_v7 = vmul.f32 %v5494_v11, %v309_v20 }
 0x1eb   :  { %v1512_v56 = vmul.f32 %v5503_v54, %v1461_v3  ;;  %1436 = vrot.lane.b32.xlu0 %v5280_v15, %s3844_s14  ;;  %v7654_v3 = vld [vmem:[#allocation27_spill] sm:$0xff] }
 0x1ec   :  { %v5630_v9 = vpop.permute.xlu1 %1414  ;;  %2178 = vmatprep.subr.mxu1 %v379_v7 }
 0x1ed   :  { %7652 = vst [vmem:[#allocation13_spill] sm:$0xff] %v5630_v9  ;;  %2106 = vmatpush1.msra.mxu0 %v1512_v56  ;;  %v1399_v21 = vpop.permute.xlu0 %1398  ;;  %2179 = vmatpush1.msra.mxu1 %v378_v29 }
 0x1ee   :  { %v1452_v61 = vsel %vm1440_vm7, %v1399_v21, %v5630_v9  ;;  %1062 = vrot.lane.b32.xlu1 %v5336_v60, %s3843_s30 }
 0x1ef   :  { %1434 = vrot.lane.b32.xlu0 %v5295_v8, %s3844_s14  ;;  %v1509_v6 = vmul.f32 %v5466_v12, %v1452_v61 }
 0x1f0   :  { %v279_v20 = vpop.permute.xlu1 %278 }
 0x1f1   :  { %v308_v24 = vsel %vm304_vm0, %v279_v20, %v7653_v36  ;;  %v316_v29 = vsel %vm304_vm0, %v7654_v3, %v279_v20  ;;  %2107 = vmatprep.subr.mxu0 %v1509_v6  ;;  %v5646_v7 = vpop.permute.xlu0 %1382  ;;  %v7657_v3 = vld [vmem:[#allocation32_spill] sm:$0xff] }
 0x1f2   :  { %7655 = vst [vmem:[#allocation16_spill] sm:$0xff] %v5646_v7  ;;  %v374_v56 = vmul.f32 %v5485_v4, %v316_v29  ;;  %v1460_v58 = vsel %vm1440_vm7, %v5646_v7, %v1399_v21  ;;  %1060 = vrot.lane.b32.xlu1 %v5328_v30, %s3843_s30  ;;  %v375_v61 = vmul.f32 %v5494_v11, %v308_v24 }
 0x1f3   :  { %v1508_v36 = vmul.f32 %v5503_v54, %v1460_v58  ;;  %1432 = vrot.lane.b32.xlu0 %v5310_v49, %s3844_s14 }
 0x1f4   :  { %v5658_v20 = vpop.permute.xlu1 %1412  ;;  %2180 = vmatprep.subr.mxu1 %v375_v61  ;;  %v7658_v61 = vld [vmem:[#allocation31_spill] sm:$0xff] }
 0x1f5   :  { %7656 = vst [vmem:[#allocation15_spill] sm:$0xff] %v5658_v20  ;;  %2108 = vmatpush1.msra.mxu0 %v1508_v36  ;;  %v1397_v6 = vpop.permute.xlu0 %1396  ;;  %2181 = vmatpush1.msra.mxu1 %v374_v56 }
 0x1f6   :  { %v1451_v21 = vsel %vm1440_vm7, %v1397_v6, %v5658_v20  ;;  %1058 = vrot.lane.b32.xlu1 %v5356_v18, %s3843_s30 }
 0x1f7   :  { %1430 = vrot.lane.b32.xlu0 %v5336_v60, %s3844_s14  ;;  %v1505_v58 = vmul.f32 %v5466_v12, %v1451_v21 }
 0x1f8   :  { %v277_v24 = vpop.permute.xlu1 %276 }
 0x1f9   :  { %v307_v29 = vsel %vm304_vm0, %v277_v24, %v7657_v3  ;;  %v315_v56 = vsel %vm304_vm0, %v7658_v61, %v277_v24  ;;  %2109 = vmatprep.subr.mxu0 %v1505_v58  ;;  %v5674_v36 = vpop.permute.xlu0 %1380 }
 0x1fa   :  { %7659 = vst [vmem:[#allocation20_spill] sm:$0xff] %v5674_v36  ;;  %v370_v20 = vmul.f32 %v5485_v4, %v315_v56  ;;  %v1459_v7 = vsel %vm1440_vm7, %v5674_v36, %v1397_v6  ;;  %1056 = vrot.lane.b32.xlu1 %v5349_v28, %s3843_s30  ;;  %v371_v21 = vmul.f32 %v5494_v11, %v307_v29  ;;  %v1870_v29 = vld [vmem:[%s7440_s2 + $0x10] sm:$0xff] }
 0x1fb   :  { %v1504_v3 = vmul.f32 %v5503_v54, %v1459_v7  ;;  %1428 = vrot.lane.b32.xlu0 %v5328_v30, %s3844_s14 }
 0x1fc   :  { %v5686_v24 = vpop.permute.xlu1 %1410  ;;  %2182 = vmatprep.subr.mxu1 %v371_v21  ;;  %v7661_v21 = vld [vmem:[#allocation35_spill] sm:$0xff] }
 0x1fd   :  { %7660 = vst [vmem:[#allocation19_spill] sm:$0xff] %v5686_v24  ;;  %2110 = vmatpush1.msra.mxu0 %v1504_v3  ;;  %v1395_v58 = vpop.permute.xlu0 %1394  ;;  %2183 = vmatpush1.msra.mxu1 %v370_v20  ;;  %v1871_v20 = vld [vmem:[%s7440_s2 + $0x18] sm:$0xff] }
 0x1fe   :  { %v1450_v6 = vsel %vm1440_vm7, %v1395_v58, %v5686_v24  ;;  %1424 = vrot.lane.b32.xlu1 %v5349_v28, %s3844_s14 }
 0x1ff   :  { %1426 = vrot.lane.b32.xlu0 %v5356_v18, %s3844_s14  ;;  %v1501_v7 = vmul.f32 %v5466_v12, %v1450_v6 }
 0x200   :  { %v275_v61 = vpop.permute.xlu1 %274 }
 0x201   :  { %v306_v56 = vsel %vm304_vm0, %v275_v61, %v4478_v59  ;;  %v314_v3 = vsel %vm304_vm0, %v7661_v21, %v275_v61  ;;  %2111 = vmatprep.subr.mxu0 %v1501_v7  ;;  %v5708_v24 = vpop.permute.xlu0 %1378  ;;  %v1869_v59 = vld [vmem:[%s7440_s2 + $0x8] sm:$0xff]  ;;  %v1868_v7 = vld [vmem:[%s7440_s2] sm:$0xff] }
 0x202   :  { %7662 = vst [vmem:[#allocation24_spill] sm:$0xff] %v5708_v24  ;;  %v366_v6 = vmul.f32 %v5485_v4, %v314_v3  ;;  %v1458_v36 = vsel %vm1440_vm7, %v5708_v24, %v1395_v58  ;;  %v367_v9 = vmul.f32 %v5494_v11, %v306_v56  ;;  %1884 = vperm.xlu1 %3771, %v1870_v29   ;;  %v7665_v56 = vld [vmem:[#allocation38_spill] sm:$0xff] }
 0x203   :  { %v1500_v1 = vmul.f32 %v5503_v54, %v1458_v36  ;;  %1889 = vperm.xlu0 %3770, %v1871_v20   ;;  %v7664_v20 = vld [vmem:[#allocation39_spill] sm:$0xff]  ;;  %v7670_v24 = vld [vmem:[#allocation18_spill] sm:$0xff] }
 0x204   :  { %v5719_v61 = vpop.permute.xlu1 %1408  ;;  %2184 = vmatprep.subr.mxu1 %v367_v9 }
 0x205   :  { %7663 = vst [vmem:[#allocation23_spill] sm:$0xff] %v5719_v61  ;;  %2112 = vmatpush1.msra.mxu0 %v1500_v1  ;;  %v1393_v21 = vpop.permute.xlu0 %1392  ;;  %2185 = vmatpush1.msra.mxu1 %v366_v6 }
 0x206   :  { %v1449_v58 = vsel %vm1440_vm7, %v1393_v21, %v5719_v61  ;;  %1879 = vperm.xlu1 %3771, %v1869_v59   ;;  %v7669_v61 = vld [vmem:[#allocation17_spill] sm:$0xff] }
 0x207   :  { %v1497_v36 = vmul.f32 %v5466_v12, %v1449_v58  ;;  %1874 = vperm.xlu0 %3770, %v1868_v7   ;;  %v3805_v58 = vld [vmem:[%s7438_s5 + $0x14] sm:$0xf] }
 0x208   :  { %v273_v29 = vpop.permute.xlu1 %272 }
 0x209   :  { %v305_v9 = vsel %vm304_vm0, %v273_v29, %v7664_v20  ;;  %v313_v3 = vsel %vm304_vm0, %v7665_v56, %v273_v29  ;;  %2113 = vmatprep.subr.mxu0 %v1497_v36  ;;  %v5734_v1 = vpop.permute.xlu0 %1376  ;;  %v5746_v20 = vrot.slane %v3805_v58, %v5459_v0  ;;  %v5749_v36 = vrot.slane %v3805_v58, %v5474_v50  ;;  %v7668_v56 = vld [vmem:[#allocation5_spill] sm:$0xff] }
 0x20a   :  { %7666 = vst [vmem:[#allocation28_spill] sm:$0xff] %v5734_v1  ;;  %v362_v6 = vmul.f32 %v5485_v4, %v313_v3  ;;  %v1457_v59 = vsel %vm1440_vm7, %v5734_v1, %v1393_v21  ;;  %v363_v12 = vmul.f32 %v5494_v11, %v305_v9  ;;  %v5754_v4 = vld [vmem:[%s7439_s1 + $0x20] sm:$0xff] }
 0x20b   :  { %v1496_v7 = vmul.f32 %v5503_v54, %v1457_v59  ;;  %7667 = vst [vmem:[#allocation27_spill] sm:$0xff] %v5754_v4  ;;  %v3806_v54 = vld [vmem:[%s7438_s5] sm:$0xf] }
 0x20c   :  { %v5760_v11 = vrot.slane %v3806_v54, %v5459_v0  ;;  %v102_v21 = vpop.permute.xlu1 %101  ;;  %2186 = vmatprep.subr.mxu1 %v363_v12  ;;  %v5763_v29 = vrot.slane %v3806_v54, %v5474_v50 }
 0x20d   :  { %v129_v9 = vsel %vm121_vm2, %v102_v21, %v4559_v16  ;;  %v137_v3 = vsel %vm121_vm2, %v7668_v56, %v102_v21  ;;  %2114 = vmatpush1.msra.mxu0 %v1496_v7  ;;  %v887_v59 = vpop.permute.xlu0 %886  ;;  %2187 = vmatpush1.msra.mxu1 %v362_v6  ;;  %v7671_v6 = vmov 0.0  }
 0x20e   :  { %v206_v58 = vmul.f32 %v5760_v11, %v137_v3  ;;  %v896_v12 = vsel %vm888_vm1, %v7669_v61, %v887_v59  ;;  %v920_v54 = vsel %vm888_vm1, %v887_v59, %v7670_v24  ;;  %v207_v1 = vmul.f32 %v5763_v29, %v129_v9  ;;  %3743 = vmatmul.mubr.msk.f32.vlgmr.msra.gmra.mxu0 %vm1892_vm8, %v5754_v4  ;;  %v5787_v61 = vld [vmem:[%s7439_s1 + $0x48] sm:$0xff] }
 0x20f   :  { %v974_v16 = vmul.f32 %v5746_v20, %v896_v12  ;;  %v975_v7 = vmul.f32 %v5749_v36, %v920_v54  ;;  %2153 = vmatprep.mubr.f32.mxu0 %v7671_v6  ;;  %v7672_v59 = vld [vmem:[#allocation21_spill] sm:$0xff]  ;;  %v7673_v12 = vld [vmem:[#allocation22_spill] sm:$0xff] }
 0x210   :  { %v100_v21 = vpop.permute.xlu1 %99  ;;  %2188 = vmatprep.subr.mxu1 %v207_v1 }
 0x211   :  { %v128_v24 = vsel %vm121_vm2, %v100_v21, %v4581_v63  ;;  %v136_v9 = vsel %vm121_vm2, %v4216_v48, %v100_v21  ;;  %2261 = vmatprep.subr.mxu0 %v975_v7  ;;  %v885_v56 = vpop.permute.xlu0 %884  ;;  %2189 = vmatpush1.msra.mxu1 %v206_v58  ;;  %v5811_v7 = vld [vmem:[%s7439_s1 + $0x70] sm:$0xff] }
 0x212   :  { %v202_v3 = vmul.f32 %v5760_v11, %v136_v9  ;;  %v895_v1 = vsel %vm888_vm1, %v7672_v59, %v885_v56  ;;  %v919_v54 = vsel %vm888_vm1, %v885_v56, %v7673_v12  ;;  %2262 = vmatpush1.msra.mxu0 %v974_v16  ;;  %v203_v63 = vmul.f32 %v5763_v29, %v128_v24  ;;  %v7674_v56 = vld [vmem:[#allocation25_spill] sm:$0xff] }
 0x213   :  { %v970_v4 = vmul.f32 %v5746_v20, %v895_v1  ;;  %v971_v48 = vmul.f32 %v5749_v36, %v919_v54  ;;  %3744 = vmatmul.mubr.msk.f32.gmra.mxu0 %vm1892_vm8, %v5787_v61  ;;  %v7675_v1 = vld [vmem:[#allocation26_spill] sm:$0xff] }
 0x214   :  { %v98_v58 = vpop.permute.xlu1 %97  ;;  %2190 = vmatprep.subr.mxu1 %v203_v63  ;;  %2159 = vmatprep.mubr.f32.mxu0 %v7671_v6 }
 0x215   :  { %v127_v16 = vsel %vm121_vm2, %v98_v58, %v4605_v47  ;;  %v135_v21 = vsel %vm121_vm2, %v4206_v44, %v98_v58  ;;  %2263 = vmatprep.subr.mxu0 %v971_v48  ;;  %v883_v24 = vpop.permute.xlu0 %882  ;;  %2191 = vmatpush1.msra.mxu1 %v202_v3  ;;  %v7676_v3 = vld [vmem:[#allocation7_spill] sm:$0xff]  ;;  %v7677_v48 = vld [vmem:[#allocation9_spill] sm:$0xff] }
 0x216   :  { %v198_v9 = vmul.f32 %v5760_v11, %v135_v21  ;;  %v894_v59 = vsel %vm888_vm1, %v7674_v56, %v883_v24  ;;  %v918_v12 = vsel %vm888_vm1, %v883_v24, %v7675_v1  ;;  %2264 = vmatpush1.msra.mxu0 %v970_v4  ;;  %v199_v47 = vmul.f32 %v5763_v29, %v127_v16  ;;  %v7678_v4 = vld [vmem:[#allocation10_spill] sm:$0xff]  ;;  %v5847_v24 = vld [vmem:[%s7439_s1 + $0x98] sm:$0xff]  ;;  %v7679_v1 = vld [vmem:[#allocation29_spill] sm:$0xff] }
 0x217   :  { %v966_v54 = vmul.f32 %v5746_v20, %v894_v59  ;;  %v967_v44 = vmul.f32 %v5749_v36, %v918_v12  ;;  %3745 = vmatmul.mubr.msk.f32.gmra.mxu0 %vm1892_vm8, %v5811_v7  ;;  %v131_v63 = vsel %vm121_vm2, %v4190_v40, %v7676_v3  ;;  %v133_v58 = vsel %vm121_vm2, %v4198_v42, %v7677_v48 }
 0x218   :  { %v124_v16 = vsel %vm121_vm2, %v7678_v4, %v4627_v38  ;;  %v96_v21 = vpop.permute.xlu1 %95  ;;  %2192 = vmatprep.subr.mxu1 %v199_v47  ;;  %2165 = vmatprep.mubr.f32.mxu0 %v7671_v6  ;;  %v125_v40 = vsel %vm121_vm2, %v7677_v48, %v4629_v37  ;;  %v7680_v47 = vld [vmem:[#allocation30_spill] sm:$0xff]  ;;  %v7681_v48 = vld [vmem:[#allocation8_spill] sm:$0xff] }
 0x219   :  { %v126_v42 = vsel %vm121_vm2, %v96_v21, %v4603_v52  ;;  %v134_v38 = vsel %vm121_vm2, %v4208_v45, %v96_v21  ;;  %2265 = vmatprep.subr.mxu0 %v967_v44  ;;  %v881_v56 = vpop.permute.xlu0 %880  ;;  %2193 = vmatpush1.msra.mxu1 %v198_v9  ;;  %v130_v45 = vsel %vm121_vm2, %v4192_v41, %v7681_v48 }
 0x21a   :  { %v194_v59 = vmul.f32 %v5760_v11, %v134_v38  ;;  %v893_v12 = vsel %vm888_vm1, %v7679_v1, %v881_v56  ;;  %v917_v37 = vsel %vm888_vm1, %v881_v56, %v7680_v47  ;;  %2266 = vmatpush1.msra.mxu0 %v966_v54  ;;  %v195_v52 = vmul.f32 %v5763_v29, %v126_v42  ;;  %v3807_v56 = vld [vmem:[%s7439_s1 + $0x18] sm:$0xff]  ;;  %v7683_v1 = vld [vmem:[#allocation37_spill] sm:$0xff] }
 0x21b   :  { %v132_v9 = vsel %vm121_vm2, %v4200_v43, %v7678_v4  ;;  %v962_v44 = vmul.f32 %v5746_v20, %v893_v12  ;;  %v963_v21 = vmul.f32 %v5749_v36, %v917_v37  ;;  %3746 = vmatmul.mubr.msk.f32.gmra.mxu0 %vm1892_vm8, %v5847_v24  ;;  %v190_v54 = vmul.f32 %v5760_v11, %v133_v58  ;;  %v7682_v4 = vld [vmem:[#allocation36_spill] sm:$0xff]  ;;  %v7684_v47 = vld [vmem:[#allocation33_spill] sm:$0xff]  ;;  %v7685_v37 = vld [vmem:[#allocation34_spill] sm:$0xff] }
 0x21c   :  { %v877_v42 = vpop.permute.xlu1 %876  ;;  %2194 = vmatprep.subr.mxu1 %v195_v52  ;;  %v191_v38 = vmul.f32 %v5763_v29, %v125_v40  ;;  %v187_v41 = vmul.f32 %v5763_v29, %v124_v16  ;;  %2325 = vmatprep.mubr.f32.mxu0 %v3807_v56  ;;  %v122_v43 = vsel %vm121_vm2, %v7681_v48, %v4659_v55 }
 0x21d   :  { %v123_v58 = vsel %vm121_vm2, %v7676_v3, %v4661_v31  ;;  %v891_v40 = vsel %vm888_vm1, %v7682_v4, %v877_v42  ;;  %2267 = vmatprep.subr.mxu0 %v963_v21  ;;  %v879_v16 = vpop.permute.xlu0 %878  ;;  %2195 = vmatpush1.msra.mxu1 %v194_v59  ;;  %v915_v12 = vsel %vm888_vm1, %v877_v42, %v7683_v1 }
 0x21e   :  { %v892_v55 = vsel %vm888_vm1, %v7684_v47, %v879_v16  ;;  %v916_v52 = vsel %vm888_vm1, %v879_v16, %v7685_v37  ;;  %2268 = vmatpush1.msra.mxu0 %v962_v44  ;;  %2196 = vmatprep.subr.mxu1 %v191_v38  ;;  %v182_v31 = vmul.f32 %v5760_v11, %v131_v63  ;;  %v3808_v44 = vld [vmem:[%s7438_s5 + $0xc] sm:$0xf] }
 0x21f   :  { %v186_v3 = vmul.f32 %v5760_v11, %v132_v9  ;;  %v958_v59 = vmul.f32 %v5746_v20, %v892_v55  ;;  %2197 = vmatpush1.msra.mxu1 %v190_v54  ;;  %v959_v48 = vmul.f32 %v5749_v36, %v916_v52  ;;  %v178_v21 = vmul.f32 %v5760_v11, %v130_v45 }
 0x220   :  { %v873_v42 = vpop.permute.xlu1 %872  ;;  %2198 = vmatprep.subr.mxu1 %v187_v41  ;;  %v183_v56 = vmul.f32 %v5763_v29, %v123_v58  ;;  %v5915_v38 = vrot.slane %v3808_v44, %v5459_v0  ;;  %v179_v63 = vmul.f32 %v5763_v29, %v122_v43  ;;  %v954_v9 = vmul.f32 %v5746_v20, %v891_v40  ;;  %v7686_v58 = vld [vmem:[#allocation40_spill] sm:$0xff]  ;;  %v7687_v29 = vld [vmem:[#allocation41_spill] sm:$0xff] }
 0x221   :  { %v889_v54 = vsel %vm888_vm1, %v4561_v46, %v873_v42  ;;  %2269 = vmatprep.subr.mxu0 %v959_v48  ;;  %v875_v11 = vpop.permute.xlu0 %874  ;;  %2199 = vmatpush1.msra.mxu1 %v186_v3  ;;  %v955_v45 = vmul.f32 %v5749_v36, %v915_v12  ;;  %v913_v41 = vsel %vm888_vm1, %v873_v42, %v4583_v51 }
 0x222   :  { %v890_v4 = vsel %vm888_vm1, %v7686_v58, %v875_v11  ;;  %v914_v43 = vsel %vm888_vm1, %v875_v11, %v7687_v29  ;;  %2270 = vmatpush1.msra.mxu0 %v958_v59  ;;  %2200 = vmatprep.subr.mxu1 %v183_v56  ;;  %v5935_v16 = vrot.slane %v3808_v44, %v5474_v50  ;;  %v3813_v11 = vld [vmem:[%s7438_s5 + $0x8] sm:$0xf]  ;;  %v7688_v29 = vld [vmem:[#allocation55_spill] sm:$0xff] }
 0x223   :  { %v950_v46 = vmul.f32 %v5746_v20, %v890_v4  ;;  %2271 = vmatprep.subr.mxu0 %v955_v45  ;;  %2201 = vmatpush1.msra.mxu1 %v182_v31  ;;  %v951_v40 = vmul.f32 %v5749_v36, %v914_v43  ;;  %v946_v1 = vmul.f32 %v5746_v20, %v889_v54 }
 0x224   :  { %2272 = vmatpush1.msra.mxu0 %v954_v9  ;;  %v653_v51 = vpop.permute.xlu1 %652  ;;  %2202 = vmatprep.subr.mxu1 %v179_v63  ;;  %v947_v47 = vmul.f32 %v5749_v36, %v913_v41  ;;  %v6005_v45 = vrot.slane %v3813_v11, %v5459_v0  ;;  %v6014_v58 = vrot.slane %v3813_v11, %v5474_v50 }
 0x225   :  { %2273 = vmatprep.subr.mxu0 %v951_v40  ;;  %v655_v12 = vpop.permute.xlu0 %654  ;;  %2203 = vmatpush1.msra.mxu1 %v178_v21  ;;  %v679_v55 = vsel %vm672_vm3, %v653_v51, %v4740_v62  ;;  %v687_v37 = vsel %vm672_vm3, %v4722_v32, %v653_v51  ;;  %v7689_v51 = vld [vmem:[#allocation56_spill] sm:$0xff] }
 0x226   :  { %v680_v52 = vsel %vm672_vm3, %v655_v12, %v4705_v22  ;;  %v688_v20 = vsel %vm672_vm3, %v4688_v34, %v655_v12  ;;  %2274 = vmatpush1.msra.mxu0 %v950_v46  ;;  %v754_v3 = vmul.f32 %v5915_v38, %v687_v37  ;;  %v755_v34 = vmul.f32 %v5935_v16, %v679_v55  ;;  %v7690_v12 = vld [vmem:[#allocation52_spill] sm:$0xff]  ;;  %v7691_v55 = vld [vmem:[#allocation51_spill] sm:$0xff] }
 0x227   :  { %v758_v31 = vmul.f32 %v5915_v38, %v688_v20  ;;  %2275 = vmatprep.subr.mxu0 %v947_v47  ;;  %v759_v36 = vmul.f32 %v5935_v16, %v680_v52 }
 0x228   :  { %2276 = vmatpush1.msra.mxu0 %v946_v1  ;;  %v649_v62 = vpop.permute.xlu1 %648 }
 0x229   :  { %v677_v32 = vsel %vm672_vm3, %v649_v62, %v4816_v27  ;;  %2204 = vmatprep.subr.mxu1 %v759_v36  ;;  %2277 = vmatprep.subr.mxu0 %v5259_v19  ;;  %v651_v22 = vpop.permute.xlu0 %650  ;;  %v685_v59 = vsel %vm672_vm3, %v4806_v17, %v649_v62  ;;  %v3809_v27 = vld [vmem:[%s7437_s0 + $0xf0] sm:$0xff] }
 0x22a   :  { %v678_v48 = vsel %vm672_vm3, %v651_v22, %v4780_v25  ;;  %v686_v21 = vsel %vm672_vm3, %v4770_v39, %v651_v22  ;;  %2205 = vmatpush2.msra.mxu1 %v758_v31  ;;  %2278 = vmatpush1.msra.mxu0 %v3809_v27  ;;  %v3810_v25 = vld [vmem:[%s7437_s0 + $0xd0] sm:$0xff]  ;;  %v746_v42 = vmul.f32 %v5915_v38, %v685_v59 }
 0x22b   :  { %v750_v19 = vmul.f32 %v5915_v38, %v686_v21  ;;  %2206 = vmatprep.subr.mxu1 %v755_v34  ;;  %2279 = vmatprep.subr.mxu0 %v5280_v15  ;;  %v751_v17 = vmul.f32 %v5935_v16, %v678_v48  ;;  %v747_v15 = vmul.f32 %v5935_v16, %v677_v32  ;;  %v3816_v62 = vld [vmem:[%s7437_s0 + $0x50] sm:$0xff]  ;;  %v7692_v32 = vld [vmem:[#allocation60_spill] sm:$0xff]  ;;  %v7693_v34 = vld [vmem:[#allocation59_spill] sm:$0xff] }
 0x22c   :  { %2207 = vmatpush2.msra.mxu1 %v754_v3  ;;  %2280 = vmatpush1.msra.mxu0 %v3810_v25  ;;  %v645_v39 = vpop.permute.xlu1 %644  ;;  %v7694_v21 = vld [vmem:[#allocation4_spill] sm:$0xff]  ;;  %v3817_v25 = vld [vmem:[%s7437_s0 + $0x30] sm:$0xff] }
 0x22d   :  { %v675_v56 = vsel %vm672_vm3, %v645_v39, %v4913_v10  ;;  %2208 = vmatprep.subr.mxu1 %v751_v17  ;;  %2281 = vmatprep.subr.mxu0 %v5295_v8  ;;  %v647_v44 = vpop.permute.xlu0 %646  ;;  %v683_v63 = vsel %vm672_vm3, %v4893_v5, %v645_v39  ;;  %v3811_v10 = vld [vmem:[%s7437_s0 + $0xb0] sm:$0xff] }
 0x22e   :  { %v676_v9 = vsel %vm672_vm3, %v647_v44, %v4862_v2  ;;  %v684_v54 = vsel %vm672_vm3, %v4842_v57, %v647_v44  ;;  %2209 = vmatpush2.msra.mxu1 %v750_v19  ;;  %2282 = vmatpush1.msra.mxu0 %v3811_v10  ;;  %v3812_v2 = vld [vmem:[%s7437_s0 + $0x90] sm:$0xff]  ;;  %v738_v4 = vmul.f32 %v5915_v38, %v683_v63  ;;  %v7696_v44 = vld [vmem:[#allocation64_spill] sm:$0xff]  ;;  %v7697_v63 = vld [vmem:[#allocation63_spill] sm:$0xff] }
 0x22f   :  { %v742_v8 = vmul.f32 %v5915_v38, %v684_v54  ;;  %2210 = vmatprep.subr.mxu1 %v747_v15  ;;  %2283 = vmatprep.subr.mxu0 %v5310_v49  ;;  %v743_v5 = vmul.f32 %v5935_v16, %v676_v9  ;;  %v3814_v49 = vld [vmem:[%s7438_s5 + $0x1c] sm:$0xf]  ;;  %v739_v40 = vmul.f32 %v5935_v16, %v675_v56  ;;  %v7695_v19 = vld [vmem:[#allocation42_spill] sm:$0xff] }
 0x230   :  { %2211 = vmatpush2.msra.mxu1 %v746_v42  ;;  %2284 = vmatpush1.msra.mxu0 %v3812_v2  ;;  %v641_v57 = vpop.permute.xlu1 %640  ;;  %v6011_v41 = vrot.slane %v3814_v49, %v5459_v0  ;;  %v6038_v31 = vrot.slane %v3814_v49, %v5474_v50  ;;  %v3818_v42 = vld [vmem:[%s7437_s0 + $0x10] sm:$0xff]  ;;  %v7698_v10 = vld [vmem:[#allocation43_spill] sm:$0xff] }
 0x231   :  { %v681_v43 = vsel %vm672_vm3, %v7688_v29, %v641_v57  ;;  %2212 = vmatprep.subr.mxu1 %v743_v5  ;;  %2285 = vmatprep.subr.mxu0 %v5336_v60  ;;  %v643_v46 = vpop.permute.xlu0 %642  ;;  %v673_v1 = vsel %vm672_vm3, %v641_v57, %v7689_v51  ;;  %v3815_v60 = vld [vmem:[%s7437_s0 + $0x70] sm:$0xff]  ;;  %v7699_v5 = vld [vmem:[#allocation44_spill] sm:$0xff] }
 0x232   :  { %v674_v47 = vsel %vm672_vm3, %v643_v46, %v7690_v12  ;;  %v682_v37 = vsel %vm672_vm3, %v7691_v55, %v643_v46  ;;  %2213 = vmatpush2.msra.mxu1 %v742_v8  ;;  %2286 = vmatpush1.msra.mxu0 %v3815_v60  ;;  %v730_v36 = vmul.f32 %v5915_v38, %v681_v43  ;;  %v7700_v29 = vld [vmem:[#allocation68_spill] sm:$0xff]  ;;  %v7701_v46 = vld [vmem:[#allocation67_spill] sm:$0xff]  ;;  %v7702_v12 = vld [vmem:[#allocation45_spill] sm:$0xff] }
 0x233   :  { %v734_v52 = vmul.f32 %v5915_v38, %v682_v37  ;;  %2214 = vmatprep.subr.mxu1 %v739_v40  ;;  %2287 = vmatprep.subr.mxu0 %v5328_v30  ;;  %v735_v20 = vmul.f32 %v5935_v16, %v674_v47  ;;  %v731_v38 = vmul.f32 %v5935_v16, %v673_v1  ;;  %v7703_v55 = vld [vmem:[#allocation46_spill] sm:$0xff] }
 0x234   :  { %2215 = vmatpush2.msra.mxu1 %v738_v4  ;;  %2288 = vmatpush1.msra.mxu0 %v3816_v62  ;;  %v471_v3 = vpop.permute.xlu1 %470  ;;  %v7704_v62 = vld [vmem:[#allocation72_spill] sm:$0xff] }
 0x235   :  { %v496_v22 = vsel %vm488_vm5, %v471_v3, %v7692_v32  ;;  %v504_v30 = vsel %vm488_vm5, %v7693_v34, %v471_v3  ;;  %2216 = vmatprep.subr.mxu1 %v735_v20  ;;  %2289 = vmatprep.subr.mxu0 %v5356_v18  ;;  %v1255_v59 = vpop.permute.xlu0 %1254  ;;  %v7705_v32 = vld [vmem:[#allocation71_spill] sm:$0xff] }
 0x236   :  { %v574_v48 = vmul.f32 %v6005_v45, %v504_v30  ;;  %v1264_v27 = vsel %vm1256_vm4, %v7694_v21, %v1255_v59  ;;  %v1288_v17 = vsel %vm1256_vm4, %v1255_v59, %v7695_v19  ;;  %2217 = vmatpush2.msra.mxu1 %v734_v52  ;;  %2290 = vmatpush1.msra.mxu0 %v3817_v25  ;;  %v7706_v59 = vld [vmem:[#allocation47_spill] sm:$0xff] }
 0x237   :  { %v1342_v18 = vmul.f32 %v6011_v41, %v1264_v27  ;;  %2218 = vmatprep.subr.mxu1 %v731_v38  ;;  %2291 = vmatprep.subr.mxu0 %v5349_v28  ;;  %v575_v16 = vmul.f32 %v6014_v58, %v496_v22  ;;  %v1343_v39 = vmul.f32 %v6038_v31, %v1288_v17 }
 0x238   :  { %2219 = vmatpush2.msra.mxu1 %v730_v36  ;;  %2292 = vmatpush1.msra.mxu0 %v3818_v42  ;;  %v469_v56 = vpop.permute.xlu1 %468 }
 0x239   :  { %v495_v15 = vsel %vm488_vm5, %v469_v56, %v7696_v44  ;;  %v503_v9 = vsel %vm488_vm5, %v7697_v63, %v469_v56  ;;  %2220 = vmatprep.subr.mxu1 %v575_v16  ;;  %2293 = vmatprep.subr.mxu0 %v1343_v39  ;;  %v1253_v28 = vpop.permute.xlu0 %1252  ;;  %v7709_v39 = vld [vmem:[#allocation75_spill] sm:$0xff] }
 0x23a   :  { %v570_v54 = vmul.f32 %v6005_v45, %v503_v9  ;;  %v1263_v8 = vsel %vm1256_vm4, %v7698_v10, %v1253_v28  ;;  %v1287_v2 = vsel %vm1256_vm4, %v1253_v28, %v7699_v5  ;;  %2221 = vmatpush2.msra.mxu1 %v574_v48  ;;  %2294 = vmatpush2.msra.mxu0 %v1342_v18  ;;  %v7707_v48 = vld [vmem:[#allocation48_spill] sm:$0xff]  ;;  %v7711_v9 = vld [vmem:[#allocation50_spill] sm:$0xff] }
 0x23b   :  { %v1338_v57 = vmul.f32 %v6011_v41, %v1263_v8  ;;  %v571_v11 = vmul.f32 %v6014_v58, %v495_v15  ;;  %v1339_v49 = vmul.f32 %v6038_v31, %v1287_v2  ;;  %v7708_v18 = vld [vmem:[#allocation76_spill] sm:$0xff]  ;;  %v7710_v15 = vld [vmem:[#allocation49_spill] sm:$0xff] }
 0x23c   :  { %v467_v4 = vpop.permute.xlu1 %466  ;;  %v7712_v2 = vld [vmem:[#allocation80_spill] sm:$0xff] }
 0x23d   :  { %v494_v43 = vsel %vm488_vm5, %v467_v4, %v7700_v29  ;;  %v502_v40 = vsel %vm488_vm5, %v7701_v46, %v467_v4  ;;  %2222 = vmatprep.subr.mxu1 %v571_v11  ;;  %2295 = vmatprep.subr.mxu0 %v1339_v49  ;;  %v1251_v51 = vpop.permute.xlu0 %1250  ;;  %v7713_v11 = vld [vmem:[#allocation79_spill] sm:$0xff] }
 0x23e   :  { %v566_v1 = vmul.f32 %v6005_v45, %v502_v40  ;;  %v1262_v47 = vsel %vm1256_vm4, %v7702_v12, %v1251_v51  ;;  %v1286_v37 = vsel %vm1256_vm4, %v1251_v51, %v7703_v55  ;;  %2223 = vmatpush2.msra.mxu1 %v570_v54  ;;  %2296 = vmatpush2.msra.mxu0 %v1338_v57  ;;  %v7715_v40 = vld [vmem:[#allocation54_spill] sm:$0xff] }
 0x23f   :  { %v1334_v60 = vmul.f32 %v6011_v41, %v1262_v47  ;;  %v567_v52 = vmul.f32 %v6014_v58, %v494_v43  ;;  %v1335_v20 = vmul.f32 %v6038_v31, %v1286_v37  ;;  %v7714_v43 = vld [vmem:[#allocation53_spill] sm:$0xff]  ;;  %v7716_v37 = vld [vmem:[#allocation84_spill] sm:$0xff] }
 0x240   :  { %v465_v36 = vpop.permute.xlu1 %464 }
 0x241   :  { %v493_v3 = vsel %vm488_vm5, %v465_v36, %v7704_v62  ;;  %v501_v22 = vsel %vm488_vm5, %v7705_v32, %v465_v36  ;;  %2224 = vmatprep.subr.mxu1 %v567_v52  ;;  %2297 = vmatprep.subr.mxu0 %v1335_v20  ;;  %v1249_v34 = vpop.permute.xlu0 %1248  ;;  %v7717_v52 = vld [vmem:[#allocation83_spill] sm:$0xff] }
 0x242   :  { %v562_v30 = vmul.f32 %v6005_v45, %v501_v22  ;;  %v1261_v38 = vsel %vm1256_vm4, %v7706_v59, %v1249_v34  ;;  %v1285_v21 = vsel %vm1256_vm4, %v1249_v34, %v7707_v48  ;;  %2225 = vmatpush2.msra.mxu1 %v566_v1  ;;  %2298 = vmatpush2.msra.mxu0 %v1334_v60  ;;  %v7719_v22 = vld [vmem:[#allocation58_spill] sm:$0xff] }
 0x243   :  { %v1330_v27 = vmul.f32 %v6011_v41, %v1261_v38  ;;  %v563_v19 = vmul.f32 %v6014_v58, %v493_v3  ;;  %v1331_v17 = vmul.f32 %v6038_v31, %v1285_v21  ;;  %v7718_v3 = vld [vmem:[#allocation57_spill] sm:$0xff]  ;;  %v7720_v21 = vld [vmem:[#allocation88_spill] sm:$0xff] }
 0x244   :  { %v463_v25 = vpop.permute.xlu1 %462 }
 0x245   :  { %v492_v16 = vsel %vm488_vm5, %v463_v25, %v7708_v18  ;;  %v500_v42 = vsel %vm488_vm5, %v7709_v39, %v463_v25  ;;  %2226 = vmatprep.subr.mxu1 %v563_v19  ;;  %2299 = vmatprep.subr.mxu0 %v1331_v17  ;;  %v1247_v56 = vpop.permute.xlu0 %1246  ;;  %v7721_v19 = vld [vmem:[#allocation87_spill] sm:$0xff] }
 0x246   :  { %v558_v44 = vmul.f32 %v6005_v45, %v500_v42  ;;  %v1260_v63 = vsel %vm1256_vm4, %v7710_v15, %v1247_v56  ;;  %v1284_v28 = vsel %vm1256_vm4, %v1247_v56, %v7711_v9  ;;  %2227 = vmatpush2.msra.mxu1 %v562_v30  ;;  %2300 = vmatpush2.msra.mxu0 %v1330_v27  ;;  %v3819_v18 = vld [vmem:[%s7438_s5 + $0x18] sm:$0xf]  ;;  %v7722_v42 = vld [vmem:[#allocation61_spill] sm:$0xff] }
 0x247   :  { %v1326_v54 = vmul.f32 %v6011_v41, %v1260_v63  ;;  %v559_v10 = vmul.f32 %v6014_v58, %v492_v16  ;;  %v1327_v8 = vmul.f32 %v6038_v31, %v1284_v28  ;;  %v6175_v16 = vrot.slane %v3819_v18, %v5459_v0 }
 0x248   :  { %v461_v5 = vpop.permute.xlu1 %460 }
 0x249   :  { %v491_v57 = vsel %vm488_vm5, %v461_v5, %v7712_v2  ;;  %v499_v49 = vsel %vm488_vm5, %v7713_v11, %v461_v5  ;;  %2228 = vmatprep.subr.mxu1 %v559_v10  ;;  %2301 = vmatprep.subr.mxu0 %v1327_v8  ;;  %v1245_v4 = vpop.permute.xlu0 %1244  ;;  %v7724_v10 = vld [vmem:[#allocation69_spill] sm:$0xff]  ;;  %v7725_v2 = vld [vmem:[#allocation70_spill] sm:$0xff] }
 0x24a   :  { %v554_v29 = vmul.f32 %v6005_v45, %v499_v49  ;;  %v1259_v46 = vsel %vm1256_vm4, %v7714_v43, %v1245_v4  ;;  %v1283_v51 = vsel %vm1256_vm4, %v1245_v4, %v7715_v40  ;;  %2229 = vmatpush2.msra.mxu1 %v558_v44  ;;  %2302 = vmatpush2.msra.mxu0 %v1326_v54  ;;  %v7723_v44 = vld [vmem:[#allocation62_spill] sm:$0xff]  ;;  %v3821_v40 = vld [vmem:[%s7439_s1] sm:$0xff] }
 0x24b   :  { %v1322_v1 = vmul.f32 %v6011_v41, %v1259_v46  ;;  %v555_v12 = vmul.f32 %v6014_v58, %v491_v57  ;;  %v1323_v47 = vmul.f32 %v6038_v31, %v1283_v51  ;;  %v6188_v54 = vrot.slane %v3819_v18, %v5474_v50 }
 0x24c   :  { %v459_v55 = vpop.permute.xlu1 %458 }
 0x24d   :  { %v490_v60 = vsel %vm488_vm5, %v459_v55, %v7716_v37  ;;  %v498_v20 = vsel %vm488_vm5, %v7717_v52, %v459_v55  ;;  %2230 = vmatprep.subr.mxu1 %v555_v12  ;;  %2303 = vmatprep.subr.mxu0 %v1323_v47  ;;  %v1243_v36 = vpop.permute.xlu0 %1242  ;;  %v7728_v47 = vld [vmem:[#allocation73_spill] sm:$0xff]  ;;  %v7729_v37 = vld [vmem:[#allocation74_spill] sm:$0xff] }
 0x24e   :  { %v550_v62 = vmul.f32 %v6005_v45, %v498_v20  ;;  %v1258_v32 = vsel %vm1256_vm4, %v7718_v3, %v1243_v36  ;;  %v1282_v34 = vsel %vm1256_vm4, %v1243_v36, %v7719_v22  ;;  %2231 = vmatpush2.msra.mxu1 %v554_v29  ;;  %2304 = vmatpush2.msra.mxu0 %v1322_v1  ;;  %v3820_v29 = vld [vmem:[%s7438_s5 + $0x20] sm:$0xf]  ;;  %v3822_v1 = vld [vmem:[%s7439_s1 + $0x30] sm:$0xff] }
 0x24f   :  { %v1318_v30 = vmul.f32 %v6011_v41, %v1258_v32  ;;  %v551_v59 = vmul.f32 %v6014_v58, %v490_v60  ;;  %v1319_v38 = vmul.f32 %v6038_v31, %v1282_v34  ;;  %v6208_v43 = vrot.slane %v3820_v29, %v5459_v0 }
 0x250   :  { %v457_v48 = vpop.permute.xlu1 %456  ;;  %v6211_v46 = vrot.slane %v3820_v29, %v5474_v50 }
 0x251   :  { %v489_v27 = vsel %vm488_vm5, %v457_v48, %v7720_v21  ;;  %v497_v17 = vsel %vm488_vm5, %v7721_v19, %v457_v48  ;;  %2232 = vmatprep.subr.mxu1 %v551_v59  ;;  %2305 = vmatprep.subr.mxu0 %v1319_v38  ;;  %v1241_v25 = vpop.permute.xlu0 %1240  ;;  %v3823_v59 = vld [vmem:[%s7439_s1 + $0x28] sm:$0xff]  ;;  %v3824_v48 = vld [vmem:[%s7439_s1 + $0x58] sm:$0xff] }
 0x252   :  { %v546_v39 = vmul.f32 %v6005_v45, %v497_v17  ;;  %v1257_v56 = vsel %vm1256_vm4, %v7722_v42, %v1241_v25  ;;  %v1281_v15 = vsel %vm1256_vm4, %v1241_v25, %v7723_v44  ;;  %2233 = vmatpush2.msra.mxu1 %v550_v62  ;;  %2306 = vmatpush2.msra.mxu0 %v1318_v30  ;;  %v7730_v62 = vld [vmem:[#allocation92_spill] sm:$0xff] }
 0x253   :  { %v1314_v63 = vmul.f32 %v6011_v41, %v1257_v56  ;;  %v547_v9 = vmul.f32 %v6014_v58, %v489_v27  ;;  %v1315_v28 = vmul.f32 %v6038_v31, %v1281_v15  ;;  %v7726_v41 = vld [vmem:[#allocation65_spill] sm:$0xff]  ;;  %v7727_v31 = vld [vmem:[#allocation66_spill] sm:$0xff] }
 0x254   :  { %v1069_v45 = vpop.permute.xlu1 %1068  ;;  %v7732_v27 = vld [vmem:[#allocation78_spill] sm:$0xff] }
 0x255   :  { %v1079_v8 = vsel %vm1072_vm6, %v7724_v10, %v1069_v45  ;;  %2234 = vmatprep.subr.mxu1 %v547_v9  ;;  %2307 = vmatprep.subr.mxu0 %v1315_v28  ;;  %v1071_v5 = vpop.permute.xlu0 %1070  ;;  %v1103_v57 = vsel %vm1072_vm6, %v1069_v45, %v7725_v2  ;;  %v3825_v15 = vld [vmem:[%s7439_s1 + $0x50] sm:$0xff] }
 0x256   :  { %v1080_v58 = vsel %vm1072_vm6, %v7726_v41, %v1071_v5  ;;  %v1104_v11 = vsel %vm1072_vm6, %v1071_v5, %v7727_v31  ;;  %2235 = vmatpush2.msra.mxu1 %v546_v39  ;;  %2308 = vmatpush2.msra.mxu0 %v1314_v63  ;;  %v1154_v12 = vmul.f32 %v6175_v16, %v1079_v8  ;;  %v7734_v28 = vld [vmem:[#allocation82_spill] sm:$0xff]  ;;  %v3827_v31 = vld [vmem:[%s7439_s1 + $0x78] sm:$0xff] }
 0x257   :  { %v1158_v49 = vmul.f32 %v6175_v16, %v1080_v58  ;;  %v1159_v4 = vmul.f32 %v6188_v54, %v1104_v11  ;;  %2237 = vmatmul.mubr.f32.vlgmr.msra.gmra.mxu1 %v3821_v40  ;;  %v1155_v20 = vmul.f32 %v6188_v54, %v1103_v57 }
 0x258   :  { %v1067_v51 = vpop.permute.xlu1 %1066  ;;  %2242 = vmatprep.mubr.f32.mxu1 %v3822_v1  ;;  %v7737_v1 = vld [vmem:[#allocation14_spill] sm:$0xff] }
 0x259   :  { %v1078_v55 = vsel %vm1072_vm6, %v7728_v47, %v1067_v51  ;;  %v1102_v60 = vsel %vm1072_vm6, %v1067_v51, %v7729_v37  ;;  %2309 = vmatprep.subr.mxu0 %v1159_v4  ;;  %v1439_v52 = vpop.permute.xlu0 %1438 }
 0x25a   :  { %v1150_v36 = vmul.f32 %v6175_v16, %v1078_v55  ;;  %v1448_v3 = vsel %vm1440_vm7, %v7730_v62, %v1439_v52  ;;  %v1472_v32 = vsel %vm1440_vm7, %v1439_v52, %v5514_v23  ;;  %2310 = vmatpush2.msra.mxu0 %v1158_v49  ;;  %v1151_v22 = vmul.f32 %v6188_v54, %v1102_v60  ;;  %v7731_v23 = vld [vmem:[#allocation77_spill] sm:$0xff]  ;;  %v7736_v49 = vld [vmem:[#allocation86_spill] sm:$0xff] }
 0x25b   :  { %v1526_v34 = vmul.f32 %v6208_v43, %v1448_v3  ;;  %2311 = vmatprep.subr.mxu0 %v1155_v20  ;;  %v1527_v30 = vmul.f32 %v6211_v46, %v1472_v32  ;;  %2243 = vmatmul.mubr.f32.gmra.mxu1 %v3823_v59  ;;  %v7738_v52 = vld [vmem:[#allocation89_spill] sm:$0xff] }
 0x25c   :  { %2312 = vmatpush2.msra.mxu0 %v1154_v12  ;;  %v1065_v38 = vpop.permute.xlu1 %1064  ;;  %2248 = vmatprep.mubr.f32.mxu1 %v3824_v48  ;;  %v7740_v32 = vld [vmem:[#allocation13_spill] sm:$0xff] }
 0x25d   :  { %v1077_v21 = vsel %vm1072_vm6, %v7731_v23, %v1065_v38  ;;  %v1101_v19 = vsel %vm1072_vm6, %v1065_v38, %v7732_v27  ;;  %2313 = vmatprep.subr.mxu0 %v1151_v22  ;;  %2366 = vmatprep.subr.mxu1 %v1527_v30  ;;  %v1437_v17 = vpop.permute.xlu0 %1436 }
 0x25e   :  { %v1146_v25 = vmul.f32 %v6175_v16, %v1077_v21  ;;  %v1447_v18 = vsel %vm1440_vm7, %v5533_v14, %v1437_v17  ;;  %v1471_v39 = vsel %vm1440_vm7, %v1437_v17, %v5558_v35  ;;  %2314 = vmatpush2.msra.mxu0 %v1150_v36  ;;  %2367 = vmatpush1.msra.mxu1 %v1526_v34  ;;  %v3826_v14 = vld [vmem:[%s7439_s1 + $0x80] sm:$0xff]  ;;  %v7733_v35 = vld [vmem:[#allocation81_spill] sm:$0xff]  ;;  %v7739_v36 = vld [vmem:[#allocation90_spill] sm:$0xff] }
 0x25f   :  { %v1522_v42 = vmul.f32 %v6208_v43, %v1447_v18  ;;  %v1147_v56 = vmul.f32 %v6188_v54, %v1101_v19  ;;  %v1523_v44 = vmul.f32 %v6211_v46, %v1471_v39  ;;  %2249 = vmatmul.mubr.f32.gmra.mxu1 %v3825_v15  ;;  %v7741_v34 = vld [vmem:[#allocation16_spill] sm:$0xff]  ;;  %v7742_v21 = vld [vmem:[#allocation91_spill] sm:$0xff]  ;;  %v7743_v19 = vld [vmem:[#allocation6_spill] sm:$0xff] }
 0x260   :  { %v1063_v63 = vpop.permute.xlu1 %1062  ;;  %2254 = vmatprep.mubr.f32.mxu1 %v3826_v14  ;;  %v7744_v39 = vld [vmem:[#allocation15_spill] sm:$0xff] }
 0x261   :  { %v1076_v9 = vsel %vm1072_vm6, %v7733_v35, %v1063_v63  ;;  %v1100_v45 = vsel %vm1072_vm6, %v1063_v63, %v7734_v28  ;;  %2315 = vmatprep.subr.mxu0 %v1147_v56  ;;  %2368 = vmatprep.subr.mxu1 %v1523_v44  ;;  %v1435_v10 = vpop.permute.xlu0 %1434  ;;  %v7745_v56 = vld [vmem:[#allocation20_spill] sm:$0xff] }
 0x262   :  { %v1142_v8 = vmul.f32 %v6175_v16, %v1076_v9  ;;  %v1446_v5 = vsel %vm1440_vm7, %v5573_v13, %v1435_v10  ;;  %v1470_v2 = vsel %vm1440_vm7, %v1435_v10, %v5590_v33  ;;  %2316 = vmatpush2.msra.mxu0 %v1146_v25  ;;  %2369 = vmatpush1.msra.mxu1 %v1522_v42  ;;  %v7735_v13 = vld [vmem:[#allocation85_spill] sm:$0xff]  ;;  %v7746_v9 = vld [vmem:[#allocation28_spill] sm:$0xff] }
 0x263   :  { %v1518_v57 = vmul.f32 %v6208_v43, %v1446_v5  ;;  %v1143_v41 = vmul.f32 %v6188_v54, %v1100_v45  ;;  %v1519_v58 = vmul.f32 %v6211_v46, %v1470_v2  ;;  %2255 = vmatmul.mubr.f32.gmra.mxu1 %v3827_v31  ;;  %v7747_v45 = vld [vmem:[#allocation19_spill] sm:$0xff]  ;;  %v3829_v31 = vld [vmem:[%s7439_s1 + $0x40] sm:$0xff] }
 0x264   :  { %v1061_v11 = vpop.permute.xlu1 %1060  ;;  %2414 = vmatprep.mubr.f32.mxu1 %v7671_v6 }
 0x265   :  { %v1075_v33 = vsel %vm1072_vm6, %v7735_v13, %v1061_v11  ;;  %v1099_v4 = vsel %vm1072_vm6, %v1061_v11, %v7736_v49  ;;  %2317 = vmatprep.subr.mxu0 %v1143_v41  ;;  %2370 = vmatprep.subr.mxu1 %v1519_v58  ;;  %v1433_v29 = vpop.permute.xlu0 %1432  ;;  %v3828_v41 = vld [vmem:[%s7439_s1 + $0x10] sm:$0xff]  ;;  %v3831_v49 = vld [vmem:[%s7439_s1 + $0x68] sm:$0xff] }
 0x266   :  { %v1138_v40 = vmul.f32 %v6175_v16, %v1075_v33  ;;  %v1445_v51 = vsel %vm1440_vm7, %v5602_v26, %v1433_v29  ;;  %v1469_v12 = vsel %vm1440_vm7, %v1433_v29, %v7737_v1  ;;  %2318 = vmatpush2.msra.mxu0 %v1142_v8  ;;  %2371 = vmatpush1.msra.mxu1 %v1518_v57  ;;  %v7748_v8 = vld [vmem:[#allocation24_spill] sm:$0xff]  ;;  %v3830_v33 = vld [vmem:[%s7439_s1 + $0x38] sm:$0xff]  ;;  %v3834_v29 = vld [vmem:[%s7439_s1 + $0x88] sm:$0xff] }
 0x267   :  { %v1514_v47 = vmul.f32 %v6208_v43, %v1445_v51  ;;  %v1139_v55 = vmul.f32 %v6188_v54, %v1099_v4  ;;  %v1515_v37 = vmul.f32 %v6211_v46, %v1469_v12  ;;  %v7750_v4 = vld [vmem:[#allocation27_spill] sm:$0xff] }
 0x268   :  { %v1059_v60 = vpop.permute.xlu1 %1058 }
 0x269   :  { %v1074_v20 = vsel %vm1072_vm6, %v7738_v52, %v1059_v60  ;;  %v1098_v26 = vsel %vm1072_vm6, %v1059_v60, %v7739_v36  ;;  %2319 = vmatprep.subr.mxu0 %v1139_v55  ;;  %2372 = vmatprep.subr.mxu1 %v1515_v37  ;;  %v1431_v62 = vpop.permute.xlu0 %1430 }
 0x26a   :  { %v1134_v3 = vmul.f32 %v6175_v16, %v1074_v20  ;;  %v1444_v22 = vsel %vm1440_vm7, %v7740_v32, %v1431_v62  ;;  %v1468_v30 = vsel %vm1440_vm7, %v1431_v62, %v7741_v34  ;;  %2320 = vmatpush2.msra.mxu0 %v1138_v40  ;;  %2373 = vmatpush1.msra.mxu1 %v1514_v47 }
 0x26b   :  { %v1510_v59 = vmul.f32 %v6208_v43, %v1444_v22  ;;  %v1135_v38 = vmul.f32 %v6188_v54, %v1098_v26  ;;  %v1511_v48 = vmul.f32 %v6211_v46, %v1468_v30 }
 0x26c   :  { %v1057_v23 = vpop.permute.xlu1 %1056 }
 0x26d   :  { %v1073_v27 = vsel %vm1072_vm6, %v7742_v21, %v1057_v23  ;;  %v1097_v17 = vsel %vm1072_vm6, %v1057_v23, %v7743_v19  ;;  %2321 = vmatprep.subr.mxu0 %v1135_v38  ;;  %2374 = vmatprep.subr.mxu1 %v1511_v48  ;;  %v1429_v25 = vpop.permute.xlu0 %1428 }
 0x26e   :  { %v1130_v18 = vmul.f32 %v6175_v16, %v1073_v27  ;;  %v1443_v42 = vsel %vm1440_vm7, %v7744_v39, %v1429_v25  ;;  %v1467_v44 = vsel %vm1440_vm7, %v1429_v25, %v7745_v56  ;;  %2322 = vmatpush2.msra.mxu0 %v1134_v3  ;;  %2375 = vmatpush1.msra.mxu1 %v1510_v59 }
 0x26f   :  { %v1506_v15 = vmul.f32 %v6208_v43, %v1443_v42  ;;  %v1131_v63 = vmul.f32 %v6188_v54, %v1097_v17  ;;  %v1507_v14 = vmul.f32 %v6211_v46, %v1467_v44  ;;  %v7749_v54 = vld [vmem:[#allocation23_spill] sm:$0xff] }
 0x270   :  { %v1425_v35 = vpop.permute.xlu1 %1424 }
 0x271   :  { %2323 = vmatprep.subr.mxu0 %v1131_v63  ;;  %2376 = vmatprep.subr.mxu1 %v1507_v14  ;;  %v1427_v16 = vpop.permute.xlu0 %1426  ;;  %v1465_v28 = vsel %vm1440_vm7, %v1425_v35, %v7746_v9  ;;  %v1441_v2 = vsel %vm1440_vm7, %v7749_v54, %v1425_v35 }
 0x272   :  { %v1442_v10 = vsel %vm1440_vm7, %v7747_v45, %v1427_v16  ;;  %v1466_v5 = vsel %vm1440_vm7, %v1427_v16, %v7748_v8  ;;  %2324 = vmatpush2.msra.mxu0 %v1130_v18  ;;  %2377 = vmatpush1.msra.mxu1 %v1506_v15  ;;  %v1499_v11 = vmul.f32 %v6211_v46, %v1465_v28 }
 0x273   :  { %v1502_v57 = vmul.f32 %v6208_v43, %v1442_v10  ;;  %2326 = vmatmul.mubr.f32.vlgmr.msra.gmra.mxu0 %v3828_v41  ;;  %v1503_v58 = vmul.f32 %v6211_v46, %v1466_v5  ;;  %v1498_v13 = vmul.f32 %v6208_v43, %v1441_v2  ;;  %v3832_v43 = vld [vmem:[%s7439_s1 + $0x60] sm:$0xff]  ;;  %v3833_v46 = vld [vmem:[%s7439_s1 + $0x90] sm:$0xff] }
 0x274   :  { %2331 = vmatprep.mubr.f32.mxu0 %v3829_v31 }
 0x275   :  { %2378 = vmatprep.subr.mxu1 %v1503_v58 }
 0x276   :  { %2379 = vmatpush1.msra.mxu1 %v1502_v57 }
 0x277   :  { %2332 = vmatmul.mubr.f32.gmra.mxu0 %v3830_v33  ;;  %2380 = vmatprep.subr.mxu1 %v1499_v11 }
 0x278   :  { %2381 = vmatpush1.msra.mxu1 %v1498_v13  ;;  %2337 = vmatprep.mubr.f32.mxu0 %v3831_v49 }
 0x279   :  { %3747 = vmatmul.mubr.msk.f32.vlgmr.msra.gmra.mxu1 %vm1892_vm8, %v7750_v4 }
 0x27a   :  { %2420 = vmatprep.mubr.f32.mxu1 %v7671_v6 }
 0x27b   :  { %2338 = vmatmul.mubr.f32.gmra.mxu0 %v3832_v43 }
 0x27c   :  { %2343 = vmatprep.mubr.f32.mxu0 %v3833_v46 }
 0x27d   :  { %3748 = vmatmul.mubr.msk.f32.gmra.mxu1 %vm1892_vm8, %v5787_v61  ;;  %v6384_v1 = vpop.permute.xlu1 %1884 }
 0x27e   :  { %2426 = vmatprep.mubr.f32.mxu1 %v7671_v6  ;;  %v6381_v51 = vpop.permute.xlu0 %1889 }
 0x27f   :  { %2344 = vmatmul.mubr.f32.gmra.mxu0 %v3834_v29 }
 0x281   :  { %3749 = vmatmul.mubr.msk.f32.gmra.mxu1 %vm1892_vm8, %v5811_v7  ;;  %v6390_v60 = vpop.permute.xlu1 %1879 }
 0x282   :  { %2432 = vmatprep.mubr.f32.mxu1 %v7671_v6  ;;  %v6386_v12 = vpop.permute.xlu0 %1874 }
 0x285   :  { %3750 = vmatmul.mubr.msk.f32.gmra.mxu1 %vm1892_vm8, %v5847_v24  ;;  %v1971_v40 = vpop.f32.mrf.mxu0 }
 0x286   :  { %3579 = vmatprep.mubr.f32.mxu1 %v7671_v6  ;;  %v1972_v55 = vadd.f32 %v1971_v40, %v6386_v12 }
 0x287   :  { %v1973_v61 = vpop.f32.mrf.mxu0 }
 0x288   :  { %v1974_v7 = vadd.f32 %v1973_v61, %v6386_v12 }
 0x289   :  { %v1977_v47 = vpop.f32.mrf.mxu0 }
 0x28a   :  { %v1978_v36 = vadd.f32 %v1977_v47, %v6390_v60 }
 0x28b   :  { %v1979_v37 = vpop.f32.mrf.mxu0 }
 0x28c   :  { %v1980_v3 = vadd.f32 %v1979_v37, %v6390_v60 }
 0x28d   :  { %v1983_v26 = vpop.f32.mrf.mxu0 }
 0x28e   :  { %v1984_v22 = vadd.f32 %v1983_v26, %v6384_v1 }
 0x28f   :  { %v1985_v30 = vpop.f32.mrf.mxu0 }
 0x290   :  { %v1986_v38 = vadd.f32 %v1985_v30, %v6384_v1 }
 0x291   :  { %v2060_v52 = vpop.f32.mrf.mxu1 }
 0x292   :  { %v2061_v24 = vadd.f32 %v2060_v52, %v1972_v55  ;;  %v1989_v17 = vpop.f32.mrf.mxu0 }
 0x293   :  { %v2062_v20 = vpop.f32.mrf.mxu1  ;;  %v1990_v16 = vadd.f32 %v1989_v17, %v6381_v51 }
 0x294   :  { %v2063_v62 = vadd.f32 %v2062_v20, %v1974_v7  ;;  %v1991_v25 = vpop.f32.mrf.mxu0 }
 0x295   :  { %v1992_v9 = vadd.f32 %v1991_v25, %v6381_v51 }
 0x296   :  { %v2066_v32 = vpop.f32.mrf.mxu1 }
 0x297   :  { %v2067_v34 = vadd.f32 %v2066_v32, %v1978_v36 }
 0x298   :  { %v2068_v59 = vpop.f32.mrf.mxu1 }
 0x299   :  { %v2069_v48 = vadd.f32 %v2068_v59, %v1980_v3 }
 0x29a   :  { %v2072_v23 = vpop.f32.mrf.mxu1 }
 0x29b   :  { %v2073_v21 = vadd.f32 %v2072_v23, %v1984_v22 }
 0x29c   :  { %v2074_v27 = vpop.f32.mrf.mxu1 }
 0x29d   :  { %v2075_v19 = vadd.f32 %v2074_v27, %v1986_v38 }
 0x29e   :  { %v2078_v15 = vpop.f32.mrf.mxu1 }
 0x29f   :  { %v2079_v5 = vadd.f32 %v2078_v15, %v1990_v16 }
 0x2a0   :  { %v2080_v45 = vpop.f32.mrf.mxu1 }
 0x2a1   :  { %v2081_v2 = vadd.f32 %v2080_v45, %v1992_v9 }
 0x2ce   :  { %v2149_v18 = vpop.f32.mrf.mxu0 }
 0x2cf   :  { %v6396_v39 = vadd.f32 %v2149_v18, %v2061_v24 }
 0x2d0   :  { %v2151_v42 = vpop.f32.mrf.mxu0 }
 0x2d1   :  { %v6398_v56 = vadd.f32 %v2151_v42, %v2063_v62 }
 0x2d3   :  { %v2155_v44 = vpop.f32.mrf.mxu0 }
 0x2d4   :  { %v6400_v63 = vadd.f32 %v2155_v44, %v2067_v34 }
 0x2d5   :  { %v2157_v14 = vpop.f32.mrf.mxu0 }
 0x2d6   :  { %v6402_v35 = vadd.f32 %v2157_v14, %v2069_v48 }
 0x2d7   :  { %v2161_v28 = vpop.f32.mrf.mxu0 }
 0x2d8   :  { %v2162_v10 = vadd.f32 %v2161_v28, %v2073_v21 }
 0x2d9   :  { %v2163_v8 = vpop.f32.mrf.mxu0 }
 0x2da   :  { %v2164_v54 = vadd.f32 %v2163_v8, %v2075_v19  ;;  %v6426_v19 = vmax.f32 %v2162_v10, 0.0 }
 0x2db   :  { %v2167_v57 = vpop.f32.mrf.mxu0 }
 0x2dc   :  { %v2168_v58 = vadd.f32 %v2167_v57, %v2079_v5  ;;  %v6435_v44 = vmax.f32 %v2164_v54, 0.0  ;;  %v6459_v54 = vmax.f32 %v6402_v35, 0.0  ;;  %v6473_v35 = vmax.f32 %v6396_v39, 0.0 }
 0x2dd   :  { %v2169_v41 = vpop.f32.mrf.mxu0 }
 0x2de   :  { %v2170_v31 = vadd.f32 %v2169_v41, %v2081_v2  ;;  %v6408_v13 = vmax.f32 %v2168_v58, 0.0 }
 0x2e0   :  { %v6406_v11 = vmax.f32 %v2170_v31, 0.0 }
 0x2e2   :  { %3199 = vrot.lane.b32.xlu1 %v6406_v11, %s3844_s14 }
 0x2e6   :  { %3191 = vrot.lane.b32.xlu1 %v6408_v13, %s3844_s14 }
 0x2ea   :  { %2775 = vrot.lane.b32.xlu1 %v6406_v11, %s3840_s22 }
 0x317   :  { %v2238_v33 = vpop.f32.mrf.mxu1 }
 0x318   :  { %v2239_v10 = vadd.f32 %v2238_v33, %v6386_v12 }
 0x319   :  { %v6416_v49 = vpop.f32.mrf.mxu1 }
 0x31b   :  { %v2244_v4 = vpop.f32.mrf.mxu1 }
 0x31c   :  { %v2245_v17 = vadd.f32 %v2244_v4, %v6390_v60  ;;  %v6484_v4 = vmax.f32 %v6398_v56, 0.0 }
 0x31d   :  { %v6418_v43 = vpop.f32.mrf.mxu1 }
 0x31f   :  { %v2250_v46 = vpop.f32.mrf.mxu1 }
 0x320   :  { %v2251_v62 = vadd.f32 %v2250_v46, %v6384_v1  ;;  %v2247_v46 = vadd.f32 %v6418_v43, %v6390_v60 }
 0x321   :  { %v2252_v29 = vpop.f32.mrf.mxu1 }
 0x322   :  { %v2253_v2 = vadd.f32 %v2252_v29, %v6384_v1  ;;  %v2241_v1 = vadd.f32 %v6416_v49, %v6386_v12 }
 0x323   :  { %v2256_v61 = vpop.f32.mrf.mxu1 }
 0x324   :  { %v2257_v30 = vadd.f32 %v2256_v61, %v6381_v51  ;;  %v3757_v61 = vld [vmem:[%s7438_s5 + $0x20] sm:$0xf] }
 0x325   :  { %v2258_v55 = vpop.f32.mrf.mxu1 }
 0x326   :  { %v2259_v15 = vadd.f32 %v2258_v55, %v6381_v51  ;;  %v6449_v51 = vmax.f32 %v6400_v63, 0.0  ;;  %v7751_v55 = vld [vmem:[#allocation11_spill] sm:$0xff] }
 0x333   :  { %v2327_v40 = vpop.f32.mrf.mxu0 }
 0x334   :  { %v2328_v5 = vadd.f32 %v2327_v40, %v2239_v10 }
 0x335   :  { %v2329_v47 = vpop.f32.mrf.mxu0 }
 0x336   :  { %v2330_v33 = vadd.f32 %v2329_v47, %v2241_v1 }
 0x337   :  { %v2333_v37 = vpop.f32.mrf.mxu0 }
 0x338   :  { %v2334_v18 = vadd.f32 %v2333_v37, %v2245_v17  ;;  %v6590_v37 = vrot.slane %v3757_v61, %v7751_v55 }
 0x339   :  { %v2335_v7 = vpop.f32.mrf.mxu0  ;;  %v2416_v52 = vpop.f32.mrf.mxu1 }
 0x33a   :  { %v2417_v57 = vadd.f32 %v2416_v52, %v2328_v5  ;;  %v2336_v29 = vadd.f32 %v2335_v7, %v2247_v46  ;;  %v7752_v7 = vld [vmem:[#allocation12_spill] sm:$0xff] }
 0x33b   :  { %v2339_v24 = vpop.f32.mrf.mxu0  ;;  %v2418_v20 = vpop.f32.mrf.mxu1  ;;  %v6593_v52 = vrot.slane %v3757_v61, %v7752_v7 }
 0x33c   :  { %v2340_v32 = vadd.f32 %v2339_v24, %v2251_v62  ;;  %v6466_v63 = vmax.f32 %v2417_v57, 0.0  ;;  %v2419_v39 = vadd.f32 %v2418_v20, %v2330_v33  ;;  %v6598_v24 = vld [vmem:[%s7438_s5 + $0xc] sm:$0xf] }
 0x33d   :  { %v2341_v36 = vpop.f32.mrf.mxu0  ;;  %v2422_v26 = vpop.f32.mrf.mxu1 }
 0x33e   :  { %v2423_v14 = vadd.f32 %v2422_v26, %v2334_v18  ;;  %v2342_v41 = vadd.f32 %v2341_v36, %v2253_v2  ;;  %v6492_v12 = vmax.f32 %v2419_v39, 0.0 }
 0x33f   :  { %v2424_v3 = vpop.f32.mrf.mxu1  ;;  %v2345_v22 = vpop.f32.mrf.mxu0 }
 0x340   :  { %v2346_v48 = vadd.f32 %v2345_v22, %v2257_v30  ;;  %v6442_v28 = vmax.f32 %v2423_v14, 0.0  ;;  %v2425_v49 = vadd.f32 %v2424_v3, %v2336_v29 }
 0x341   :  { %v2428_v34 = vpop.f32.mrf.mxu1  ;;  %v2347_v42 = vpop.f32.mrf.mxu0 }
 0x342   :  { %v2429_v59 = vadd.f32 %v2428_v34, %v2340_v32  ;;  %v2348_v9 = vadd.f32 %v2347_v42, %v2259_v15  ;;  %v6498_v56 = vmax.f32 %v2425_v49, 0.0  ;;  %v6617_v32 = vrot.slane %v6598_v24, %v7751_v55 }
 0x343   :  { %v2430_v38 = vpop.f32.mrf.mxu1  ;;  %v6646_v15 = vrot.slane %v6598_v24, %v7752_v7 }
 0x344   :  { %v6422_v23 = vmax.f32 %v2429_v59, 0.0  ;;  %v2431_v58 = vadd.f32 %v2430_v38, %v2342_v41 }
 0x345   :  { %v2434_v21 = vpop.f32.mrf.mxu1 }
 0x346   :  { %v2435_v27 = vadd.f32 %v2434_v21, %v2346_v48  ;;  %3205 = vrot.lane.b32.xlu1 %v6422_v23, %s3844_s14  ;;  %v6477_v31 = vmax.f32 %v2431_v58, 0.0 }
 0x347   :  { %v2436_v16 = vpop.f32.mrf.mxu1 }
 0x348   :  { %v6429_v25 = vmax.f32 %v2435_v27, 0.0  ;;  %v2437_v45 = vadd.f32 %v2436_v16, %v2348_v9 }
 0x34a   :  { %3207 = vrot.lane.b32.xlu0 %v6429_v25, %s3844_s14  ;;  %3189 = vrot.lane.b32.xlu1 %v6426_v19, %s3844_s14  ;;  %v6452_v8 = vmax.f32 %v2437_v45, 0.0 }
 0x34e   :  { %2767 = vrot.lane.b32.xlu0 %v6408_v13, %s3840_s22  ;;  %2773 = vrot.lane.b32.xlu1 %v6435_v44, %s3840_s22 }
 0x352   :  { %3197 = vrot.lane.b32.xlu0 %v6435_v44, %s3844_s14  ;;  %3203 = vrot.lane.b32.xlu1 %v6442_v28, %s3844_s14 }
 0x354   :  { %v3200_v60 = vpop.permute.xlu1 %3199 }
 0x356   :  { %2791 = vrot.lane.b32.xlu0 %v6452_v8, %s3840_s22  ;;  %3187 = vrot.lane.b32.xlu1 %v6449_v51, %s3844_s14 }
 0x358   :  { %v6564_v43 = vpop.permute.xlu1 %3191 }
 0x359   :  { %v3228_v20 = vsel %vm1440_vm7, %v6564_v43, %v3200_v60 }
 0x35a   :  { %2765 = vrot.lane.b32.xlu0 %v6426_v19, %s3840_s22  ;;  %2771 = vrot.lane.b32.xlu1 %v6459_v54, %s3840_s22  ;;  %v3267_v22 = vmul.f32 %v6593_v52, %v3228_v20 }
 0x35c   :  { %v6574_v40 = vpop.permute.xlu1 %2775 }
 0x35e   :  { %3195 = vrot.lane.b32.xlu0 %v6459_v54, %s3844_s14  ;;  %3201 = vrot.lane.b32.xlu1 %v6466_v63, %s3844_s14 }
 0x362   :  { %2789 = vrot.lane.b32.xlu0 %v6477_v31, %s3840_s22  ;;  %3185 = vrot.lane.b32.xlu1 %v6473_v35, %s3844_s14 }
 0x366   :  { %2763 = vrot.lane.b32.xlu0 %v6449_v51, %s3840_s22  ;;  %2769 = vrot.lane.b32.xlu1 %v6484_v4, %s3840_s22 }
 0x36a   :  { %3193 = vrot.lane.b32.xlu0 %v6484_v4, %s3844_s14  ;;  %2785 = vrot.lane.b32.xlu1 %v6492_v12, %s3840_s22 }
 0x36e   :  { %2787 = vrot.lane.b32.xlu0 %v6498_v56, %s3840_s22  ;;  %2673 = vrot.lane.b32.xlu1 %v6406_v11, %s3842_s29 }
 0x372   :  { %2761 = vrot.lane.b32.xlu0 %v6473_v35, %s3840_s22  ;;  %2689 = vrot.lane.b32.xlu1 %v6452_v8, %s3842_s29 }
 0x376   :  { %2783 = vrot.lane.b32.xlu0 %v6429_v25, %s3840_s22  ;;  %2671 = vrot.lane.b32.xlu1 %v6435_v44, %s3842_s29 }
 0x37a   :  { %2665 = vrot.lane.b32.xlu0 %v6408_v13, %s3842_s29  ;;  %2687 = vrot.lane.b32.xlu1 %v6477_v31, %s3842_s29 }
 0x37e   :  { %2781 = vrot.lane.b32.xlu0 %v6422_v23, %s3840_s22  ;;  %2669 = vrot.lane.b32.xlu1 %v6459_v54, %s3842_s29 }
 0x382   :  { %2663 = vrot.lane.b32.xlu0 %v6426_v19, %s3842_s29  ;;  %2685 = vrot.lane.b32.xlu1 %v6498_v56, %s3842_s29 }
 0x386   :  { %2779 = vrot.lane.b32.xlu0 %v6442_v28, %s3840_s22  ;;  %2667 = vrot.lane.b32.xlu1 %v6484_v4, %s3842_s29 }
 0x38a   :  { %2661 = vrot.lane.b32.xlu0 %v6449_v51, %s3842_s29  ;;  %2683 = vrot.lane.b32.xlu1 %v6492_v12, %s3842_s29 }
 0x38e   :  { %2777 = vrot.lane.b32.xlu0 %v6466_v63, %s3840_s22  ;;  %2571 = vrot.lane.b32.xlu1 %v6406_v11, %s3838_s15 }
 0x392   :  { %2659 = vrot.lane.b32.xlu0 %v6473_v35, %s3842_s29  ;;  %2587 = vrot.lane.b32.xlu1 %v6452_v8, %s3838_s15 }
 0x396   :  { %2681 = vrot.lane.b32.xlu0 %v6429_v25, %s3842_s29  ;;  %2569 = vrot.lane.b32.xlu1 %v6435_v44, %s3838_s15 }
 0x39a   :  { %2563 = vrot.lane.b32.xlu0 %v6408_v13, %s3838_s15  ;;  %2585 = vrot.lane.b32.xlu1 %v6477_v31, %s3838_s15 }
 0x39e   :  { %2679 = vrot.lane.b32.xlu0 %v6422_v23, %s3842_s29  ;;  %2567 = vrot.lane.b32.xlu1 %v6459_v54, %s3838_s15 }
 0x3a2   :  { %2561 = vrot.lane.b32.xlu0 %v6426_v19, %s3838_s15  ;;  %2583 = vrot.lane.b32.xlu1 %v6498_v56, %s3838_s15 }
 0x3a6   :  { %2677 = vrot.lane.b32.xlu0 %v6442_v28, %s3842_s29  ;;  %2565 = vrot.lane.b32.xlu1 %v6484_v4, %s3838_s15 }
 0x3aa   :  { %2559 = vrot.lane.b32.xlu0 %v6449_v51, %s3838_s15  ;;  %2581 = vrot.lane.b32.xlu1 %v6492_v12, %s3838_s15 }
 0x3ae   :  { %2675 = vrot.lane.b32.xlu0 %v6466_v63, %s3842_s29  ;;  %2469 = vrot.lane.b32.xlu1 %v6406_v11, %s3837_s25 }
 0x3b2   :  { %2557 = vrot.lane.b32.xlu0 %v6473_v35, %s3838_s15  ;;  %2485 = vrot.lane.b32.xlu1 %v6452_v8, %s3837_s25 }
 0x3b6   :  { %2579 = vrot.lane.b32.xlu0 %v6429_v25, %s3838_s15  ;;  %2467 = vrot.lane.b32.xlu1 %v6435_v44, %s3837_s25 }
 0x3b8   :  { %v6583_v47 = vpop.permute.xlu1 %3205 }
 0x3ba   :  { %2461 = vrot.lane.b32.xlu0 %v6408_v13, %s3837_s25  ;;  %2483 = vrot.lane.b32.xlu1 %v6477_v31, %s3837_s25 }
 0x3bc   :  { %v6603_v36 = vpop.permute.xlu1 %3189  ;;  %v6605_v26 = vpop.permute.xlu0 %3207 }
 0x3bd   :  { %v3224_v62 = vsel %vm1440_vm7, %v3200_v60, %v6605_v26 }
 0x3be   :  { %2577 = vrot.lane.b32.xlu0 %v6422_v23, %s3838_s15  ;;  %2465 = vrot.lane.b32.xlu1 %v6459_v54, %s3837_s25  ;;  %v3268_v3 = vmul.f32 %v6590_v37, %v3224_v62 }
 0x3c0   :  { %v6620_v34 = vpop.permute.xlu1 %2773  ;;  %3539 = vmatprep.subr.mxu1 %v3268_v3  ;;  %v2768_v30 = vpop.permute.xlu0 %2767 }
 0x3c1   :  { %v2804_v59 = vsel %vm672_vm3, %v2768_v30, %v6574_v40  ;;  %3540 = vmatpush1.msra.mxu1 %v3267_v22 }
 0x3c2   :  { %2459 = vrot.lane.b32.xlu0 %v6426_v19, %s3837_s25  ;;  %2481 = vrot.lane.b32.xlu1 %v6498_v56, %s3837_s25  ;;  %v2844_v38 = vmul.f32 %v6617_v32, %v2804_v59 }
 0x3c4   :  { %v6630_v48 = vpop.permute.xlu1 %3203  ;;  %3444 = vmatprep.subr.mxu0 %v2844_v38  ;;  %v3198_v21 = vpop.permute.xlu0 %3197 }
 0x3c5   :  { %v3223_v27 = vsel %vm1440_vm7, %v3198_v21, %v6583_v47  ;;  %v3227_v17 = vsel %vm1440_vm7, %v6603_v36, %v3198_v21 }
 0x3c6   :  { %v3263_v18 = vmul.f32 %v6593_v52, %v3227_v17  ;;  %2575 = vrot.lane.b32.xlu0 %v6442_v28, %s3838_s15  ;;  %2463 = vrot.lane.b32.xlu1 %v6484_v4, %s3837_s25  ;;  %v3264_v42 = vmul.f32 %v6590_v37, %v3223_v27 }
 0x3c8   :  { %v6648_v14 = vpop.permute.xlu1 %3187  ;;  %3541 = vmatprep.subr.mxu1 %v3264_v42  ;;  %v6650_v16 = vpop.permute.xlu0 %2791 }
 0x3c9   :  { %v2808_v9 = vsel %vm672_vm3, %v6650_v16, %v2768_v30  ;;  %3542 = vmatpush1.msra.mxu1 %v3263_v18 }
 0x3ca   :  { %v2843_v45 = vmul.f32 %v6646_v15, %v2808_v9  ;;  %2457 = vrot.lane.b32.xlu0 %v6449_v51, %s3837_s25  ;;  %2479 = vrot.lane.b32.xlu1 %v6492_v12, %s3837_s25  ;;  %v3289_v9 = vld [vmem:[%s7441_s3 + $0x10] sm:$0xff] }
 0x3cc   :  { %v6660_v10 = vpop.permute.xlu1 %2771  ;;  %3445 = vmatpush1.msra.mxu0 %v2843_v45  ;;  %v2766_v5 = vpop.permute.xlu0 %2765 }
 0x3cd   :  { %v2803_v2 = vsel %vm672_vm3, %v2766_v5, %v6620_v34 }
 0x3ce   :  { %2573 = vrot.lane.b32.xlu0 %v6466_v63, %s3838_s15  ;;  %3097 = vrot.lane.b32.xlu1 %v6406_v11, %s3841_s23  ;;  %v2840_v57 = vmul.f32 %v6617_v32, %v2803_v2 }
 0x3d0   :  { %v6670_v41 = vpop.permute.xlu1 %3201  ;;  %3446 = vmatprep.subr.mxu0 %v2840_v57  ;;  %v3196_v58 = vpop.permute.xlu0 %3195 }
 0x3d1   :  { %v3222_v1 = vsel %vm1440_vm7, %v3196_v58, %v6630_v48  ;;  %v3226_v33 = vsel %vm1440_vm7, %v6648_v14, %v3196_v58  ;;  %v6746_v58 = vrot.slane %v6598_v24, %v5459_v0 }
 0x3d2   :  { %v3259_v46 = vmul.f32 %v6593_v52, %v3226_v33  ;;  %2455 = vrot.lane.b32.xlu0 %v6473_v35, %s3837_s25  ;;  %3089 = vrot.lane.b32.xlu1 %v6408_v13, %s3841_s23  ;;  %v3260_v39 = vmul.f32 %v6590_v37, %v3222_v1 }
 0x3d4   :  { %v6684_v29 = vpop.permute.xlu1 %3185  ;;  %3543 = vmatprep.subr.mxu1 %v3260_v39  ;;  %v6686_v49 = vpop.permute.xlu0 %2789  ;;  %v6761_v39 = vld [vmem:[%s7438_s5 + $0x8] sm:$0xf] }
 0x3d5   :  { %v2807_v60 = vsel %vm672_vm3, %v6686_v49, %v2766_v5  ;;  %3544 = vmatpush1.msra.mxu1 %v3259_v46  ;;  %v6756_v46 = vrot.slane %v6598_v24, %v5474_v50  ;;  %v6773_v24 = vrot.slane %v6761_v39, %v7752_v7 }
 0x3d6   :  { %v2839_v61 = vmul.f32 %v6646_v15, %v2807_v60  ;;  %2477 = vrot.lane.b32.xlu0 %v6429_v25, %s3837_s25  ;;  %3095 = vrot.lane.b32.xlu1 %v6435_v44, %s3841_s23 }
 0x3d8   :  { %v6696_v20 = vpop.permute.xlu1 %2769  ;;  %3447 = vmatpush1.msra.mxu0 %v2839_v61  ;;  %v2764_v62 = vpop.permute.xlu0 %2763 }
 0x3d9   :  { %v2802_v3 = vsel %vm672_vm3, %v2764_v62, %v6660_v10 }
 0x3da   :  { %2475 = vrot.lane.b32.xlu0 %v6422_v23, %s3837_s25  ;;  %3087 = vrot.lane.b32.xlu1 %v6426_v19, %s3841_s23  ;;  %v2836_v22 = vmul.f32 %v6617_v32, %v2802_v3 }
 0x3dc   :  { %v6706_v30 = vpop.permute.xlu1 %2785  ;;  %3448 = vmatprep.subr.mxu0 %v2836_v22  ;;  %v3194_v59 = vpop.permute.xlu0 %3193 }
 0x3dd   :  { %v3221_v38 = vsel %vm1440_vm7, %v3194_v59, %v6670_v41  ;;  %v3225_v21 = vsel %vm1440_vm7, %v6684_v29, %v3194_v59 }
 0x3de   :  { %v3255_v27 = vmul.f32 %v6593_v52, %v3225_v21  ;;  %3105 = vrot.lane.b32.xlu0 %v6429_v25, %s3841_s23  ;;  %3093 = vrot.lane.b32.xlu1 %v6459_v54, %s3841_s23  ;;  %v3256_v17 = vmul.f32 %v6590_v37, %v3221_v38 }
 0x3e0   :  { %v6720_v18 = vpop.permute.xlu1 %2673  ;;  %3545 = vmatprep.subr.mxu1 %v3256_v17  ;;  %v6722_v42 = vpop.permute.xlu0 %2787 }
 0x3e1   :  { %v2806_v52 = vsel %vm672_vm3, %v6722_v42, %v2764_v62  ;;  %3546 = vmatpush1.msra.mxu1 %v3255_v27 }
 0x3e2   :  { %v2835_v45 = vmul.f32 %v6646_v15, %v2806_v52  ;;  %2473 = vrot.lane.b32.xlu0 %v6442_v28, %s3837_s25  ;;  %3085 = vrot.lane.b32.xlu1 %v6449_v51, %s3841_s23 }
 0x3e3   :  { %3758 = vmatmul.mubr.msk.f32.vlgmr.msra.gmra.mxu1 %vm3440_vm9, %v3289_v9 }
 0x3e4   :  { %v6736_v37 = vpop.permute.xlu1 %2689  ;;  %3449 = vmatpush1.msra.mxu0 %v2835_v45  ;;  %v2762_v5 = vpop.permute.xlu0 %2761 }
 0x3e5   :  { %v2801_v2 = vsel %vm672_vm3, %v2762_v5, %v6696_v20  ;;  %v2805_v57 = vsel %vm672_vm3, %v6706_v30, %v2762_v5 }
 0x3e6   :  { %v2831_v1 = vmul.f32 %v6646_v15, %v2805_v57  ;;  %3103 = vrot.lane.b32.xlu0 %v6422_v23, %s3841_s23  ;;  %3099 = vrot.lane.b32.xlu1 %v6466_v63, %s3841_s23  ;;  %v2832_v33 = vmul.f32 %v6617_v32, %v2801_v2 }
 0x3e8   :  { %v6763_v60 = vpop.permute.xlu1 %2671  ;;  %3450 = vmatprep.subr.mxu0 %v2832_v33  ;;  %v2784_v15 = vpop.permute.xlu0 %2783 }
 0x3e9   :  { %v2796_v61 = vsel %vm672_vm3, %v2784_v15, %v6650_v16  ;;  %v2800_v32 = vsel %vm672_vm3, %v6574_v40, %v2784_v15  ;;  %3451 = vmatpush1.msra.mxu0 %v2831_v1  ;;  %v6783_v16 = vrot.slane %v6761_v39, %v7751_v55 }
 0x3ea   :  { %v2845_v62 = vmul.f32 %v6746_v58, %v2800_v32  ;;  %2471 = vrot.lane.b32.xlu0 %v6466_v63, %s3837_s25  ;;  %3083 = vrot.lane.b32.xlu1 %v6473_v35, %s3841_s23  ;;  %v2846_v3 = vmul.f32 %v6756_v46, %v2796_v61 }
 0x3ec   :  { %v6785_v40 = vpop.permute.xlu1 %2687  ;;  %3586 = vmatprep.subr.mxu1 %v2846_v3  ;;  %v2666_v22 = vpop.permute.xlu0 %2665 }
 0x3ed   :  { %v2702_v59 = vsel %vm488_vm5, %v2666_v22, %v6720_v18  ;;  %v2706_v38 = vsel %vm488_vm5, %v6736_v37, %v2666_v22  ;;  %3587 = vmatpush1.msra.mxu1 %v2845_v62 }
 0x3ee   :  { %v2741_v21 = vmul.f32 %v6773_v24, %v2706_v38  ;;  %3101 = vrot.lane.b32.xlu0 %v6442_v28, %s3841_s23  ;;  %3003 = vrot.lane.b32.xlu1 %v6429_v25, %s3843_s30  ;;  %v2742_v27 = vmul.f32 %v6783_v16, %v2702_v59 }
 0x3f0   :  { %v6799_v17 = vpop.permute.xlu1 %2669  ;;  %3452 = vmatprep.subr.mxu0 %v2742_v27  ;;  %v2782_v9 = vpop.permute.xlu0 %2781 }
 0x3f1   :  { %v2795_v52 = vsel %vm672_vm3, %v2782_v9, %v6686_v49  ;;  %v2799_v45 = vsel %vm672_vm3, %v6620_v34, %v2782_v9  ;;  %3453 = vmatpush1.msra.mxu0 %v2741_v21 }
 0x3f2   :  { %v2841_v5 = vmul.f32 %v6746_v58, %v2799_v45  ;;  %3091 = vrot.lane.b32.xlu0 %v6484_v4, %s3841_s23  ;;  %2987 = vrot.lane.b32.xlu1 %v6408_v13, %s3843_s30  ;;  %v2842_v2 = vmul.f32 %v6756_v46, %v2795_v52 }
 0x3f4   :  { %v6813_v57 = vpop.permute.xlu1 %2685  ;;  %3588 = vmatprep.subr.mxu1 %v2842_v2  ;;  %v2664_v1 = vpop.permute.xlu0 %2663 }
 0x3f5   :  { %v2701_v49 = vsel %vm488_vm5, %v2664_v1, %v6763_v60  ;;  %v2705_v34 = vsel %vm488_vm5, %v6785_v40, %v2664_v1  ;;  %3589 = vmatpush1.msra.mxu1 %v2841_v5 }
 0x3f6   :  { %v2737_v33 = vmul.f32 %v6773_v24, %v2705_v34  ;;  %3113 = vrot.lane.b32.xlu0 %v6452_v8, %s3841_s23  ;;  %3001 = vrot.lane.b32.xlu1 %v6422_v23, %s3843_s30  ;;  %v2738_v15 = vmul.f32 %v6783_v16, %v2701_v49 }
 0x3f8   :  { %v6827_v61 = vpop.permute.xlu1 %2667  ;;  %3454 = vmatprep.subr.mxu0 %v2738_v15  ;;  %v2780_v32 = vpop.permute.xlu0 %2779 }
 0x3f9   :  { %v2794_v62 = vsel %vm672_vm3, %v2780_v32, %v6722_v42  ;;  %v2798_v3 = vsel %vm672_vm3, %v6660_v10, %v2780_v32  ;;  %3455 = vmatpush1.msra.mxu0 %v2737_v33  ;;  %v6889_v32 = vrot.slane %v6761_v39, %v5474_v50 }
 0x3fa   :  { %v2837_v22 = vmul.f32 %v6746_v58, %v2798_v3  ;;  %v2838_v59 = vmul.f32 %v6756_v46, %v2794_v62  ;;  %2995 = vrot.lane.b32.xlu0 %v6406_v11, %s3843_s30  ;;  %2985 = vrot.lane.b32.xlu1 %v6426_v19, %s3843_s30  ;;  %v6894_v62 = vld [vmem:[%s7438_s5 + $0x4] sm:$0xf] }
 0x3fc   :  { %v6841_v38 = vpop.permute.xlu1 %2683  ;;  %3590 = vmatprep.subr.mxu1 %v2838_v59  ;;  %v2662_v21 = vpop.permute.xlu0 %2661 }
 0x3fd   :  { %v2700_v42 = vsel %vm488_vm5, %v2662_v21, %v6799_v17  ;;  %v2704_v10 = vsel %vm488_vm5, %v6813_v57, %v2662_v21  ;;  %3591 = vmatpush1.msra.mxu1 %v2837_v22 }
 0x3fe   :  { %v2733_v27 = vmul.f32 %v6773_v24, %v2704_v10  ;;  %v2734_v9 = vmul.f32 %v6783_v16, %v2700_v42  ;;  %3111 = vrot.lane.b32.xlu0 %v6477_v31, %s3841_s23  ;;  %2999 = vrot.lane.b32.xlu1 %v6442_v28, %s3843_s30 }
 0x400   :  { %v6855_v52 = vpop.permute.xlu1 %2571  ;;  %3456 = vmatprep.subr.mxu0 %v2734_v9  ;;  %v2778_v45 = vpop.permute.xlu0 %2777 }
 0x401   :  { %v2793_v5 = vsel %vm672_vm3, %v2778_v45, %v6706_v30  ;;  %v2797_v2 = vsel %vm672_vm3, %v6696_v20, %v2778_v45  ;;  %3457 = vmatpush1.msra.mxu0 %v2733_v27 }
 0x402   :  { %v2833_v1 = vmul.f32 %v6746_v58, %v2797_v2  ;;  %v2834_v49 = vmul.f32 %v6756_v46, %v2793_v5  ;;  %2993 = vrot.lane.b32.xlu0 %v6435_v44, %s3843_s30  ;;  %2983 = vrot.lane.b32.xlu1 %v6449_v51, %s3843_s30  ;;  %v6879_v58 = vrot.slane %v6761_v39, %v5459_v0 }
 0x403   :  { %v6906_v39 = vrot.slane %v6894_v62, %v7752_v7 }
 0x404   :  { %v6869_v34 = vpop.permute.xlu1 %2587  ;;  %3592 = vmatprep.subr.mxu1 %v2834_v49  ;;  %v2660_v33 = vpop.permute.xlu0 %2659 }
 0x405   :  { %v2699_v30 = vsel %vm488_vm5, %v2660_v33, %v6827_v61  ;;  %v2703_v20 = vsel %vm488_vm5, %v6841_v38, %v2660_v33  ;;  %3593 = vmatpush1.msra.mxu1 %v2833_v1 }
 0x406   :  { %v2729_v46 = vmul.f32 %v6773_v24, %v2703_v20  ;;  %v2730_v15 = vmul.f32 %v6783_v16, %v2699_v30  ;;  %3109 = vrot.lane.b32.xlu0 %v6498_v56, %s3841_s23  ;;  %2997 = vrot.lane.b32.xlu1 %v6466_v63, %s3843_s30 }
 0x408   :  { %v6896_v3 = vpop.permute.xlu1 %2569  ;;  %3458 = vmatprep.subr.mxu0 %v2730_v15  ;;  %v2682_v24 = vpop.permute.xlu0 %2681 }
 0x409   :  { %v2694_v16 = vsel %vm488_vm5, %v2682_v24, %v6736_v37  ;;  %v2698_v22 = vsel %vm488_vm5, %v6720_v18, %v2682_v24  ;;  %3459 = vmatpush1.msra.mxu0 %v2729_v46  ;;  %v6916_v37 = vrot.slane %v6894_v62, %v7751_v55 }
 0x40a   :  { %v2743_v59 = vmul.f32 %v6879_v58, %v2698_v22  ;;  %v2744_v21 = vmul.f32 %v6889_v32, %v2694_v16  ;;  %2991 = vrot.lane.b32.xlu0 %v6459_v54, %s3843_s30  ;;  %2981 = vrot.lane.b32.xlu1 %v6473_v35, %s3843_s30 }
 0x40c   :  { %v6918_v18 = vpop.permute.xlu1 %2585  ;;  %3594 = vmatprep.subr.mxu1 %v2744_v21  ;;  %v2564_v42 = vpop.permute.xlu0 %2563 }
 0x40d   :  { %v2600_v10 = vsel %vm304_vm0, %v2564_v42, %v6855_v52  ;;  %v2604_v27 = vsel %vm304_vm0, %v6869_v34, %v2564_v42  ;;  %3595 = vmatpush1.msra.mxu1 %v2743_v59 }
 0x40e   :  { %v2639_v9 = vmul.f32 %v6906_v39, %v2604_v27  ;;  %v2640_v45 = vmul.f32 %v6916_v37, %v2600_v10  ;;  %2901 = vrot.lane.b32.xlu1 %v6429_v25, %s3839_s18  ;;  %3107 = vrot.lane.b32.xlu0 %v6492_v12, %s3841_s23 }
 0x410   :  { %v6932_v5 = vpop.permute.xlu1 %2567  ;;  %3460 = vmatprep.subr.mxu0 %v2640_v45  ;;  %v2680_v2 = vpop.permute.xlu0 %2679 }
 0x411   :  { %v2693_v1 = vsel %vm488_vm5, %v2680_v2, %v6785_v40  ;;  %v2697_v49 = vsel %vm488_vm5, %v6763_v60, %v2680_v2  ;;  %3461 = vmatpush1.msra.mxu0 %v2639_v9 }
 0x412   :  { %v2739_v33 = vmul.f32 %v6879_v58, %v2697_v49  ;;  %v2740_v30 = vmul.f32 %v6889_v32, %v2693_v1  ;;  %2885 = vrot.lane.b32.xlu1 %v6408_v13, %s3839_s18  ;;  %2989 = vrot.lane.b32.xlu0 %v6484_v4, %s3843_s30 }
 0x414   :  { %v6946_v20 = vpop.permute.xlu1 %2583  ;;  %3596 = vmatprep.subr.mxu1 %v2740_v30  ;;  %v2562_v46 = vpop.permute.xlu0 %2561 }
 0x415   :  { %v2599_v40 = vsel %vm304_vm0, %v2562_v46, %v6896_v3  ;;  %v2603_v60 = vsel %vm304_vm0, %v6918_v18, %v2562_v46  ;;  %3597 = vmatpush1.msra.mxu1 %v2739_v33 }
 0x416   :  { %v2635_v15 = vmul.f32 %v6906_v39, %v2603_v60  ;;  %v2636_v24 = vmul.f32 %v6916_v37, %v2599_v40  ;;  %2899 = vrot.lane.b32.xlu1 %v6422_v23, %s3839_s18  ;;  %3011 = vrot.lane.b32.xlu0 %v6452_v8, %s3843_s30 }
 0x418   :  { %v6960_v16 = vpop.permute.xlu1 %2565  ;;  %3462 = vmatprep.subr.mxu0 %v2636_v24  ;;  %v2678_v22 = vpop.permute.xlu0 %2677 }
 0x419   :  { %v2692_v59 = vsel %vm488_vm5, %v2678_v22, %v6813_v57  ;;  %v2696_v21 = vsel %vm488_vm5, %v6799_v17, %v2678_v22  ;;  %3463 = vmatpush1.msra.mxu0 %v2635_v15  ;;  %v7022_v22 = vrot.slane %v6894_v62, %v5474_v50 }
 0x41a   :  { %v2735_v42 = vmul.f32 %v6879_v58, %v2696_v21  ;;  %v2736_v10 = vmul.f32 %v6889_v32, %v2692_v59  ;;  %2883 = vrot.lane.b32.xlu1 %v6426_v19, %s3839_s18  ;;  %2893 = vrot.lane.b32.xlu0 %v6406_v11, %s3839_s18  ;;  %v7027_v59 = vld [vmem:[%s7438_s5] sm:$0xf] }
 0x41c   :  { %v6974_v27 = vpop.permute.xlu1 %2581  ;;  %3598 = vmatprep.subr.mxu1 %v2736_v10  ;;  %v2560_v9 = vpop.permute.xlu0 %2559 }
 0x41d   :  { %v2598_v57 = vsel %vm304_vm0, %v2560_v9, %v6932_v5  ;;  %v2602_v17 = vsel %vm304_vm0, %v6946_v20, %v2560_v9  ;;  %3599 = vmatpush1.msra.mxu1 %v2735_v42 }
 0x41e   :  { %v2631_v45 = vmul.f32 %v6906_v39, %v2602_v17  ;;  %v2632_v2 = vmul.f32 %v6916_v37, %v2598_v57  ;;  %2897 = vrot.lane.b32.xlu1 %v6442_v28, %s3839_s18  ;;  %3009 = vrot.lane.b32.xlu0 %v6477_v31, %s3843_s30 }
 0x420   :  { %v6988_v1 = vpop.permute.xlu1 %2469  ;;  %3464 = vmatprep.subr.mxu0 %v2632_v2  ;;  %v2676_v49 = vpop.permute.xlu0 %2675 }
 0x421   :  { %v2691_v33 = vsel %vm488_vm5, %v2676_v49, %v6841_v38  ;;  %v2695_v30 = vsel %vm488_vm5, %v6827_v61, %v2676_v49  ;;  %3465 = vmatpush1.msra.mxu0 %v2631_v45 }
 0x422   :  { %v2731_v46 = vmul.f32 %v6879_v58, %v2695_v30  ;;  %v2732_v40 = vmul.f32 %v6889_v32, %v2691_v33  ;;  %2881 = vrot.lane.b32.xlu1 %v6449_v51, %s3839_s18  ;;  %2891 = vrot.lane.b32.xlu0 %v6435_v44, %s3839_s18  ;;  %v7012_v58 = vrot.slane %v6894_v62, %v5459_v0 }
 0x423   :  { %v7039_v62 = vrot.slane %v7027_v59, %v7752_v7 }
 0x424   :  { %v7002_v60 = vpop.permute.xlu1 %2485  ;;  %3600 = vmatprep.subr.mxu1 %v2732_v40  ;;  %v2558_v15 = vpop.permute.xlu0 %2557 }
 0x425   :  { %v2597_v38 = vsel %vm304_vm0, %v2558_v15, %v6960_v16  ;;  %v2601_v61 = vsel %vm304_vm0, %v6974_v27, %v2558_v15  ;;  %3601 = vmatpush1.msra.mxu1 %v2731_v46  ;;  %v3288_v46 = vld [vmem:[%s7441_s3 + $0x8] sm:$0xff] }
 0x426   :  { %v2627_v32 = vmul.f32 %v6906_v39, %v2601_v61  ;;  %v2628_v24 = vmul.f32 %v6916_v37, %v2597_v38  ;;  %2895 = vrot.lane.b32.xlu1 %v6466_v63, %s3839_s18  ;;  %3007 = vrot.lane.b32.xlu0 %v6498_v56, %s3843_s30 }
 0x427   :  { %3508 = vmatprep.mubr.f32.mxu0 %v3288_v46  ;;  %3650 = vmatprep.mubr.f32.mxu1 %v3288_v46 }
 0x428   :  { %v7029_v21 = vpop.permute.xlu1 %2467  ;;  %3466 = vmatprep.subr.mxu0 %v2628_v24  ;;  %v2580_v39 = vpop.permute.xlu0 %2579 }
 0x429   :  { %v2592_v37 = vsel %vm304_vm0, %v2580_v39, %v6869_v34  ;;  %v2596_v42 = vsel %vm304_vm0, %v6855_v52, %v2580_v39  ;;  %3467 = vmatpush1.msra.mxu0 %v2627_v32  ;;  %v7049_v34 = vrot.slane %v7027_v59, %v7751_v55 }
 0x42a   :  { %v2641_v10 = vmul.f32 %v7012_v58, %v2596_v42  ;;  %v2642_v9 = vmul.f32 %v7022_v22, %v2592_v37  ;;  %2879 = vrot.lane.b32.xlu1 %v6473_v35, %s3839_s18  ;;  %2889 = vrot.lane.b32.xlu0 %v6459_v54, %s3839_s18  ;;  %v3434_v42 = vld [vmem:[%s7442_s4] sm:$0xff] }
 0x42c   :  { %v7051_v52 = vpop.permute.xlu1 %2483  ;;  %3602 = vmatprep.subr.mxu1 %v2642_v9  ;;  %v2462_v57 = vpop.permute.xlu0 %2461 }
 0x42d   :  { %v2498_v17 = vsel %vm121_vm2, %v2462_v57, %v6988_v1  ;;  %v2502_v45 = vsel %vm121_vm2, %v7002_v60, %v2462_v57  ;;  %3603 = vmatpush1.msra.mxu1 %v2641_v10 }
 0x42e   :  { %v2537_v2 = vmul.f32 %v7039_v62, %v2502_v45  ;;  %v2538_v49 = vmul.f32 %v7049_v34, %v2498_v17  ;;  %2905 = vrot.lane.b32.xlu1 %v6498_v56, %s3839_s18  ;;  %3005 = vrot.lane.b32.xlu0 %v6492_v12, %s3843_s30 }
 0x430   :  { %v7065_v33 = vpop.permute.xlu1 %2465  ;;  %3468 = vmatprep.subr.mxu0 %v2538_v49  ;;  %v2578_v30 = vpop.permute.xlu0 %2577 }
 0x431   :  { %v2591_v40 = vsel %vm304_vm0, %v2578_v30, %v6918_v18  ;;  %v2595_v15 = vsel %vm304_vm0, %v6896_v3, %v2578_v30  ;;  %3469 = vmatpush1.msra.mxu0 %v2537_v2 }
 0x432   :  { %v2637_v38 = vmul.f32 %v7012_v58, %v2595_v15  ;;  %v2638_v61 = vmul.f32 %v7022_v22, %v2591_v40  ;;  %3215 = vrot.lane.b32.xlu1 %v6452_v8, %s3844_s14  ;;  %2887 = vrot.lane.b32.xlu0 %v6484_v4, %s3839_s18 }
 0x434   :  { %v7082_v32 = vpop.permute.xlu1 %2481  ;;  %3604 = vmatprep.subr.mxu1 %v2638_v61  ;;  %v2460_v18 = vpop.permute.xlu0 %2459 }
 0x435   :  { %v2497_v3 = vsel %vm121_vm2, %v2460_v18, %v7029_v21  ;;  %v2501_v24 = vsel %vm121_vm2, %v7051_v52, %v2460_v18  ;;  %3605 = vmatpush1.msra.mxu1 %v2637_v38 }
 0x436   :  { %v2533_v39 = vmul.f32 %v7039_v62, %v2501_v24  ;;  %v2534_v37 = vmul.f32 %v7049_v34, %v2497_v3  ;;  %3211 = vrot.lane.b32.xlu1 %v6498_v56, %s3844_s14  ;;  %2909 = vrot.lane.b32.xlu0 %v6452_v8, %s3839_s18 }
 0x438   :  { %v7099_v10 = vpop.permute.xlu1 %2463  ;;  %3470 = vmatprep.subr.mxu0 %v2534_v37  ;;  %v2576_v9 = vpop.permute.xlu0 %2575 }
 0x439   :  { %v2590_v57 = vsel %vm304_vm0, %v2576_v9, %v6946_v20  ;;  %v2594_v17 = vsel %vm304_vm0, %v6932_v5, %v2576_v9  ;;  %3471 = vmatpush1.msra.mxu0 %v2533_v39  ;;  %v2520_v9 = vrot.slane %v7027_v59, %v5474_v50 }
 0x43a   :  { %v2633_v45 = vmul.f32 %v7012_v58, %v2594_v17  ;;  %v2634_v2 = vmul.f32 %v7022_v22, %v2590_v57  ;;  %3437 = vperm.xlu1 %3771, %v3434_v42   ;;  %2907 = vrot.lane.b32.xlu0 %v6477_v31, %s3839_s18  ;;  %v2516_v42 = vrot.slane %v7027_v59, %v5459_v0 }
 0x43c   :  { %v7111_v49 = vpop.permute.xlu1 %2479  ;;  %3606 = vmatprep.subr.mxu1 %v2634_v2  ;;  %v2458_v30 = vpop.permute.xlu0 %2457 }
 0x43d   :  { %v2496_v20 = vsel %vm121_vm2, %v2458_v30, %v7065_v33  ;;  %v2500_v5 = vsel %vm121_vm2, %v7082_v32, %v2458_v30  ;;  %3607 = vmatpush1.msra.mxu1 %v2633_v45  ;;  %v3756_v30 = vld [vmem:[%s7438_s5 + $0x1c] sm:$0xf] }
 0x43e   :  { %v2529_v46 = vmul.f32 %v7039_v62, %v2500_v5  ;;  %v2530_v40 = vmul.f32 %v7049_v34, %v2496_v20  ;;  %2903 = vrot.lane.b32.xlu0 %v6492_v12, %s3839_s18 }
 0x440   :  { %v3098_v15 = vpop.permute.xlu1 %3097  ;;  %3472 = vmatprep.subr.mxu0 %v2530_v40  ;;  %v2574_v38 = vpop.permute.xlu0 %2573  ;;  %v3140_v40 = vrot.slane %v3756_v30, %v7751_v55 }
 0x441   :  { %v2589_v61 = vsel %vm304_vm0, %v2574_v38, %v6974_v27  ;;  %v2593_v18 = vsel %vm304_vm0, %v6960_v16, %v2574_v38  ;;  %3473 = vmatpush1.msra.mxu0 %v2529_v46  ;;  %v3136_v38 = vrot.slane %v3756_v30, %v7752_v7 }
 0x442   :  { %v2629_v3 = vmul.f32 %v7012_v58, %v2593_v18  ;;  %v2630_v24 = vmul.f32 %v7022_v22, %v2589_v61  ;;  %3213 = vrot.lane.b32.xlu0 %v6477_v31, %s3844_s14 }
 0x444   :  { %v7133_v39 = vpop.permute.xlu1 %3089  ;;  %3608 = vmatprep.subr.mxu1 %v2630_v24  ;;  %v2456_v37 = vpop.permute.xlu0 %2455 }
 0x445   :  { %v2495_v27 = vsel %vm121_vm2, %v2456_v37, %v7099_v10  ;;  %v2499_v16 = vsel %vm121_vm2, %v7111_v49, %v2456_v37  ;;  %3609 = vmatpush1.msra.mxu1 %v2629_v3  ;;  %v3126_v61 = vsel %vm1256_vm4, %v7133_v39, %v3098_v15 }
 0x446   :  { %v2525_v58 = vmul.f32 %v7039_v62, %v2499_v16  ;;  %v2526_v22 = vmul.f32 %v7049_v34, %v2495_v27  ;;  %3209 = vrot.lane.b32.xlu0 %v6492_v12, %s3844_s14 }
 0x448   :  { %v3096_v57 = vpop.permute.xlu1 %3095  ;;  %3474 = vmatprep.subr.mxu0 %v2526_v22  ;;  %v2478_v17 = vpop.permute.xlu0 %2477 }
 0x449   :  { %v2490_v45 = vsel %vm121_vm2, %v2478_v17, %v7002_v60  ;;  %v2494_v62 = vsel %vm121_vm2, %v6988_v1, %v2478_v17  ;;  %3475 = vmatpush1.msra.mxu0 %v2525_v58 }
 0x44a   :  { %v2539_v34 = vmul.f32 %v2516_v42, %v2494_v62  ;;  %v2540_v2 = vmul.f32 %v2520_v9, %v2490_v45 }
 0x44c   :  { %v7158_v20 = vpop.permute.xlu1 %3087  ;;  %3610 = vmatprep.subr.mxu1 %v2540_v2  ;;  %v2476_v59 = vpop.permute.xlu0 %2475 }
 0x44d   :  { %v2489_v5 = vsel %vm121_vm2, %v2476_v59, %v7051_v52  ;;  %v2493_v60 = vsel %vm121_vm2, %v7029_v21, %v2476_v59  ;;  %3611 = vmatpush1.msra.mxu1 %v2539_v34  ;;  %v3165_v21 = vmul.f32 %v3136_v38, %v3126_v61 }
 0x44e   :  { %v2535_v1 = vmul.f32 %v2516_v42, %v2493_v60  ;;  %v2536_v46 = vmul.f32 %v2520_v9, %v2489_v5 }
 0x450   :  { %v3094_v18 = vpop.permute.xlu1 %3093  ;;  %3612 = vmatprep.subr.mxu1 %v2536_v46  ;;  %v3106_v3 = vpop.permute.xlu0 %3105 }
 0x451   :  { %v3122_v52 = vsel %vm1256_vm4, %v3098_v15, %v3106_v3  ;;  %3613 = vmatpush1.msra.mxu1 %v2535_v1  ;;  %v3125_v15 = vsel %vm1256_vm4, %v7158_v20, %v3096_v57 }
 0x452   :  { %v3166_v24 = vmul.f32 %v3140_v40, %v3122_v52  ;;  %v3161_v2 = vmul.f32 %v3136_v38, %v3125_v15 }
 0x454   :  { %v7173_v37 = vpop.permute.xlu1 %3085  ;;  %3476 = vmatprep.subr.mxu0 %v3166_v24  ;;  %v2474_v27 = vpop.permute.xlu0 %2473 }
 0x455   :  { %v2488_v16 = vsel %vm121_vm2, %v2474_v27, %v7082_v32  ;;  %v2492_v58 = vsel %vm121_vm2, %v7065_v33, %v2474_v27  ;;  %3477 = vmatpush2.msra.mxu0 %v3165_v21 }
 0x456   :  { %v2531_v22 = vmul.f32 %v2516_v42, %v2492_v58  ;;  %v2532_v17 = vmul.f32 %v2520_v9, %v2488_v16 }
 0x458   :  { %v7184_v45 = vpop.permute.xlu1 %3099  ;;  %3614 = vmatprep.subr.mxu1 %v2532_v17  ;;  %v3104_v62 = vpop.permute.xlu0 %3103  ;;  %v7216_v17 = vld [vmem:[%s7438_s5 + $0x18] sm:$0xf] }
 0x459   :  { %v3121_v34 = vsel %vm1256_vm4, %v3096_v57, %v3104_v62  ;;  %3615 = vmatpush1.msra.mxu1 %v2531_v22  ;;  %v3124_v57 = vsel %vm1256_vm4, %v7173_v37, %v3094_v18  ;;  %v3148_v22 = vrot.slane %v3756_v30, %v5474_v50 }
 0x45a   :  { %v3162_v32 = vmul.f32 %v3140_v40, %v3121_v34  ;;  %v3157_v21 = vmul.f32 %v3136_v38, %v3124_v57 }
 0x45c   :  { %v7188_v59 = vpop.permute.xlu1 %3083  ;;  %3478 = vmatprep.subr.mxu0 %v3162_v32  ;;  %v2472_v33 = vpop.permute.xlu0 %2471 }
 0x45d   :  { %v2487_v5 = vsel %vm121_vm2, %v2472_v33, %v7111_v49  ;;  %v2491_v60 = vsel %vm121_vm2, %v7099_v10, %v2472_v33  ;;  %3479 = vmatpush2.msra.mxu0 %v3161_v2  ;;  %v3038_v33 = vrot.slane %v7216_v17, %v7751_v55 }
 0x45e   :  { %v2527_v1 = vmul.f32 %v2516_v42, %v2491_v60  ;;  %v2528_v46 = vmul.f32 %v2520_v9, %v2487_v5 }
 0x460   :  { %v7199_v61 = vpop.permute.xlu1 %3003  ;;  %3616 = vmatprep.subr.mxu1 %v2528_v46  ;;  %v3102_v52 = vpop.permute.xlu0 %3101 }
 0x461   :  { %v3120_v24 = vsel %vm1256_vm4, %v3094_v18, %v3102_v52  ;;  %3617 = vmatpush1.msra.mxu1 %v2527_v1  ;;  %v3144_v18 = vrot.slane %v3756_v30, %v5459_v0  ;;  %v3034_v30 = vrot.slane %v7216_v17, %v7752_v7 }
 0x462   :  { %v3158_v49 = vmul.f32 %v3140_v40, %v3120_v24 }
 0x464   :  { %v7203_v27 = vpop.permute.xlu1 %2987  ;;  %3480 = vmatprep.subr.mxu0 %v3158_v49  ;;  %v3092_v10 = vpop.permute.xlu0 %3091 }
 0x465   :  { %v3119_v42 = vsel %vm1256_vm4, %v3092_v10, %v7184_v45  ;;  %v3123_v9 = vsel %vm1256_vm4, %v7188_v59, %v3092_v10  ;;  %3481 = vmatpush2.msra.mxu0 %v3157_v21 }
 0x466   :  { %v3153_v16 = vmul.f32 %v3136_v38, %v3123_v9  ;;  %v3154_v58 = vmul.f32 %v3140_v40, %v3119_v42 }
 0x468   :  { %v7218_v15 = vpop.permute.xlu1 %3001  ;;  %3482 = vmatprep.subr.mxu0 %v3154_v58  ;;  %v3114_v34 = vpop.permute.xlu0 %3113 }
 0x469   :  { %v3118_v32 = vsel %vm1256_vm4, %v3106_v3, %v3114_v34  ;;  %v3130_v40 = vsel %vm1256_vm4, %v3114_v34, %v7133_v39  ;;  %3483 = vmatpush2.msra.mxu0 %v3153_v16 }
 0x46a   :  { %v3167_v38 = vmul.f32 %v3144_v18, %v3118_v32  ;;  %v3168_v2 = vmul.f32 %v3148_v22, %v3130_v40 }
 0x46c   :  { %v7229_v5 = vpop.permute.xlu1 %2985  ;;  %3618 = vmatprep.subr.mxu1 %v3168_v2  ;;  %v2996_v60 = vpop.permute.xlu0 %2995 }
 0x46d   :  { %v3020_v3 = vsel %vm1072_vm6, %v2996_v60, %v7199_v61  ;;  %v3024_v39 = vsel %vm1072_vm6, %v7203_v27, %v2996_v60  ;;  %3619 = vmatpush2.msra.mxu1 %v3167_v38 }
 0x46e   :  { %v3063_v1 = vmul.f32 %v3034_v30, %v3024_v39  ;;  %v3064_v46 = vmul.f32 %v3038_v33, %v3020_v3 }
 0x470   :  { %v7237_v57 = vpop.permute.xlu1 %2999  ;;  %3484 = vmatprep.subr.mxu0 %v3064_v46  ;;  %v3112_v24 = vpop.permute.xlu0 %3111 }
 0x471   :  { %v3117_v49 = vsel %vm1256_vm4, %v3104_v62, %v3112_v24  ;;  %v3129_v21 = vsel %vm1256_vm4, %v3112_v24, %v7158_v20  ;;  %3485 = vmatpush2.msra.mxu0 %v3063_v1 }
 0x472   :  { %v3163_v10 = vmul.f32 %v3144_v18, %v3117_v49  ;;  %v3164_v42 = vmul.f32 %v3148_v22, %v3129_v21 }
 0x474   :  { %v7244_v9 = vpop.permute.xlu1 %2983  ;;  %3620 = vmatprep.subr.mxu1 %v3164_v42  ;;  %v2994_v16 = vpop.permute.xlu0 %2993 }
 0x475   :  { %v3019_v58 = vsel %vm1072_vm6, %v2994_v16, %v7218_v15  ;;  %v3023_v34 = vsel %vm1072_vm6, %v7229_v5, %v2994_v16  ;;  %3621 = vmatpush2.msra.mxu1 %v3163_v10 }
 0x476   :  { %v3059_v62 = vmul.f32 %v3034_v30, %v3023_v34  ;;  %v3060_v32 = vmul.f32 %v3038_v33, %v3019_v58 }
 0x478   :  { %v7252_v40 = vpop.permute.xlu1 %2997  ;;  %3486 = vmatprep.subr.mxu0 %v3060_v32  ;;  %v3110_v20 = vpop.permute.xlu0 %3109 }
 0x479   :  { %v3116_v38 = vsel %vm1256_vm4, %v3102_v52, %v3110_v20  ;;  %v3128_v2 = vsel %vm1256_vm4, %v3110_v20, %v7173_v37  ;;  %3487 = vmatpush2.msra.mxu0 %v3059_v62 }
 0x47a   :  { %v3159_v60 = vmul.f32 %v3144_v18, %v3116_v38  ;;  %v3160_v3 = vmul.f32 %v3148_v22, %v3128_v2 }
 0x47c   :  { %v7259_v39 = vpop.permute.xlu1 %2981  ;;  %3622 = vmatprep.subr.mxu1 %v3160_v3  ;;  %v2992_v1 = vpop.permute.xlu0 %2991 }
 0x47d   :  { %v3018_v46 = vsel %vm1072_vm6, %v2992_v1, %v7237_v57  ;;  %v3022_v24 = vsel %vm1072_vm6, %v7244_v9, %v2992_v1  ;;  %3623 = vmatpush2.msra.mxu1 %v3159_v60 }
 0x47e   :  { %v3055_v52 = vmul.f32 %v3034_v30, %v3022_v24  ;;  %v3056_v49 = vmul.f32 %v3038_v33, %v3018_v46 }
 0x480   :  { %v7267_v21 = vpop.permute.xlu1 %2901  ;;  %3488 = vmatprep.subr.mxu0 %v3056_v49  ;;  %v3108_v37 = vpop.permute.xlu0 %3107 }
 0x481   :  { %v3115_v10 = vsel %vm1256_vm4, %v7184_v45, %v3108_v37  ;;  %v3127_v42 = vsel %vm1256_vm4, %v3108_v37, %v7188_v59  ;;  %3489 = vmatpush2.msra.mxu0 %v3055_v52  ;;  %v3042_v59 = vrot.slane %v7216_v17, %v5459_v0 }
 0x482   :  { %v3155_v16 = vmul.f32 %v3144_v18, %v3115_v10  ;;  %v3156_v58 = vmul.f32 %v3148_v22, %v3127_v42  ;;  %v3046_v18 = vrot.slane %v7216_v17, %v5474_v50  ;;  %v7290_v22 = vld [vmem:[%s7438_s5 + $0x14] sm:$0xf] }
 0x483   :  { %v2932_v1 = vrot.slane %v7290_v22, %v7752_v7  ;;  %v2936_v46 = vrot.slane %v7290_v22, %v7751_v55 }
 0x484   :  { %v7275_v34 = vpop.permute.xlu1 %2885  ;;  %3624 = vmatprep.subr.mxu1 %v3156_v58  ;;  %v2990_v62 = vpop.permute.xlu0 %2989 }
 0x485   :  { %v3017_v32 = vsel %vm1072_vm6, %v2990_v62, %v7252_v40  ;;  %v3021_v20 = vsel %vm1072_vm6, %v7259_v39, %v2990_v62  ;;  %3625 = vmatpush2.msra.mxu1 %v3155_v16 }
 0x486   :  { %v3051_v45 = vmul.f32 %v3034_v30, %v3021_v20  ;;  %v3052_v38 = vmul.f32 %v3038_v33, %v3017_v32 }
 0x488   :  { %v7292_v2 = vpop.permute.xlu1 %2899  ;;  %3490 = vmatprep.subr.mxu0 %v3052_v38  ;;  %v3012_v60 = vpop.permute.xlu0 %3011 }
 0x489   :  { %v3016_v30 = vsel %vm1072_vm6, %v7199_v61, %v3012_v60  ;;  %v3028_v33 = vsel %vm1072_vm6, %v3012_v60, %v7203_v27  ;;  %3491 = vmatpush2.msra.mxu0 %v3051_v45 }
 0x48a   :  { %v3065_v3 = vmul.f32 %v3042_v59, %v3016_v30  ;;  %v3066_v17 = vmul.f32 %v3046_v18, %v3028_v33 }
 0x48c   :  { %v7304_v24 = vpop.permute.xlu1 %2883  ;;  %3626 = vmatprep.subr.mxu1 %v3066_v17  ;;  %v2894_v52 = vpop.permute.xlu0 %2893 }
 0x48d   :  { %v2918_v61 = vsel %vm888_vm1, %v2894_v52, %v7267_v21  ;;  %v2922_v27 = vsel %vm888_vm1, %v7275_v34, %v2894_v52  ;;  %3627 = vmatpush2.msra.mxu1 %v3065_v3 }
 0x48e   :  { %v2961_v49 = vmul.f32 %v2932_v1, %v2922_v27  ;;  %v2962_v37 = vmul.f32 %v2936_v46, %v2918_v61 }
 0x490   :  { %v2898_v10 = vpop.permute.xlu1 %2897  ;;  %3492 = vmatprep.subr.mxu0 %v2962_v37  ;;  %v3010_v7 = vpop.permute.xlu0 %3009 }
 0x491   :  { %v3015_v55 = vsel %vm1072_vm6, %v7218_v15, %v3010_v7  ;;  %v3027_v42 = vsel %vm1072_vm6, %v3010_v7, %v7229_v5  ;;  %3493 = vmatpush2.msra.mxu0 %v2961_v49 }
 0x492   :  { %v3061_v16 = vmul.f32 %v3042_v59, %v3015_v55  ;;  %v3062_v58 = vmul.f32 %v3046_v18, %v3027_v42 }
 0x494   :  { %v2882_v62 = vpop.permute.xlu1 %2881  ;;  %3628 = vmatprep.subr.mxu1 %v3062_v58  ;;  %v2892_v32 = vpop.permute.xlu0 %2891 }
 0x495   :  { %v2917_v20 = vsel %vm888_vm1, %v2892_v32, %v7292_v2  ;;  %v2921_v45 = vsel %vm888_vm1, %v7304_v24, %v2892_v32  ;;  %3629 = vmatpush2.msra.mxu1 %v3061_v16 }
 0x496   :  { %v2957_v15 = vmul.f32 %v2932_v1, %v2921_v45  ;;  %v2958_v38 = vmul.f32 %v2936_v46, %v2917_v20 }
 0x498   :  { %3494 = vmatprep.subr.mxu0 %v2958_v38  ;;  %v3008_v60 = vpop.permute.xlu0 %3007  ;;  %v7324_v5 = vpop.permute.xlu1 %2895  ;;  %v2940_v38 = vrot.slane %v7290_v22, %v5459_v0 }
 0x499   :  { %v3014_v30 = vsel %vm1072_vm6, %v7237_v57, %v3008_v60  ;;  %v3026_v33 = vsel %vm1072_vm6, %v3008_v60, %v7244_v9  ;;  %3495 = vmatpush2.msra.mxu0 %v2957_v15 }
 0x49a   :  { %v3057_v3 = vmul.f32 %v3042_v59, %v3014_v30  ;;  %v3058_v17 = vmul.f32 %v3046_v18, %v3026_v33  ;;  %v3835_v33 = vld [vmem:[%s7438_s5 + $0x20] sm:$0xf] }
 0x49c   :  { %3630 = vmatprep.subr.mxu1 %v3058_v17  ;;  %v2890_v52 = vpop.permute.xlu0 %2889  ;;  %v2880_v7 = vpop.permute.xlu1 %2879 }
 0x49d   :  { %v2916_v61 = vsel %vm888_vm1, %v2890_v52, %v2898_v10  ;;  %v2920_v27 = vsel %vm888_vm1, %v2882_v62, %v2890_v52  ;;  %3631 = vmatpush2.msra.mxu1 %v3057_v3 }
 0x49e   :  { %v2953_v49 = vmul.f32 %v2932_v1, %v2920_v27  ;;  %v2954_v37 = vmul.f32 %v2936_v46, %v2916_v61 }
 0x4a0   :  { %3496 = vmatprep.subr.mxu0 %v2954_v37  ;;  %v3006_v57 = vpop.permute.xlu0 %3005  ;;  %v2906_v32 = vpop.permute.xlu1 %2905 }
 0x4a1   :  { %v3013_v9 = vsel %vm1072_vm6, %v7252_v40, %v3006_v57  ;;  %v3025_v55 = vsel %vm1072_vm6, %v3006_v57, %v7259_v39  ;;  %3497 = vmatpush2.msra.mxu0 %v2953_v49  ;;  %v2944_v39 = vrot.slane %v7290_v22, %v5474_v50  ;;  %v2912_v22 = vsel %vm888_vm1, %v2898_v10, %v2906_v32 }
 0x4a2   :  { %v3053_v42 = vmul.f32 %v3042_v59, %v3013_v9  ;;  %v3054_v16 = vmul.f32 %v3046_v18, %v3025_v55  ;;  %v2924_v3 = vsel %vm888_vm1, %v2906_v32, %v2882_v62 }
 0x4a4   :  { %3632 = vmatprep.subr.mxu1 %v3054_v16  ;;  %v2888_v58 = vpop.permute.xlu0 %2887 }
 0x4a5   :  { %v2915_v20 = vsel %vm888_vm1, %v2888_v58, %v7324_v5  ;;  %v2919_v45 = vsel %vm888_vm1, %v2880_v7, %v2888_v58  ;;  %3633 = vmatpush2.msra.mxu1 %v3053_v42 }
 0x4a6   :  { %v2949_v15 = vmul.f32 %v2932_v1, %v2919_v45  ;;  %v2950_v40 = vmul.f32 %v2936_v46, %v2915_v20  ;;  %v3216_v46 = vpop.permute.xlu1 %3215 }
 0x4a8   :  { %3498 = vmatprep.subr.mxu0 %v2950_v40  ;;  %v2910_v59 = vpop.permute.xlu0 %2909 }
 0x4a9   :  { %v2914_v18 = vsel %vm888_vm1, %v7267_v21, %v2910_v59  ;;  %v2926_v60 = vsel %vm888_vm1, %v2910_v59, %v7275_v34  ;;  %3499 = vmatpush2.msra.mxu0 %v2949_v15  ;;  %v3250_v21 = vrot.slane %v3835_v33, %v5474_v50  ;;  %v3246_v50 = vrot.slane %v3835_v33, %v5459_v0 }
 0x4aa   :  { %v2963_v30 = vmul.f32 %v2940_v38, %v2914_v18  ;;  %v2964_v1 = vmul.f32 %v2944_v39, %v2926_v60  ;;  %3500 = vmatprep.subr.mxu0 %v6406_v11  ;;  %v2956_v0 = vmul.f32 %v2944_v39, %v2924_v3  ;;  %v3212_v52 = vpop.permute.xlu1 %3211 }
 0x4ab   :  { %3501 = vmatpush2.msra.mxu0 %v6408_v13  ;;  %v3218_v37 = vsel %vm1440_vm7, %v6630_v48, %v3212_v52 }
 0x4ac   :  { %3502 = vmatprep.subr.mxu0 %v6435_v44  ;;  %3634 = vmatprep.subr.mxu1 %v2964_v1  ;;  %v2908_v34 = vpop.permute.xlu0 %2907  ;;  %v3232_v44 = vsel %vm1440_vm7, %v3216_v46, %v6564_v43  ;;  %v3261_v9 = vmul.f32 %v3246_v50, %v3218_v37 }
 0x4ad   :  { %v2913_v11 = vsel %vm888_vm1, %v7292_v2, %v2908_v34  ;;  %v2925_v13 = vsel %vm888_vm1, %v2908_v34, %v7304_v24  ;;  %3503 = vmatpush2.msra.mxu0 %v6426_v19  ;;  %3635 = vmatpush2.msra.mxu1 %v2963_v30  ;;  %v3220_v2 = vsel %vm1440_vm7, %v6605_v26, %v3216_v46  ;;  %v3287_v19 = vld [vmem:[%s7441_s3] sm:$0xff] }
 0x4ae   :  { %v2959_v10 = vmul.f32 %v2940_v38, %v2913_v11  ;;  %v2960_v17 = vmul.f32 %v2944_v39, %v2925_v13  ;;  %3504 = vmatprep.subr.mxu0 %v6459_v54  ;;  %v2955_v24 = vmul.f32 %v2940_v38, %v2912_v22  ;;  %v3270_v62 = vmul.f32 %v3250_v21, %v3232_v44 }
 0x4af   :  { %3505 = vmatpush2.msra.mxu0 %v6449_v51  ;;  %v3269_v51 = vmul.f32 %v3246_v50, %v3220_v2 }
 0x4b0   :  { %3506 = vmatprep.subr.mxu0 %v6484_v4  ;;  %3636 = vmatprep.subr.mxu1 %v2960_v17  ;;  %v2904_v43 = vpop.permute.xlu0 %2903 }
 0x4b1   :  { %v2911_v54 = vsel %vm888_vm1, %v7324_v5, %v2904_v43  ;;  %v2923_v26 = vsel %vm888_vm1, %v2904_v43, %v2880_v7  ;;  %3507 = vmatpush2.msra.mxu0 %v6473_v35  ;;  %3637 = vmatpush2.msra.mxu1 %v2959_v10  ;;  %v3230_v5 = vsel %vm1440_vm7, %v3212_v52, %v6648_v14 }
 0x4b2   :  { %v2951_v61 = vmul.f32 %v2940_v38, %v2911_v54  ;;  %v2952_v27 = vmul.f32 %v2944_v39, %v2923_v26  ;;  %3509 = vmatmul.mubr.f32.vlgmr.msra.gmra.mxu0 %v3287_v19  ;;  %3638 = vmatprep.subr.mxu1 %v2956_v0  ;;  %v3262_v14 = vmul.f32 %v3250_v21, %v3230_v5 }
 0x4b3   :  { %3681 = vmatprep.subr.mxu0 %v3270_v62  ;;  %3639 = vmatpush2.msra.mxu1 %v2955_v24 }
 0x4b4   :  { %3682 = vmatpush1.msra.mxu0 %v3269_v51  ;;  %3640 = vmatprep.subr.mxu1 %v2952_v27  ;;  %v3214_v4 = vpop.permute.xlu0 %3213 }
 0x4b5   :  { %v3219_v35 = vsel %vm1440_vm7, %v6583_v47, %v3214_v4  ;;  %v3231_v49 = vsel %vm1440_vm7, %v3214_v4, %v6603_v36  ;;  %3641 = vmatpush2.msra.mxu1 %v2951_v61  ;;  %3721 = vmatprep.mubr.f32.mxu0 %v7671_v6 }
 0x4b6   :  { %v3265_v7 = vmul.f32 %v3246_v50, %v3219_v35  ;;  %v3266_v57 = vmul.f32 %v3250_v21, %v3231_v49  ;;  %3642 = vmatprep.subr.mxu1 %v6452_v8 }
 0x4b7   :  { %3643 = vmatpush2.msra.mxu1 %v6429_v25  ;;  %v3438_v25 = vpop.permute.xlu1 %3437 }
 0x4b8   :  { %3644 = vmatprep.subr.mxu1 %v6477_v31  ;;  %3683 = vmatprep.subr.mxu0 %v3266_v57  ;;  %v3210_v47 = vpop.permute.xlu0 %3209 }
 0x4b9   :  { %v3217_v6 = vsel %vm1440_vm7, %v6670_v41, %v3210_v47  ;;  %v3229_v36 = vsel %vm1440_vm7, %v3210_v47, %v6684_v29  ;;  %3645 = vmatpush2.msra.mxu1 %v6422_v23  ;;  %3684 = vmatpush1.msra.mxu0 %v3265_v7  ;;  %v3581_v23 = vpop.f32.mrf.mxu1 }
 0x4ba   :  { %v3257_v8 = vmul.f32 %v3246_v50, %v3217_v6  ;;  %v3258_v48 = vmul.f32 %v3250_v21, %v3229_v36  ;;  %3646 = vmatprep.subr.mxu1 %v6498_v56  ;;  %3685 = vmatprep.subr.mxu0 %v3262_v14 }
 0x4bb   :  { %3647 = vmatpush2.msra.mxu1 %v6442_v28  ;;  %3686 = vmatpush1.msra.mxu0 %v3261_v9  ;;  %v3583_v55 = vpop.f32.mrf.mxu1 }
 0x4bc   :  { %3648 = vmatprep.subr.mxu1 %v6492_v12  ;;  %3687 = vmatprep.subr.mxu0 %v3258_v48 }
 0x4bd   :  { %3649 = vmatpush2.msra.mxu1 %v6466_v63  ;;  %3688 = vmatpush1.msra.mxu0 %v3257_v8 }
 0x4be   :  { %3651 = vmatmul.mubr.f32.vlgmr.msra.gmra.mxu1 %v3287_v19  ;;  %3759 = vmatmul.mubr.msk.f32.vlgmr.msra.gmra.mxu0 %vm3440_vm9, %v3836_v53 }
 0x572   :  { %v3510_v31 = vpop.f32.mrf.mxu0 }
 0x573   :  { %v3511_v56 = vadd.f32 %v3510_v31, %v3438_v25 }
 0x574   :  { %v3512_v41 = vpop.f32.mrf.mxu0 }
 0x575   :  { %v3582_v28 = vadd.f32 %v3581_v23, %v3511_v56  ;;  %v3513_v29 = vadd.f32 %v3512_v41, %v3438_v25 }
 0x577   :  { %3728 = vst [vmem:[%s7443_s6] sm:$0xff] %v3582_v28  ;;  %v3584_v63 = vadd.f32 %v3583_v55, %v3513_v29 }
 0x579   :  { %3729 = vst [vmem:[%s7443_s6 + $0x8] sm:$0xff] %v3584_v63 }
 0x57e   :  { %v3652_v12 = vpop.f32.mrf.mxu1  ;;  %v3723_v42 = vpop.f32.mrf.mxu0 }
 0x57f   :  { %v3653_v16 = vadd.f32 %v3652_v12, %v3438_v25 }
 0x580   :  { %v3654_v58 = vpop.f32.mrf.mxu1  ;;  %v3725_v45 = vpop.f32.mrf.mxu0 }
 0x581   :  { %v3724_v32 = vadd.f32 %v3723_v42, %v3653_v16  ;;  %v3655_v20 = vadd.f32 %v3654_v58, %v3438_v25 }
 0x583   :  { %3730 = vst [vmem:[%s7443_s6 + $0x10] sm:$0xff] %v3724_v32  ;;  %v3726_v15 = vadd.f32 %v3725_v45, %v3655_v20 }
 0x585   :  { %3731 = vst [vmem:[%s7443_s6 + $0x18] sm:$0xff] %v3726_v15 }

</bundles_post_ra>
